<compile_context>
chip_gen: v7x
topology: tpu7x:2x2x1
jax: 0.10.0
libtpu: 0.0.40
codegen_flags: <defaults>
</compile_context>

<pallas_src>
import functools

import jax
import jax.numpy as jnp
from jax.experimental import pallas as pl
from jax.experimental.pallas import tpu as pltpu


# ------------------------------ fused kernel --------------------------------

def fused_lstm_linear_kernel(x_ref, *refs, seq, hid_size, hid_layers, batch,
                             in_dim):
    """Fused stacked-LSTM + Linear + ReLU, single invocation, no grid.

    x_ref:  (B, seq*in)  batch-major flattened input (free reshape of input)
    refs:   [wih (4,in_l,H), whh (4,H,H), b (4,1,H)] * hid_layers,
            w_lin (seq*H, O), b_lin (1, O),
            o_ref (B, O)                     # output
    Gate order k = 0..3 follows PyTorch: i, f, g, o.
    """
    B, H, L = batch, hid_size, hid_layers
    layer_refs = [(refs[3 * l], refs[3 * l + 1], refs[3 * l + 2])
                  for l in range(L)]
    wlin_ref = refs[3 * L]        # (seq*H, O)
    blin_ref = refs[3 * L + 1]    # (1, O)
    o_ref = refs[3 * L + 2]       # (B, O)
    O = o_ref.shape[1]

    # Whole input resident as a value (tiny: B x seq*in); per-t lane slices of
    # this value are independent of the recurrence -> off the critical path.
    xv = x_ref[...]                                     # (B, seq*in)

    h = [jnp.zeros((B, H), jnp.float32) for _ in range(L)]
    c = [jnp.zeros((B, H), jnp.float32) for _ in range(L)]
    acc = jnp.zeros((B, O), jnp.float32)                # folded Linear accum

    # Fully-unrolled static time loop; all layers interleaved (no barrier).
    # Loop-carried state (h, c, acc) stays in vregs; no VMEM round-trips.
    for t in range(seq):
        inp = xv[:, t * in_dim:(t + 1) * in_dim]        # (B, in), layer-0 input
        for l in range(L):
            wih_ref, whh_ref, b_ref = layer_refs[l]
            z = []
            for k in range(4):                          # per-gate, lane-0 aligned
                zk = (jnp.dot(inp, wih_ref[k],
                              preferred_element_type=jnp.float32)
                      + jnp.dot(h[l], whh_ref[k],
                                preferred_element_type=jnp.float32)
                      + b_ref[k])                       # (B, H)
                z.append(zk)
            i_g = jax.nn.sigmoid(z[0])
            f_g = jax.nn.sigmoid(z[1])
            g_g = jnp.tanh(z[2])
            o_g = jax.nn.sigmoid(z[3])
            c[l] = f_g * c[l] + i_g * g_g
            h[l] = o_g * jnp.tanh(c[l])
            inp = h[l]                                  # feeds next layer, same t
        # Folded Linear: consume the top layer's h_t immediately (no hidden
        # state buffer, no epilogue loop); hidden under next step's latency.
        acc = acc + jnp.dot(inp, wlin_ref[t * H:(t + 1) * H, :],
                            preferred_element_type=jnp.float32)

    # Single output store + ReLU.
    o_ref[...] = jnp.maximum(acc + blin_ref[...], 0.0).astype(o_ref.dtype)


# -------------------------------- wrapper ------------------------------------

@functools.partial(jax.jit, static_argnames=("seq_length", "hid_size",
                                             "hid_layers"))
def lstmnet_onelinear_forward(x, kparams, *, seq_length, hid_size, hid_layers):
    """Forward pass matching LSTMNet_onelinear.forward (inference).

    x: (B, seq, nx, nd)  ->  returns (B, nx, nd)
    kparams: output of prepare_kernel_params (done once, outside the hot path).
    """
    B = x.shape[0]
    nx, nd = x.shape[-2], x.shape[-1]
    in_dim = nx * nd
    # Pure reshape (no transpose / copy op): the kernel does per-t lane slices.
    x2 = x.reshape(B, seq_length * in_dim)
    out_dim = kparams[-1].shape[-1]

    kernel = functools.partial(
        fused_lstm_linear_kernel, seq=seq_length, hid_size=hid_size,
        hid_layers=hid_layers, batch=B, in_dim=in_dim)

    y = pl.pallas_call(
        kernel,
        out_shape=jax.ShapeDtypeStruct((B, out_dim), jnp.float32),
        in_specs=[pl.BlockSpec(memory_space=pltpu.MemorySpace.VMEM)]
        * (1 + len(kparams)),
        out_specs=pl.BlockSpec(memory_space=pltpu.MemorySpace.VMEM),
    )(x2, *kparams)
    return y.reshape(B, nx, nd)


def prepare_kernel_params(params, hid_size):
    """One-time param prep: per-gate split (lane-0 aligned), transposed layouts.

    Returns a flat tuple:
      [wih (4,in_l,H), whh (4,H,H), b (4,1,H)] per layer, w_lin.T (seq*H,O),
      b_lin (1,O).
    """
    H = hid_size
    flat = []
    for (w_ih, w_hh, b_ih, b_hh) in params["lstm"]:
        bias = b_ih + b_hh                               # combined LSTM bias
        wih_g = jnp.stack([w_ih[k * H:(k + 1) * H, :].T for k in range(4)])
        whh_g = jnp.stack([w_hh[k * H:(k + 1) * H, :].T for k in range(4)])
        b_g = jnp.stack([bias[k * H:(k + 1) * H].reshape(1, H)
                         for k in range(4)])
        flat += [wih_g, whh_g, b_g]
    w_lin, b_lin = params["linear"]                      # (O, seq*H), (O,)
    flat += [w_lin.T, b_lin.reshape(1, -1)]              # (seq*H, O), (1, O)
    return tuple(flat)


# ------------------------ deterministic parameter init ----------------------

def xavier_normal(key, shape):
    fan_out, fan_in = shape[0], shape[1]
    std = (2.0 / (fan_in + fan_out)) ** 0.5
    return std * jax.random.normal(key, shape, jnp.float32)


def xavier_uniform(key, shape):
    fan_out, fan_in = shape[0], shape[1]
    a = (6.0 / (fan_in + fan_out)) ** 0.5
    return jax.random.uniform(key, shape, jnp.float32, -a, a)


def init_params(key, input_size, hid_size, hid_layers, output_size, seq_length):
    """PyTorch-native parameter shapes (W_ih (4H,in), W_hh (4H,H), biases)."""
    params = {"lstm": []}
    keys = jax.random.split(key, 4 * hid_layers + 1)
    k = 0
    for l in range(hid_layers):
        in_dim = input_size if l == 0 else hid_size
        w_ih = xavier_normal(keys[k], (4 * hid_size, in_dim)); k += 1
        w_hh = xavier_normal(keys[k], (4 * hid_size, hid_size)); k += 1
        bound = 1.0 / (hid_size ** 0.5)
        kb1, kb2 = jax.random.split(keys[k]); k += 1
        b_ih = jax.random.uniform(kb1, (4 * hid_size,), jnp.float32,
                                  -bound, bound)
        b_hh = jax.random.uniform(kb2, (4 * hid_size,), jnp.float32,
                                  -bound, bound)
        params["lstm"].append((w_ih, w_hh, b_ih, b_hh))
    w = xavier_uniform(keys[k], (output_size, hid_size * seq_length))
    b = jnp.zeros((output_size,), jnp.float32)
    params["linear"] = (w, b)
    return params


# --------------------------- pure-JAX reference ------------------------------

def reference_forward(x, params, *, seq_length, hid_size, hid_layers):
    B = x.shape[0]
    nx, nd = x.shape[-2], x.shape[-1]
    x2 = x.reshape(B, seq_length, nx * nd)
    H = hid_size
    h_seq = x2
    for l in range(hid_layers):
        w_ih, w_hh, b_ih, b_hh = params["lstm"][l]
        wih_t, whh_t = w_ih.T, w_hh.T
        bias = (b_ih + b_hh)[None, :]
        h = jnp.zeros((B, H), jnp.float32)
        c = jnp.zeros((B, H), jnp.float32)
        outs = []
        for t in range(seq_length):
            g = h_seq[:, t, :] @ wih_t + h @ whh_t + bias
            i = jax.nn.sigmoid(g[:, 0 * H:1 * H])
            f = jax.nn.sigmoid(g[:, 1 * H:2 * H])
            gg = jnp.tanh(g[:, 2 * H:3 * H])
            o = jax.nn.sigmoid(g[:, 3 * H:4 * H])
            c = f * c + i * gg
            h = o * jnp.tanh(c)
            outs.append(h)
        h_seq = jnp.stack(outs, axis=1)
    out_flat = h_seq.reshape(B, seq_length * H)
    w, b = params["linear"]
    y = jnp.maximum(out_flat @ w.T + b[None, :], 0.0)
    return y.reshape(B, nx, nd)


# ----------------------------------- main ------------------------------------

if __name__ == "__main__":
    key = jax.random.PRNGKey(0)
    B, seq_length, nx, nd = 2, 8, 4, 4
    input_size = nx * nd          # 16
    hid_size = 32
    hid_layers = 2
    output_size = nx * nd         # 16 (so the final view(-1, nx, nd) is valid)

    k_param, k_x = jax.random.split(key)
    params = init_params(k_param, input_size, hid_size, hid_layers,
                         output_size, seq_length)
    kparams = prepare_kernel_params(params, hid_size)   # one-time prep
    x = jax.random.normal(k_x, (B, seq_length, nx, nd), jnp.float32)

    y = lstmnet_onelinear_forward(
        x, kparams, seq_length=seq_length, hid_size=hid_size,
        hid_layers=hid_layers)
    y = jax.block_until_ready(y)

    y_ref = reference_forward(
        x, params, seq_length=seq_length, hid_size=hid_size,
        hid_layers=hid_layers)
    assert y.shape == (B, nx, nd)
    assert jnp.max(jnp.abs(y - y_ref)) < 1e-3

    print("KERNEL_OK")
</pallas_src>

<mosaic_0001>
module attributes {stable_mosaic.version = 11 : i64} {
  func.func @fused_lstm_linear_kernel(%arg0: memref<2x128xf32, #tpu.memory_space<vmem>>, %arg1: memref<4x16x32xf32, #tpu.memory_space<vmem>>, %arg2: memref<4x32x32xf32, #tpu.memory_space<vmem>>, %arg3: memref<4x1x32xf32, #tpu.memory_space<vmem>>, %arg4: memref<4x32x32xf32, #tpu.memory_space<vmem>>, %arg5: memref<4x32x32xf32, #tpu.memory_space<vmem>>, %arg6: memref<4x1x32xf32, #tpu.memory_space<vmem>>, %arg7: memref<256x16xf32, #tpu.memory_space<vmem>>, %arg8: memref<1x16xf32, #tpu.memory_space<vmem>>, %arg9: memref<2x16xf32, #tpu.memory_space<vmem>>) attributes {dimension_semantics = [], scalar_prefetch = 0 : i64, scratch_operands = 0 : i64, tpu.core_type = #tpu.core_type<tc>} {
    %c0 = arith.constant 0 : index
    %c0_0 = arith.constant 0 : index
    %0 = vector.load %arg0[%c0, %c0_0] : memref<2x128xf32, #tpu.memory_space<vmem>>, vector<2x128xf32>
    %cst = arith.constant 0.000000e+00 : f32
    %1 = vector.broadcast %cst : f32 to vector<2x32xf32>
    %cst_1 = arith.constant 0.000000e+00 : f32
    %2 = vector.broadcast %cst_1 : f32 to vector<2x32xf32>
    %cst_2 = arith.constant 0.000000e+00 : f32
    %3 = vector.broadcast %cst_2 : f32 to vector<2x32xf32>
    %cst_3 = arith.constant 0.000000e+00 : f32
    %4 = vector.broadcast %cst_3 : f32 to vector<2x32xf32>
    %cst_4 = arith.constant 0.000000e+00 : f32
    %5 = vector.broadcast %cst_4 : f32 to vector<2x16xf32>
    %6 = vector.extract_strided_slice %0 {offsets = [0, 0], sizes = [2, 16], strides = [1, 1]} : vector<2x128xf32> to vector<2x16xf32>
    %c0_5 = arith.constant 0 : index
    %c0_6 = arith.constant 0 : index
    %c0_7 = arith.constant 0 : index
    %7 = vector.load %arg1[%c0_5, %c0_6, %c0_7] : memref<4x16x32xf32, #tpu.memory_space<vmem>>, vector<1x16x32xf32>
    %8 = vector.shape_cast %7 : vector<1x16x32xf32> to vector<16x32xf32>
    %cst_8 = arith.constant dense<0.000000e+00> : vector<2x32xf32>
    %9 = tpu.matmul %6, %8, %cst_8 {dimension_numbers = #tpu.dot_dimension_numbers<[1], [0], [0], [1], [0, 0, 1, 1], [], []>} : vector<2x16xf32>, vector<16x32xf32>, vector<2x32xf32> -> vector<2x32xf32>
    %c0_9 = arith.constant 0 : index
    %c0_10 = arith.constant 0 : index
    %c0_11 = arith.constant 0 : index
    %10 = vector.load %arg2[%c0_9, %c0_10, %c0_11] : memref<4x32x32xf32, #tpu.memory_space<vmem>>, vector<1x32x32xf32>
    %11 = vector.shape_cast %10 : vector<1x32x32xf32> to vector<32x32xf32>
    %cst_12 = arith.constant dense<0.000000e+00> : vector<2x32xf32>
    %12 = tpu.matmul %1, %11, %cst_12 {dimension_numbers = #tpu.dot_dimension_numbers<[1], [0], [0], [1], [0, 0, 1, 1], [], []>} : vector<2x32xf32>, vector<32x32xf32>, vector<2x32xf32> -> vector<2x32xf32>
    %13 = arith.addf %9, %12 : vector<2x32xf32>
    %c0_13 = arith.constant 0 : index
    %c0_14 = arith.constant 0 : index
    %c0_15 = arith.constant 0 : index
    %14 = vector.load %arg3[%c0_13, %c0_14, %c0_15] : memref<4x1x32xf32, #tpu.memory_space<vmem>>, vector<1x1x32xf32>
    %15 = vector.shape_cast %14 : vector<1x1x32xf32> to vector<1x32xf32>
    %16 = vector.broadcast %15 : vector<1x32xf32> to vector<2x32xf32>
    %17 = arith.addf %13, %16 : vector<2x32xf32>
    %c1 = arith.constant 1 : index
    %c0_16 = arith.constant 0 : index
    %c0_17 = arith.constant 0 : index
    %18 = vector.load %arg1[%c1, %c0_16, %c0_17] : memref<4x16x32xf32, #tpu.memory_space<vmem>>, vector<1x16x32xf32>
    %19 = vector.shape_cast %18 : vector<1x16x32xf32> to vector<16x32xf32>
    %cst_18 = arith.constant dense<0.000000e+00> : vector<2x32xf32>
    %20 = tpu.matmul %6, %19, %cst_18 {dimension_numbers = #tpu.dot_dimension_numbers<[1], [0], [0], [1], [0, 0, 1, 1], [], []>} : vector<2x16xf32>, vector<16x32xf32>, vector<2x32xf32> -> vector<2x32xf32>
    %c1_19 = arith.constant 1 : index
    %c0_20 = arith.constant 0 : index
    %c0_21 = arith.constant 0 : index
    %21 = vector.load %arg2[%c1_19, %c0_20, %c0_21] : memref<4x32x32xf32, #tpu.memory_space<vmem>>, vector<1x32x32xf32>
    %22 = vector.shape_cast %21 : vector<1x32x32xf32> to vector<32x32xf32>
    %cst_22 = arith.constant dense<0.000000e+00> : vector<2x32xf32>
    %23 = tpu.matmul %1, %22, %cst_22 {dimension_numbers = #tpu.dot_dimension_numbers<[1], [0], [0], [1], [0, 0, 1, 1], [], []>} : vector<2x32xf32>, vector<32x32xf32>, vector<2x32xf32> -> vector<2x32xf32>
    %24 = arith.addf %20, %23 : vector<2x32xf32>
    %c1_23 = arith.constant 1 : index
    %c0_24 = arith.constant 0 : index
    %c0_25 = arith.constant 0 : index
    %25 = vector.load %arg3[%c1_23, %c0_24, %c0_25] : memref<4x1x32xf32, #tpu.memory_space<vmem>>, vector<1x1x32xf32>
    %26 = vector.shape_cast %25 : vector<1x1x32xf32> to vector<1x32xf32>
    %27 = vector.broadcast %26 : vector<1x32xf32> to vector<2x32xf32>
    %28 = arith.addf %24, %27 : vector<2x32xf32>
    %c2 = arith.constant 2 : index
    %c0_26 = arith.constant 0 : index
    %c0_27 = arith.constant 0 : index
    %29 = vector.load %arg1[%c2, %c0_26, %c0_27] : memref<4x16x32xf32, #tpu.memory_space<vmem>>, vector<1x16x32xf32>
    %30 = vector.shape_cast %29 : vector<1x16x32xf32> to vector<16x32xf32>
    %cst_28 = arith.constant dense<0.000000e+00> : vector<2x32xf32>
    %31 = tpu.matmul %6, %30, %cst_28 {dimension_numbers = #tpu.dot_dimension_numbers<[1], [0], [0], [1], [0, 0, 1, 1], [], []>} : vector<2x16xf32>, vector<16x32xf32>, vector<2x32xf32> -> vector<2x32xf32>
    %c2_29 = arith.constant 2 : index
    %c0_30 = arith.constant 0 : index
    %c0_31 = arith.constant 0 : index
    %32 = vector.load %arg2[%c2_29, %c0_30, %c0_31] : memref<4x32x32xf32, #tpu.memory_space<vmem>>, vector<1x32x32xf32>
    %33 = vector.shape_cast %32 : vector<1x32x32xf32> to vector<32x32xf32>
    %cst_32 = arith.constant dense<0.000000e+00> : vector<2x32xf32>
    %34 = tpu.matmul %1, %33, %cst_32 {dimension_numbers = #tpu.dot_dimension_numbers<[1], [0], [0], [1], [0, 0, 1, 1], [], []>} : vector<2x32xf32>, vector<32x32xf32>, vector<2x32xf32> -> vector<2x32xf32>
    %35 = arith.addf %31, %34 : vector<2x32xf32>
    %c2_33 = arith.constant 2 : index
    %c0_34 = arith.constant 0 : index
    %c0_35 = arith.constant 0 : index
    %36 = vector.load %arg3[%c2_33, %c0_34, %c0_35] : memref<4x1x32xf32, #tpu.memory_space<vmem>>, vector<1x1x32xf32>
    %37 = vector.shape_cast %36 : vector<1x1x32xf32> to vector<1x32xf32>
    %38 = vector.broadcast %37 : vector<1x32xf32> to vector<2x32xf32>
    %39 = arith.addf %35, %38 : vector<2x32xf32>
    %c3 = arith.constant 3 : index
    %c0_36 = arith.constant 0 : index
    %c0_37 = arith.constant 0 : index
    %40 = vector.load %arg1[%c3, %c0_36, %c0_37] : memref<4x16x32xf32, #tpu.memory_space<vmem>>, vector<1x16x32xf32>
    %41 = vector.shape_cast %40 : vector<1x16x32xf32> to vector<16x32xf32>
    %cst_38 = arith.constant dense<0.000000e+00> : vector<2x32xf32>
    %42 = tpu.matmul %6, %41, %cst_38 {dimension_numbers = #tpu.dot_dimension_numbers<[1], [0], [0], [1], [0, 0, 1, 1], [], []>} : vector<2x16xf32>, vector<16x32xf32>, vector<2x32xf32> -> vector<2x32xf32>
    %c3_39 = arith.constant 3 : index
    %c0_40 = arith.constant 0 : index
    %c0_41 = arith.constant 0 : index
    %43 = vector.load %arg2[%c3_39, %c0_40, %c0_41] : memref<4x32x32xf32, #tpu.memory_space<vmem>>, vector<1x32x32xf32>
    %44 = vector.shape_cast %43 : vector<1x32x32xf32> to vector<32x32xf32>
    %cst_42 = arith.constant dense<0.000000e+00> : vector<2x32xf32>
    %45 = tpu.matmul %1, %44, %cst_42 {dimension_numbers = #tpu.dot_dimension_numbers<[1], [0], [0], [1], [0, 0, 1, 1], [], []>} : vector<2x32xf32>, vector<32x32xf32>, vector<2x32xf32> -> vector<2x32xf32>
    %46 = arith.addf %42, %45 : vector<2x32xf32>
    %c3_43 = arith.constant 3 : index
    %c0_44 = arith.constant 0 : index
    %c0_45 = arith.constant 0 : index
    %47 = vector.load %arg3[%c3_43, %c0_44, %c0_45] : memref<4x1x32xf32, #tpu.memory_space<vmem>>, vector<1x1x32xf32>
    %48 = vector.shape_cast %47 : vector<1x1x32xf32> to vector<1x32xf32>
    %49 = vector.broadcast %48 : vector<1x32xf32> to vector<2x32xf32>
    %50 = arith.addf %46, %49 : vector<2x32xf32>
    %51 = arith.negf %17 : vector<2x32xf32>
    %52 = math.exp %51 : vector<2x32xf32>
    %cst_46 = arith.constant 1.000000e+00 : f32
    %53 = vector.broadcast %cst_46 : f32 to vector<2x32xf32>
    %54 = arith.addf %53, %52 : vector<2x32xf32>
    %55 = arith.divf %53, %54 : vector<2x32xf32>
    %56 = arith.negf %28 : vector<2x32xf32>
    %57 = math.exp %56 : vector<2x32xf32>
    %cst_47 = arith.constant 1.000000e+00 : f32
    %58 = vector.broadcast %cst_47 : f32 to vector<2x32xf32>
    %59 = arith.addf %58, %57 : vector<2x32xf32>
    %60 = arith.divf %58, %59 : vector<2x32xf32>
    %61 = math.tanh %39 : vector<2x32xf32>
    %62 = arith.negf %50 : vector<2x32xf32>
    %63 = math.exp %62 : vector<2x32xf32>
    %cst_48 = arith.constant 1.000000e+00 : f32
    %64 = vector.broadcast %cst_48 : f32 to vector<2x32xf32>
    %65 = arith.addf %64, %63 : vector<2x32xf32>
    %66 = arith.divf %64, %65 : vector<2x32xf32>
    %67 = arith.mulf %60, %3 : vector<2x32xf32>
    %68 = arith.mulf %55, %61 : vector<2x32xf32>
    %69 = arith.addf %67, %68 : vector<2x32xf32>
    %70 = math.tanh %69 : vector<2x32xf32>
    %71 = arith.mulf %66, %70 : vector<2x32xf32>
    %c0_49 = arith.constant 0 : index
    %c0_50 = arith.constant 0 : index
    %c0_51 = arith.constant 0 : index
    %72 = vector.load %arg4[%c0_49, %c0_50, %c0_51] : memref<4x32x32xf32, #tpu.memory_space<vmem>>, vector<1x32x32xf32>
    %73 = vector.shape_cast %72 : vector<1x32x32xf32> to vector<32x32xf32>
    %cst_52 = arith.constant dense<0.000000e+00> : vector<2x32xf32>
    %74 = tpu.matmul %71, %73, %cst_52 {dimension_numbers = #tpu.dot_dimension_numbers<[1], [0], [0], [1], [0, 0, 1, 1], [], []>} : vector<2x32xf32>, vector<32x32xf32>, vector<2x32xf32> -> vector<2x32xf32>
    %c0_53 = arith.constant 0 : index
    %c0_54 = arith.constant 0 : index
    %c0_55 = arith.constant 0 : index
    %75 = vector.load %arg5[%c0_53, %c0_54, %c0_55] : memref<4x32x32xf32, #tpu.memory_space<vmem>>, vector<1x32x32xf32>
    %76 = vector.shape_cast %75 : vector<1x32x32xf32> to vector<32x32xf32>
    %cst_56 = arith.constant dense<0.000000e+00> : vector<2x32xf32>
    %77 = tpu.matmul %2, %76, %cst_56 {dimension_numbers = #tpu.dot_dimension_numbers<[1], [0], [0], [1], [0, 0, 1, 1], [], []>} : vector<2x32xf32>, vector<32x32xf32>, vector<2x32xf32> -> vector<2x32xf32>
    %78 = arith.addf %74, %77 : vector<2x32xf32>
    %c0_57 = arith.constant 0 : index
    %c0_58 = arith.constant 0 : index
    %c0_59 = arith.constant 0 : index
    %79 = vector.load %arg6[%c0_57, %c0_58, %c0_59] : memref<4x1x32xf32, #tpu.memory_space<vmem>>, vector<1x1x32xf32>
    %80 = vector.shape_cast %79 : vector<1x1x32xf32> to vector<1x32xf32>
    %81 = vector.broadcast %80 : vector<1x32xf32> to vector<2x32xf32>
    %82 = arith.addf %78, %81 : vector<2x32xf32>
    %c1_60 = arith.constant 1 : index
    %c0_61 = arith.constant 0 : index
    %c0_62 = arith.constant 0 : index
    %83 = vector.load %arg4[%c1_60, %c0_61, %c0_62] : memref<4x32x32xf32, #tpu.memory_space<vmem>>, vector<1x32x32xf32>
    %84 = vector.shape_cast %83 : vector<1x32x32xf32> to vector<32x32xf32>
    %cst_63 = arith.constant dense<0.000000e+00> : vector<2x32xf32>
    %85 = tpu.matmul %71, %84, %cst_63 {dimension_numbers = #tpu.dot_dimension_numbers<[1], [0], [0], [1], [0, 0, 1, 1], [], []>} : vector<2x32xf32>, vector<32x32xf32>, vector<2x32xf32> -> vector<2x32xf32>
    %c1_64 = arith.constant 1 : index
    %c0_65 = arith.constant 0 : index
    %c0_66 = arith.constant 0 : index
    %86 = vector.load %arg5[%c1_64, %c0_65, %c0_66] : memref<4x32x32xf32, #tpu.memory_space<vmem>>, vector<1x32x32xf32>
    %87 = vector.shape_cast %86 : vector<1x32x32xf32> to vector<32x32xf32>
    %cst_67 = arith.constant dense<0.000000e+00> : vector<2x32xf32>
    %88 = tpu.matmul %2, %87, %cst_67 {dimension_numbers = #tpu.dot_dimension_numbers<[1], [0], [0], [1], [0, 0, 1, 1], [], []>} : vector<2x32xf32>, vector<32x32xf32>, vector<2x32xf32> -> vector<2x32xf32>
    %89 = arith.addf %85, %88 : vector<2x32xf32>
    %c1_68 = arith.constant 1 : index
    %c0_69 = arith.constant 0 : index
    %c0_70 = arith.constant 0 : index
    %90 = vector.load %arg6[%c1_68, %c0_69, %c0_70] : memref<4x1x32xf32, #tpu.memory_space<vmem>>, vector<1x1x32xf32>
    %91 = vector.shape_cast %90 : vector<1x1x32xf32> to vector<1x32xf32>
    %92 = vector.broadcast %91 : vector<1x32xf32> to vector<2x32xf32>
    %93 = arith.addf %89, %92 : vector<2x32xf32>
    %c2_71 = arith.constant 2 : index
    %c0_72 = arith.constant 0 : index
    %c0_73 = arith.constant 0 : index
    %94 = vector.load %arg4[%c2_71, %c0_72, %c0_73] : memref<4x32x32xf32, #tpu.memory_space<vmem>>, vector<1x32x32xf32>
    %95 = vector.shape_cast %94 : vector<1x32x32xf32> to vector<32x32xf32>
    %cst_74 = arith.constant dense<0.000000e+00> : vector<2x32xf32>
    %96 = tpu.matmul %71, %95, %cst_74 {dimension_numbers = #tpu.dot_dimension_numbers<[1], [0], [0], [1], [0, 0, 1, 1], [], []>} : vector<2x32xf32>, vector<32x32xf32>, vector<2x32xf32> -> vector<2x32xf32>
    %c2_75 = arith.constant 2 : index
    %c0_76 = arith.constant 0 : index
    %c0_77 = arith.constant 0 : index
    %97 = vector.load %arg5[%c2_75, %c0_76, %c0_77] : memref<4x32x32xf32, #tpu.memory_space<vmem>>, vector<1x32x32xf32>
    %98 = vector.shape_cast %97 : vector<1x32x32xf32> to vector<32x32xf32>
    %cst_78 = arith.constant dense<0.000000e+00> : vector<2x32xf32>
    %99 = tpu.matmul %2, %98, %cst_78 {dimension_numbers = #tpu.dot_dimension_numbers<[1], [0], [0], [1], [0, 0, 1, 1], [], []>} : vector<2x32xf32>, vector<32x32xf32>, vector<2x32xf32> -> vector<2x32xf32>
    %100 = arith.addf %96, %99 : vector<2x32xf32>
    %c2_79 = arith.constant 2 : index
    %c0_80 = arith.constant 0 : index
    %c0_81 = arith.constant 0 : index
    %101 = vector.load %arg6[%c2_79, %c0_80, %c0_81] : memref<4x1x32xf32, #tpu.memory_space<vmem>>, vector<1x1x32xf32>
    %102 = vector.shape_cast %101 : vector<1x1x32xf32> to vector<1x32xf32>
    %103 = vector.broadcast %102 : vector<1x32xf32> to vector<2x32xf32>
    %104 = arith.addf %100, %103 : vector<2x32xf32>
    %c3_82 = arith.constant 3 : index
    %c0_83 = arith.constant 0 : index
    %c0_84 = arith.constant 0 : index
    %105 = vector.load %arg4[%c3_82, %c0_83, %c0_84] : memref<4x32x32xf32, #tpu.memory_space<vmem>>, vector<1x32x32xf32>
    %106 = vector.shape_cast %105 : vector<1x32x32xf32> to vector<32x32xf32>
    %cst_85 = arith.constant dense<0.000000e+00> : vector<2x32xf32>
    %107 = tpu.matmul %71, %106, %cst_85 {dimension_numbers = #tpu.dot_dimension_numbers<[1], [0], [0], [1], [0, 0, 1, 1], [], []>} : vector<2x32xf32>, vector<32x32xf32>, vector<2x32xf32> -> vector<2x32xf32>
    %c3_86 = arith.constant 3 : index
    %c0_87 = arith.constant 0 : index
    %c0_88 = arith.constant 0 : index
    %108 = vector.load %arg5[%c3_86, %c0_87, %c0_88] : memref<4x32x32xf32, #tpu.memory_space<vmem>>, vector<1x32x32xf32>
    %109 = vector.shape_cast %108 : vector<1x32x32xf32> to vector<32x32xf32>
    %cst_89 = arith.constant dense<0.000000e+00> : vector<2x32xf32>
    %110 = tpu.matmul %2, %109, %cst_89 {dimension_numbers = #tpu.dot_dimension_numbers<[1], [0], [0], [1], [0, 0, 1, 1], [], []>} : vector<2x32xf32>, vector<32x32xf32>, vector<2x32xf32> -> vector<2x32xf32>
    %111 = arith.addf %107, %110 : vector<2x32xf32>
    %c3_90 = arith.constant 3 : index
    %c0_91 = arith.constant 0 : index
    %c0_92 = arith.constant 0 : index
    %112 = vector.load %arg6[%c3_90, %c0_91, %c0_92] : memref<4x1x32xf32, #tpu.memory_space<vmem>>, vector<1x1x32xf32>
    %113 = vector.shape_cast %112 : vector<1x1x32xf32> to vector<1x32xf32>
    %114 = vector.broadcast %113 : vector<1x32xf32> to vector<2x32xf32>
    %115 = arith.addf %111, %114 : vector<2x32xf32>
    %116 = arith.negf %82 : vector<2x32xf32>
    %117 = math.exp %116 : vector<2x32xf32>
    %cst_93 = arith.constant 1.000000e+00 : f32
    %118 = vector.broadcast %cst_93 : f32 to vector<2x32xf32>
    %119 = arith.addf %118, %117 : vector<2x32xf32>
    %120 = arith.divf %118, %119 : vector<2x32xf32>
    %121 = arith.negf %93 : vector<2x32xf32>
    %122 = math.exp %121 : vector<2x32xf32>
    %cst_94 = arith.constant 1.000000e+00 : f32
    %123 = vector.broadcast %cst_94 : f32 to vector<2x32xf32>
    %124 = arith.addf %123, %122 : vector<2x32xf32>
    %125 = arith.divf %123, %124 : vector<2x32xf32>
    %126 = math.tanh %104 : vector<2x32xf32>
    %127 = arith.negf %115 : vector<2x32xf32>
    %128 = math.exp %127 : vector<2x32xf32>
    %cst_95 = arith.constant 1.000000e+00 : f32
    %129 = vector.broadcast %cst_95 : f32 to vector<2x32xf32>
    %130 = arith.addf %129, %128 : vector<2x32xf32>
    %131 = arith.divf %129, %130 : vector<2x32xf32>
    %132 = arith.mulf %125, %4 : vector<2x32xf32>
    %133 = arith.mulf %120, %126 : vector<2x32xf32>
    %134 = arith.addf %132, %133 : vector<2x32xf32>
    %135 = math.tanh %134 : vector<2x32xf32>
    %136 = arith.mulf %131, %135 : vector<2x32xf32>
    %c0_96 = arith.constant 0 : index
    %c0_97 = arith.constant 0 : index
    %137 = vector.load %arg7[%c0_96, %c0_97] : memref<256x16xf32, #tpu.memory_space<vmem>>, vector<32x16xf32>
    %cst_98 = arith.constant dense<0.000000e+00> : vector<2x16xf32>
    %138 = tpu.matmul %136, %137, %cst_98 {dimension_numbers = #tpu.dot_dimension_numbers<[1], [0], [0], [1], [0, 0, 1, 1], [], []>} : vector<2x32xf32>, vector<32x16xf32>, vector<2x16xf32> -> vector<2x16xf32>
    %139 = arith.addf %5, %138 : vector<2x16xf32>
    %140 = vector.extract_strided_slice %0 {offsets = [0, 16], sizes = [2, 16], strides = [1, 1]} : vector<2x128xf32> to vector<2x16xf32>
    %c0_99 = arith.constant 0 : index
    %c0_100 = arith.constant 0 : index
    %c0_101 = arith.constant 0 : index
    %141 = vector.load %arg1[%c0_99, %c0_100, %c0_101] : memref<4x16x32xf32, #tpu.memory_space<vmem>>, vector<1x16x32xf32>
    %142 = vector.shape_cast %141 : vector<1x16x32xf32> to vector<16x32xf32>
    %cst_102 = arith.constant dense<0.000000e+00> : vector<2x32xf32>
    %143 = tpu.matmul %140, %142, %cst_102 {dimension_numbers = #tpu.dot_dimension_numbers<[1], [0], [0], [1], [0, 0, 1, 1], [], []>} : vector<2x16xf32>, vector<16x32xf32>, vector<2x32xf32> -> vector<2x32xf32>
    %c0_103 = arith.constant 0 : index
    %c0_104 = arith.constant 0 : index
    %c0_105 = arith.constant 0 : index
    %144 = vector.load %arg2[%c0_103, %c0_104, %c0_105] : memref<4x32x32xf32, #tpu.memory_space<vmem>>, vector<1x32x32xf32>
    %145 = vector.shape_cast %144 : vector<1x32x32xf32> to vector<32x32xf32>
    %cst_106 = arith.constant dense<0.000000e+00> : vector<2x32xf32>
    %146 = tpu.matmul %71, %145, %cst_106 {dimension_numbers = #tpu.dot_dimension_numbers<[1], [0], [0], [1], [0, 0, 1, 1], [], []>} : vector<2x32xf32>, vector<32x32xf32>, vector<2x32xf32> -> vector<2x32xf32>
    %147 = arith.addf %143, %146 : vector<2x32xf32>
    %c0_107 = arith.constant 0 : index
    %c0_108 = arith.constant 0 : index
    %c0_109 = arith.constant 0 : index
    %148 = vector.load %arg3[%c0_107, %c0_108, %c0_109] : memref<4x1x32xf32, #tpu.memory_space<vmem>>, vector<1x1x32xf32>
    %149 = vector.shape_cast %148 : vector<1x1x32xf32> to vector<1x32xf32>
    %150 = vector.broadcast %149 : vector<1x32xf32> to vector<2x32xf32>
    %151 = arith.addf %147, %150 : vector<2x32xf32>
    %c1_110 = arith.constant 1 : index
    %c0_111 = arith.constant 0 : index
    %c0_112 = arith.constant 0 : index
    %152 = vector.load %arg1[%c1_110, %c0_111, %c0_112] : memref<4x16x32xf32, #tpu.memory_space<vmem>>, vector<1x16x32xf32>
    %153 = vector.shape_cast %152 : vector<1x16x32xf32> to vector<16x32xf32>
    %cst_113 = arith.constant dense<0.000000e+00> : vector<2x32xf32>
    %154 = tpu.matmul %140, %153, %cst_113 {dimension_numbers = #tpu.dot_dimension_numbers<[1], [0], [0], [1], [0, 0, 1, 1], [], []>} : vector<2x16xf32>, vector<16x32xf32>, vector<2x32xf32> -> vector<2x32xf32>
    %c1_114 = arith.constant 1 : index
    %c0_115 = arith.constant 0 : index
    %c0_116 = arith.constant 0 : index
    %155 = vector.load %arg2[%c1_114, %c0_115, %c0_116] : memref<4x32x32xf32, #tpu.memory_space<vmem>>, vector<1x32x32xf32>
    %156 = vector.shape_cast %155 : vector<1x32x32xf32> to vector<32x32xf32>
    %cst_117 = arith.constant dense<0.000000e+00> : vector<2x32xf32>
    %157 = tpu.matmul %71, %156, %cst_117 {dimension_numbers = #tpu.dot_dimension_numbers<[1], [0], [0], [1], [0, 0, 1, 1], [], []>} : vector<2x32xf32>, vector<32x32xf32>, vector<2x32xf32> -> vector<2x32xf32>
    %158 = arith.addf %154, %157 : vector<2x32xf32>
    %c1_118 = arith.constant 1 : index
    %c0_119 = arith.constant 0 : index
    %c0_120 = arith.constant 0 : index
    %159 = vector.load %arg3[%c1_118, %c0_119, %c0_120] : memref<4x1x32xf32, #tpu.memory_space<vmem>>, vector<1x1x32xf32>
    %160 = vector.shape_cast %159 : vector<1x1x32xf32> to vector<1x32xf32>
    %161 = vector.broadcast %160 : vector<1x32xf32> to vector<2x32xf32>
    %162 = arith.addf %158, %161 : vector<2x32xf32>
    %c2_121 = arith.constant 2 : index
    %c0_122 = arith.constant 0 : index
    %c0_123 = arith.constant 0 : index
    %163 = vector.load %arg1[%c2_121, %c0_122, %c0_123] : memref<4x16x32xf32, #tpu.memory_space<vmem>>, vector<1x16x32xf32>
    %164 = vector.shape_cast %163 : vector<1x16x32xf32> to vector<16x32xf32>
    %cst_124 = arith.constant dense<0.000000e+00> : vector<2x32xf32>
    %165 = tpu.matmul %140, %164, %cst_124 {dimension_numbers = #tpu.dot_dimension_numbers<[1], [0], [0], [1], [0, 0, 1, 1], [], []>} : vector<2x16xf32>, vector<16x32xf32>, vector<2x32xf32> -> vector<2x32xf32>
    %c2_125 = arith.constant 2 : index
    %c0_126 = arith.constant 0 : index
    %c0_127 = arith.constant 0 : index
    %166 = vector.load %arg2[%c2_125, %c0_126, %c0_127] : memref<4x32x32xf32, #tpu.memory_space<vmem>>, vector<1x32x32xf32>
    %167 = vector.shape_cast %166 : vector<1x32x32xf32> to vector<32x32xf32>
    %cst_128 = arith.constant dense<0.000000e+00> : vector<2x32xf32>
    %168 = tpu.matmul %71, %167, %cst_128 {dimension_numbers = #tpu.dot_dimension_numbers<[1], [0], [0], [1], [0, 0, 1, 1], [], []>} : vector<2x32xf32>, vector<32x32xf32>, vector<2x32xf32> -> vector<2x32xf32>
    %169 = arith.addf %165, %168 : vector<2x32xf32>
    %c2_129 = arith.constant 2 : index
    %c0_130 = arith.constant 0 : index
    %c0_131 = arith.constant 0 : index
    %170 = vector.load %arg3[%c2_129, %c0_130, %c0_131] : memref<4x1x32xf32, #tpu.memory_space<vmem>>, vector<1x1x32xf32>
    %171 = vector.shape_cast %170 : vector<1x1x32xf32> to vector<1x32xf32>
    %172 = vector.broadcast %171 : vector<1x32xf32> to vector<2x32xf32>
    %173 = arith.addf %169, %172 : vector<2x32xf32>
    %c3_132 = arith.constant 3 : index
    %c0_133 = arith.constant 0 : index
    %c0_134 = arith.constant 0 : index
    %174 = vector.load %arg1[%c3_132, %c0_133, %c0_134] : memref<4x16x32xf32, #tpu.memory_space<vmem>>, vector<1x16x32xf32>
    %175 = vector.shape_cast %174 : vector<1x16x32xf32> to vector<16x32xf32>
    %cst_135 = arith.constant dense<0.000000e+00> : vector<2x32xf32>
    %176 = tpu.matmul %140, %175, %cst_135 {dimension_numbers = #tpu.dot_dimension_numbers<[1], [0], [0], [1], [0, 0, 1, 1], [], []>} : vector<2x16xf32>, vector<16x32xf32>, vector<2x32xf32> -> vector<2x32xf32>
    %c3_136 = arith.constant 3 : index
    %c0_137 = arith.constant 0 : index
    %c0_138 = arith.constant 0 : index
    %177 = vector.load %arg2[%c3_136, %c0_137, %c0_138] : memref<4x32x32xf32, #tpu.memory_space<vmem>>, vector<1x32x32xf32>
    %178 = vector.shape_cast %177 : vector<1x32x32xf32> to vector<32x32xf32>
    %cst_139 = arith.constant dense<0.000000e+00> : vector<2x32xf32>
    %179 = tpu.matmul %71, %178, %cst_139 {dimension_numbers = #tpu.dot_dimension_numbers<[1], [0], [0], [1], [0, 0, 1, 1], [], []>} : vector<2x32xf32>, vector<32x32xf32>, vector<2x32xf32> -> vector<2x32xf32>
    %180 = arith.addf %176, %179 : vector<2x32xf32>
    %c3_140 = arith.constant 3 : index
    %c0_141 = arith.constant 0 : index
    %c0_142 = arith.constant 0 : index
    %181 = vector.load %arg3[%c3_140, %c0_141, %c0_142] : memref<4x1x32xf32, #tpu.memory_space<vmem>>, vector<1x1x32xf32>
    %182 = vector.shape_cast %181 : vector<1x1x32xf32> to vector<1x32xf32>
    %183 = vector.broadcast %182 : vector<1x32xf32> to vector<2x32xf32>
    %184 = arith.addf %180, %183 : vector<2x32xf32>
    %185 = arith.negf %151 : vector<2x32xf32>
    %186 = math.exp %185 : vector<2x32xf32>
    %cst_143 = arith.constant 1.000000e+00 : f32
    %187 = vector.broadcast %cst_143 : f32 to vector<2x32xf32>
    %188 = arith.addf %187, %186 : vector<2x32xf32>
    %189 = arith.divf %187, %188 : vector<2x32xf32>
    %190 = arith.negf %162 : vector<2x32xf32>
    %191 = math.exp %190 : vector<2x32xf32>
    %cst_144 = arith.constant 1.000000e+00 : f32
    %192 = vector.broadcast %cst_144 : f32 to vector<2x32xf32>
    %193 = arith.addf %192, %191 : vector<2x32xf32>
    %194 = arith.divf %192, %193 : vector<2x32xf32>
    %195 = math.tanh %173 : vector<2x32xf32>
    %196 = arith.negf %184 : vector<2x32xf32>
    %197 = math.exp %196 : vector<2x32xf32>
    %cst_145 = arith.constant 1.000000e+00 : f32
    %198 = vector.broadcast %cst_145 : f32 to vector<2x32xf32>
    %199 = arith.addf %198, %197 : vector<2x32xf32>
    %200 = arith.divf %198, %199 : vector<2x32xf32>
    %201 = arith.mulf %194, %69 : vector<2x32xf32>
    %202 = arith.mulf %189, %195 : vector<2x32xf32>
    %203 = arith.addf %201, %202 : vector<2x32xf32>
    %204 = math.tanh %203 : vector<2x32xf32>
    %205 = arith.mulf %200, %204 : vector<2x32xf32>
    %c0_146 = arith.constant 0 : index
    %c0_147 = arith.constant 0 : index
    %c0_148 = arith.constant 0 : index
    %206 = vector.load %arg4[%c0_146, %c0_147, %c0_148] : memref<4x32x32xf32, #tpu.memory_space<vmem>>, vector<1x32x32xf32>
    %207 = vector.shape_cast %206 : vector<1x32x32xf32> to vector<32x32xf32>
    %cst_149 = arith.constant dense<0.000000e+00> : vector<2x32xf32>
    %208 = tpu.matmul %205, %207, %cst_149 {dimension_numbers = #tpu.dot_dimension_numbers<[1], [0], [0], [1], [0, 0, 1, 1], [], []>} : vector<2x32xf32>, vector<32x32xf32>, vector<2x32xf32> -> vector<2x32xf32>
    %c0_150 = arith.constant 0 : index
    %c0_151 = arith.constant 0 : index
    %c0_152 = arith.constant 0 : index
    %209 = vector.load %arg5[%c0_150, %c0_151, %c0_152] : memref<4x32x32xf32, #tpu.memory_space<vmem>>, vector<1x32x32xf32>
    %210 = vector.shape_cast %209 : vector<1x32x32xf32> to vector<32x32xf32>
    %cst_153 = arith.constant dense<0.000000e+00> : vector<2x32xf32>
    %211 = tpu.matmul %136, %210, %cst_153 {dimension_numbers = #tpu.dot_dimension_numbers<[1], [0], [0], [1], [0, 0, 1, 1], [], []>} : vector<2x32xf32>, vector<32x32xf32>, vector<2x32xf32> -> vector<2x32xf32>
    %212 = arith.addf %208, %211 : vector<2x32xf32>
    %c0_154 = arith.constant 0 : index
    %c0_155 = arith.constant 0 : index
    %c0_156 = arith.constant 0 : index
    %213 = vector.load %arg6[%c0_154, %c0_155, %c0_156] : memref<4x1x32xf32, #tpu.memory_space<vmem>>, vector<1x1x32xf32>
    %214 = vector.shape_cast %213 : vector<1x1x32xf32> to vector<1x32xf32>
    %215 = vector.broadcast %214 : vector<1x32xf32> to vector<2x32xf32>
    %216 = arith.addf %212, %215 : vector<2x32xf32>
    %c1_157 = arith.constant 1 : index
    %c0_158 = arith.constant 0 : index
    %c0_159 = arith.constant 0 : index
    %217 = vector.load %arg4[%c1_157, %c0_158, %c0_159] : memref<4x32x32xf32, #tpu.memory_space<vmem>>, vector<1x32x32xf32>
    %218 = vector.shape_cast %217 : vector<1x32x32xf32> to vector<32x32xf32>
    %cst_160 = arith.constant dense<0.000000e+00> : vector<2x32xf32>
    %219 = tpu.matmul %205, %218, %cst_160 {dimension_numbers = #tpu.dot_dimension_numbers<[1], [0], [0], [1], [0, 0, 1, 1], [], []>} : vector<2x32xf32>, vector<32x32xf32>, vector<2x32xf32> -> vector<2x32xf32>
    %c1_161 = arith.constant 1 : index
    %c0_162 = arith.constant 0 : index
    %c0_163 = arith.constant 0 : index
    %220 = vector.load %arg5[%c1_161, %c0_162, %c0_163] : memref<4x32x32xf32, #tpu.memory_space<vmem>>, vector<1x32x32xf32>
    %221 = vector.shape_cast %220 : vector<1x32x32xf32> to vector<32x32xf32>
    %cst_164 = arith.constant dense<0.000000e+00> : vector<2x32xf32>
    %222 = tpu.matmul %136, %221, %cst_164 {dimension_numbers = #tpu.dot_dimension_numbers<[1], [0], [0], [1], [0, 0, 1, 1], [], []>} : vector<2x32xf32>, vector<32x32xf32>, vector<2x32xf32> -> vector<2x32xf32>
    %223 = arith.addf %219, %222 : vector<2x32xf32>
    %c1_165 = arith.constant 1 : index
    %c0_166 = arith.constant 0 : index
    %c0_167 = arith.constant 0 : index
    %224 = vector.load %arg6[%c1_165, %c0_166, %c0_167] : memref<4x1x32xf32, #tpu.memory_space<vmem>>, vector<1x1x32xf32>
    %225 = vector.shape_cast %224 : vector<1x1x32xf32> to vector<1x32xf32>
    %226 = vector.broadcast %225 : vector<1x32xf32> to vector<2x32xf32>
    %227 = arith.addf %223, %226 : vector<2x32xf32>
    %c2_168 = arith.constant 2 : index
    %c0_169 = arith.constant 0 : index
    %c0_170 = arith.constant 0 : index
    %228 = vector.load %arg4[%c2_168, %c0_169, %c0_170] : memref<4x32x32xf32, #tpu.memory_space<vmem>>, vector<1x32x32xf32>
    %229 = vector.shape_cast %228 : vector<1x32x32xf32> to vector<32x32xf32>
    %cst_171 = arith.constant dense<0.000000e+00> : vector<2x32xf32>
    %230 = tpu.matmul %205, %229, %cst_171 {dimension_numbers = #tpu.dot_dimension_numbers<[1], [0], [0], [1], [0, 0, 1, 1], [], []>} : vector<2x32xf32>, vector<32x32xf32>, vector<2x32xf32> -> vector<2x32xf32>
    %c2_172 = arith.constant 2 : index
    %c0_173 = arith.constant 0 : index
    %c0_174 = arith.constant 0 : index
    %231 = vector.load %arg5[%c2_172, %c0_173, %c0_174] : memref<4x32x32xf32, #tpu.memory_space<vmem>>, vector<1x32x32xf32>
    %232 = vector.shape_cast %231 : vector<1x32x32xf32> to vector<32x32xf32>
    %cst_175 = arith.constant dense<0.000000e+00> : vector<2x32xf32>
    %233 = tpu.matmul %136, %232, %cst_175 {dimension_numbers = #tpu.dot_dimension_numbers<[1], [0], [0], [1], [0, 0, 1, 1], [], []>} : vector<2x32xf32>, vector<32x32xf32>, vector<2x32xf32> -> vector<2x32xf32>
    %234 = arith.addf %230, %233 : vector<2x32xf32>
    %c2_176 = arith.constant 2 : index
    %c0_177 = arith.constant 0 : index
    %c0_178 = arith.constant 0 : index
    %235 = vector.load %arg6[%c2_176, %c0_177, %c0_178] : memref<4x1x32xf32, #tpu.memory_space<vmem>>, vector<1x1x32xf32>
    %236 = vector.shape_cast %235 : vector<1x1x32xf32> to vector<1x32xf32>
    %237 = vector.broadcast %236 : vector<1x32xf32> to vector<2x32xf32>
    %238 = arith.addf %234, %237 : vector<2x32xf32>
    %c3_179 = arith.constant 3 : index
    %c0_180 = arith.constant 0 : index
    %c0_181 = arith.constant 0 : index
    %239 = vector.load %arg4[%c3_179, %c0_180, %c0_181] : memref<4x32x32xf32, #tpu.memory_space<vmem>>, vector<1x32x32xf32>
    %240 = vector.shape_cast %239 : vector<1x32x32xf32> to vector<32x32xf32>
    %cst_182 = arith.constant dense<0.000000e+00> : vector<2x32xf32>
    %241 = tpu.matmul %205, %240, %cst_182 {dimension_numbers = #tpu.dot_dimension_numbers<[1], [0], [0], [1], [0, 0, 1, 1], [], []>} : vector<2x32xf32>, vector<32x32xf32>, vector<2x32xf32> -> vector<2x32xf32>
    %c3_183 = arith.constant 3 : index
    %c0_184 = arith.constant 0 : index
    %c0_185 = arith.constant 0 : index
    %242 = vector.load %arg5[%c3_183, %c0_184, %c0_185] : memref<4x32x32xf32, #tpu.memory_space<vmem>>, vector<1x32x32xf32>
    %243 = vector.shape_cast %242 : vector<1x32x32xf32> to vector<32x32xf32>
    %cst_186 = arith.constant dense<0.000000e+00> : vector<2x32xf32>
    %244 = tpu.matmul %136, %243, %cst_186 {dimension_numbers = #tpu.dot_dimension_numbers<[1], [0], [0], [1], [0, 0, 1, 1], [], []>} : vector<2x32xf32>, vector<32x32xf32>, vector<2x32xf32> -> vector<2x32xf32>
    %245 = arith.addf %241, %244 : vector<2x32xf32>
    %c3_187 = arith.constant 3 : index
    %c0_188 = arith.constant 0 : index
    %c0_189 = arith.constant 0 : index
    %246 = vector.load %arg6[%c3_187, %c0_188, %c0_189] : memref<4x1x32xf32, #tpu.memory_space<vmem>>, vector<1x1x32xf32>
    %247 = vector.shape_cast %246 : vector<1x1x32xf32> to vector<1x32xf32>
    %248 = vector.broadcast %247 : vector<1x32xf32> to vector<2x32xf32>
    %249 = arith.addf %245, %248 : vector<2x32xf32>
    %250 = arith.negf %216 : vector<2x32xf32>
    %251 = math.exp %250 : vector<2x32xf32>
    %cst_190 = arith.constant 1.000000e+00 : f32
    %252 = vector.broadcast %cst_190 : f32 to vector<2x32xf32>
    %253 = arith.addf %252, %251 : vector<2x32xf32>
    %254 = arith.divf %252, %253 : vector<2x32xf32>
    %255 = arith.negf %227 : vector<2x32xf32>
    %256 = math.exp %255 : vector<2x32xf32>
    %cst_191 = arith.constant 1.000000e+00 : f32
    %257 = vector.broadcast %cst_191 : f32 to vector<2x32xf32>
    %258 = arith.addf %257, %256 : vector<2x32xf32>
    %259 = arith.divf %257, %258 : vector<2x32xf32>
    %260 = math.tanh %238 : vector<2x32xf32>
    %261 = arith.negf %249 : vector<2x32xf32>
    %262 = math.exp %261 : vector<2x32xf32>
    %cst_192 = arith.constant 1.000000e+00 : f32
    %263 = vector.broadcast %cst_192 : f32 to vector<2x32xf32>
    %264 = arith.addf %263, %262 : vector<2x32xf32>
    %265 = arith.divf %263, %264 : vector<2x32xf32>
    %266 = arith.mulf %259, %134 : vector<2x32xf32>
    %267 = arith.mulf %254, %260 : vector<2x32xf32>
    %268 = arith.addf %266, %267 : vector<2x32xf32>
    %269 = math.tanh %268 : vector<2x32xf32>
    %270 = arith.mulf %265, %269 : vector<2x32xf32>
    %c32 = arith.constant 32 : index
    %c0_193 = arith.constant 0 : index
    %271 = vector.load %arg7[%c32, %c0_193] : memref<256x16xf32, #tpu.memory_space<vmem>>, vector<32x16xf32>
    %cst_194 = arith.constant dense<0.000000e+00> : vector<2x16xf32>
    %272 = tpu.matmul %270, %271, %cst_194 {dimension_numbers = #tpu.dot_dimension_numbers<[1], [0], [0], [1], [0, 0, 1, 1], [], []>} : vector<2x32xf32>, vector<32x16xf32>, vector<2x16xf32> -> vector<2x16xf32>
    %273 = arith.addf %139, %272 : vector<2x16xf32>
    %274 = vector.extract_strided_slice %0 {offsets = [0, 32], sizes = [2, 16], strides = [1, 1]} : vector<2x128xf32> to vector<2x16xf32>
    %c0_195 = arith.constant 0 : index
    %c0_196 = arith.constant 0 : index
    %c0_197 = arith.constant 0 : index
    %275 = vector.load %arg1[%c0_195, %c0_196, %c0_197] : memref<4x16x32xf32, #tpu.memory_space<vmem>>, vector<1x16x32xf32>
    %276 = vector.shape_cast %275 : vector<1x16x32xf32> to vector<16x32xf32>
    %cst_198 = arith.constant dense<0.000000e+00> : vector<2x32xf32>
    %277 = tpu.matmul %274, %276, %cst_198 {dimension_numbers = #tpu.dot_dimension_numbers<[1], [0], [0], [1], [0, 0, 1, 1], [], []>} : vector<2x16xf32>, vector<16x32xf32>, vector<2x32xf32> -> vector<2x32xf32>
    %c0_199 = arith.constant 0 : index
    %c0_200 = arith.constant 0 : index
    %c0_201 = arith.constant 0 : index
    %278 = vector.load %arg2[%c0_199, %c0_200, %c0_201] : memref<4x32x32xf32, #tpu.memory_space<vmem>>, vector<1x32x32xf32>
    %279 = vector.shape_cast %278 : vector<1x32x32xf32> to vector<32x32xf32>
    %cst_202 = arith.constant dense<0.000000e+00> : vector<2x32xf32>
    %280 = tpu.matmul %205, %279, %cst_202 {dimension_numbers = #tpu.dot_dimension_numbers<[1], [0], [0], [1], [0, 0, 1, 1], [], []>} : vector<2x32xf32>, vector<32x32xf32>, vector<2x32xf32> -> vector<2x32xf32>
    %281 = arith.addf %277, %280 : vector<2x32xf32>
    %c0_203 = arith.constant 0 : index
    %c0_204 = arith.constant 0 : index
    %c0_205 = arith.constant 0 : index
    %282 = vector.load %arg3[%c0_203, %c0_204, %c0_205] : memref<4x1x32xf32, #tpu.memory_space<vmem>>, vector<1x1x32xf32>
    %283 = vector.shape_cast %282 : vector<1x1x32xf32> to vector<1x32xf32>
    %284 = vector.broadcast %283 : vector<1x32xf32> to vector<2x32xf32>
    %285 = arith.addf %281, %284 : vector<2x32xf32>
    %c1_206 = arith.constant 1 : index
    %c0_207 = arith.constant 0 : index
    %c0_208 = arith.constant 0 : index
    %286 = vector.load %arg1[%c1_206, %c0_207, %c0_208] : memref<4x16x32xf32, #tpu.memory_space<vmem>>, vector<1x16x32xf32>
    %287 = vector.shape_cast %286 : vector<1x16x32xf32> to vector<16x32xf32>
    %cst_209 = arith.constant dense<0.000000e+00> : vector<2x32xf32>
    %288 = tpu.matmul %274, %287, %cst_209 {dimension_numbers = #tpu.dot_dimension_numbers<[1], [0], [0], [1], [0, 0, 1, 1], [], []>} : vector<2x16xf32>, vector<16x32xf32>, vector<2x32xf32> -> vector<2x32xf32>
    %c1_210 = arith.constant 1 : index
    %c0_211 = arith.constant 0 : index
    %c0_212 = arith.constant 0 : index
    %289 = vector.load %arg2[%c1_210, %c0_211, %c0_212] : memref<4x32x32xf32, #tpu.memory_space<vmem>>, vector<1x32x32xf32>
    %290 = vector.shape_cast %289 : vector<1x32x32xf32> to vector<32x32xf32>
    %cst_213 = arith.constant dense<0.000000e+00> : vector<2x32xf32>
    %291 = tpu.matmul %205, %290, %cst_213 {dimension_numbers = #tpu.dot_dimension_numbers<[1], [0], [0], [1], [0, 0, 1, 1], [], []>} : vector<2x32xf32>, vector<32x32xf32>, vector<2x32xf32> -> vector<2x32xf32>
    %292 = arith.addf %288, %291 : vector<2x32xf32>
    %c1_214 = arith.constant 1 : index
    %c0_215 = arith.constant 0 : index
    %c0_216 = arith.constant 0 : index
    %293 = vector.load %arg3[%c1_214, %c0_215, %c0_216] : memref<4x1x32xf32, #tpu.memory_space<vmem>>, vector<1x1x32xf32>
    %294 = vector.shape_cast %293 : vector<1x1x32xf32> to vector<1x32xf32>
    %295 = vector.broadcast %294 : vector<1x32xf32> to vector<2x32xf32>
    %296 = arith.addf %292, %295 : vector<2x32xf32>
    %c2_217 = arith.constant 2 : index
    %c0_218 = arith.constant 0 : index
    %c0_219 = arith.constant 0 : index
    %297 = vector.load %arg1[%c2_217, %c0_218, %c0_219] : memref<4x16x32xf32, #tpu.memory_space<vmem>>, vector<1x16x32xf32>
    %298 = vector.shape_cast %297 : vector<1x16x32xf32> to vector<16x32xf32>
    %cst_220 = arith.constant dense<0.000000e+00> : vector<2x32xf32>
    %299 = tpu.matmul %274, %298, %cst_220 {dimension_numbers = #tpu.dot_dimension_numbers<[1], [0], [0], [1], [0, 0, 1, 1], [], []>} : vector<2x16xf32>, vector<16x32xf32>, vector<2x32xf32> -> vector<2x32xf32>
    %c2_221 = arith.constant 2 : index
    %c0_222 = arith.constant 0 : index
    %c0_223 = arith.constant 0 : index
    %300 = vector.load %arg2[%c2_221, %c0_222, %c0_223] : memref<4x32x32xf32, #tpu.memory_space<vmem>>, vector<1x32x32xf32>
    %301 = vector.shape_cast %300 : vector<1x32x32xf32> to vector<32x32xf32>
    %cst_224 = arith.constant dense<0.000000e+00> : vector<2x32xf32>
    %302 = tpu.matmul %205, %301, %cst_224 {dimension_numbers = #tpu.dot_dimension_numbers<[1], [0], [0], [1], [0, 0, 1, 1], [], []>} : vector<2x32xf32>, vector<32x32xf32>, vector<2x32xf32> -> vector<2x32xf32>
    %303 = arith.addf %299, %302 : vector<2x32xf32>
    %c2_225 = arith.constant 2 : index
    %c0_226 = arith.constant 0 : index
    %c0_227 = arith.constant 0 : index
    %304 = vector.load %arg3[%c2_225, %c0_226, %c0_227] : memref<4x1x32xf32, #tpu.memory_space<vmem>>, vector<1x1x32xf32>
    %305 = vector.shape_cast %304 : vector<1x1x32xf32> to vector<1x32xf32>
    %306 = vector.broadcast %305 : vector<1x32xf32> to vector<2x32xf32>
    %307 = arith.addf %303, %306 : vector<2x32xf32>
    %c3_228 = arith.constant 3 : index
    %c0_229 = arith.constant 0 : index
    %c0_230 = arith.constant 0 : index
    %308 = vector.load %arg1[%c3_228, %c0_229, %c0_230] : memref<4x16x32xf32, #tpu.memory_space<vmem>>, vector<1x16x32xf32>
    %309 = vector.shape_cast %308 : vector<1x16x32xf32> to vector<16x32xf32>
    %cst_231 = arith.constant dense<0.000000e+00> : vector<2x32xf32>
    %310 = tpu.matmul %274, %309, %cst_231 {dimension_numbers = #tpu.dot_dimension_numbers<[1], [0], [0], [1], [0, 0, 1, 1], [], []>} : vector<2x16xf32>, vector<16x32xf32>, vector<2x32xf32> -> vector<2x32xf32>
    %c3_232 = arith.constant 3 : index
    %c0_233 = arith.constant 0 : index
    %c0_234 = arith.constant 0 : index
    %311 = vector.load %arg2[%c3_232, %c0_233, %c0_234] : memref<4x32x32xf32, #tpu.memory_space<vmem>>, vector<1x32x32xf32>
    %312 = vector.shape_cast %311 : vector<1x32x32xf32> to vector<32x32xf32>
    %cst_235 = arith.constant dense<0.000000e+00> : vector<2x32xf32>
    %313 = tpu.matmul %205, %312, %cst_235 {dimension_numbers = #tpu.dot_dimension_numbers<[1], [0], [0], [1], [0, 0, 1, 1], [], []>} : vector<2x32xf32>, vector<32x32xf32>, vector<2x32xf32> -> vector<2x32xf32>
    %314 = arith.addf %310, %313 : vector<2x32xf32>
    %c3_236 = arith.constant 3 : index
    %c0_237 = arith.constant 0 : index
    %c0_238 = arith.constant 0 : index
    %315 = vector.load %arg3[%c3_236, %c0_237, %c0_238] : memref<4x1x32xf32, #tpu.memory_space<vmem>>, vector<1x1x32xf32>
    %316 = vector.shape_cast %315 : vector<1x1x32xf32> to vector<1x32xf32>
    %317 = vector.broadcast %316 : vector<1x32xf32> to vector<2x32xf32>
    %318 = arith.addf %314, %317 : vector<2x32xf32>
    %319 = arith.negf %285 : vector<2x32xf32>
    %320 = math.exp %319 : vector<2x32xf32>
    %cst_239 = arith.constant 1.000000e+00 : f32
    %321 = vector.broadcast %cst_239 : f32 to vector<2x32xf32>
    %322 = arith.addf %321, %320 : vector<2x32xf32>
    %323 = arith.divf %321, %322 : vector<2x32xf32>
    %324 = arith.negf %296 : vector<2x32xf32>
    %325 = math.exp %324 : vector<2x32xf32>
    %cst_240 = arith.constant 1.000000e+00 : f32
    %326 = vector.broadcast %cst_240 : f32 to vector<2x32xf32>
    %327 = arith.addf %326, %325 : vector<2x32xf32>
    %328 = arith.divf %326, %327 : vector<2x32xf32>
    %329 = math.tanh %307 : vector<2x32xf32>
    %330 = arith.negf %318 : vector<2x32xf32>
    %331 = math.exp %330 : vector<2x32xf32>
    %cst_241 = arith.constant 1.000000e+00 : f32
    %332 = vector.broadcast %cst_241 : f32 to vector<2x32xf32>
    %333 = arith.addf %332, %331 : vector<2x32xf32>
    %334 = arith.divf %332, %333 : vector<2x32xf32>
    %335 = arith.mulf %328, %203 : vector<2x32xf32>
    %336 = arith.mulf %323, %329 : vector<2x32xf32>
    %337 = arith.addf %335, %336 : vector<2x32xf32>
    %338 = math.tanh %337 : vector<2x32xf32>
    %339 = arith.mulf %334, %338 : vector<2x32xf32>
    %c0_242 = arith.constant 0 : index
    %c0_243 = arith.constant 0 : index
    %c0_244 = arith.constant 0 : index
    %340 = vector.load %arg4[%c0_242, %c0_243, %c0_244] : memref<4x32x32xf32, #tpu.memory_space<vmem>>, vector<1x32x32xf32>
    %341 = vector.shape_cast %340 : vector<1x32x32xf32> to vector<32x32xf32>
    %cst_245 = arith.constant dense<0.000000e+00> : vector<2x32xf32>
    %342 = tpu.matmul %339, %341, %cst_245 {dimension_numbers = #tpu.dot_dimension_numbers<[1], [0], [0], [1], [0, 0, 1, 1], [], []>} : vector<2x32xf32>, vector<32x32xf32>, vector<2x32xf32> -> vector<2x32xf32>
    %c0_246 = arith.constant 0 : index
    %c0_247 = arith.constant 0 : index
    %c0_248 = arith.constant 0 : index
    %343 = vector.load %arg5[%c0_246, %c0_247, %c0_248] : memref<4x32x32xf32, #tpu.memory_space<vmem>>, vector<1x32x32xf32>
    %344 = vector.shape_cast %343 : vector<1x32x32xf32> to vector<32x32xf32>
    %cst_249 = arith.constant dense<0.000000e+00> : vector<2x32xf32>
    %345 = tpu.matmul %270, %344, %cst_249 {dimension_numbers = #tpu.dot_dimension_numbers<[1], [0], [0], [1], [0, 0, 1, 1], [], []>} : vector<2x32xf32>, vector<32x32xf32>, vector<2x32xf32> -> vector<2x32xf32>
    %346 = arith.addf %342, %345 : vector<2x32xf32>
    %c0_250 = arith.constant 0 : index
    %c0_251 = arith.constant 0 : index
    %c0_252 = arith.constant 0 : index
    %347 = vector.load %arg6[%c0_250, %c0_251, %c0_252] : memref<4x1x32xf32, #tpu.memory_space<vmem>>, vector<1x1x32xf32>
    %348 = vector.shape_cast %347 : vector<1x1x32xf32> to vector<1x32xf32>
    %349 = vector.broadcast %348 : vector<1x32xf32> to vector<2x32xf32>
    %350 = arith.addf %346, %349 : vector<2x32xf32>
    %c1_253 = arith.constant 1 : index
    %c0_254 = arith.constant 0 : index
    %c0_255 = arith.constant 0 : index
    %351 = vector.load %arg4[%c1_253, %c0_254, %c0_255] : memref<4x32x32xf32, #tpu.memory_space<vmem>>, vector<1x32x32xf32>
    %352 = vector.shape_cast %351 : vector<1x32x32xf32> to vector<32x32xf32>
    %cst_256 = arith.constant dense<0.000000e+00> : vector<2x32xf32>
    %353 = tpu.matmul %339, %352, %cst_256 {dimension_numbers = #tpu.dot_dimension_numbers<[1], [0], [0], [1], [0, 0, 1, 1], [], []>} : vector<2x32xf32>, vector<32x32xf32>, vector<2x32xf32> -> vector<2x32xf32>
    %c1_257 = arith.constant 1 : index
    %c0_258 = arith.constant 0 : index
    %c0_259 = arith.constant 0 : index
    %354 = vector.load %arg5[%c1_257, %c0_258, %c0_259] : memref<4x32x32xf32, #tpu.memory_space<vmem>>, vector<1x32x32xf32>
    %355 = vector.shape_cast %354 : vector<1x32x32xf32> to vector<32x32xf32>
    %cst_260 = arith.constant dense<0.000000e+00> : vector<2x32xf32>
    %356 = tpu.matmul %270, %355, %cst_260 {dimension_numbers = #tpu.dot_dimension_numbers<[1], [0], [0], [1], [0, 0, 1, 1], [], []>} : vector<2x32xf32>, vector<32x32xf32>, vector<2x32xf32> -> vector<2x32xf32>
    %357 = arith.addf %353, %356 : vector<2x32xf32>
    %c1_261 = arith.constant 1 : index
    %c0_262 = arith.constant 0 : index
    %c0_263 = arith.constant 0 : index
    %358 = vector.load %arg6[%c1_261, %c0_262, %c0_263] : memref<4x1x32xf32, #tpu.memory_space<vmem>>, vector<1x1x32xf32>
    %359 = vector.shape_cast %358 : vector<1x1x32xf32> to vector<1x32xf32>
    %360 = vector.broadcast %359 : vector<1x32xf32> to vector<2x32xf32>
    %361 = arith.addf %357, %360 : vector<2x32xf32>
    %c2_264 = arith.constant 2 : index
    %c0_265 = arith.constant 0 : index
    %c0_266 = arith.constant 0 : index
    %362 = vector.load %arg4[%c2_264, %c0_265, %c0_266] : memref<4x32x32xf32, #tpu.memory_space<vmem>>, vector<1x32x32xf32>
    %363 = vector.shape_cast %362 : vector<1x32x32xf32> to vector<32x32xf32>
    %cst_267 = arith.constant dense<0.000000e+00> : vector<2x32xf32>
    %364 = tpu.matmul %339, %363, %cst_267 {dimension_numbers = #tpu.dot_dimension_numbers<[1], [0], [0], [1], [0, 0, 1, 1], [], []>} : vector<2x32xf32>, vector<32x32xf32>, vector<2x32xf32> -> vector<2x32xf32>
    %c2_268 = arith.constant 2 : index
    %c0_269 = arith.constant 0 : index
    %c0_270 = arith.constant 0 : index
    %365 = vector.load %arg5[%c2_268, %c0_269, %c0_270] : memref<4x32x32xf32, #tpu.memory_space<vmem>>, vector<1x32x32xf32>
    %366 = vector.shape_cast %365 : vector<1x32x32xf32> to vector<32x32xf32>
    %cst_271 = arith.constant dense<0.000000e+00> : vector<2x32xf32>
    %367 = tpu.matmul %270, %366, %cst_271 {dimension_numbers = #tpu.dot_dimension_numbers<[1], [0], [0], [1], [0, 0, 1, 1], [], []>} : vector<2x32xf32>, vector<32x32xf32>, vector<2x32xf32> -> vector<2x32xf32>
    %368 = arith.addf %364, %367 : vector<2x32xf32>
    %c2_272 = arith.constant 2 : index
    %c0_273 = arith.constant 0 : index
    %c0_274 = arith.constant 0 : index
    %369 = vector.load %arg6[%c2_272, %c0_273, %c0_274] : memref<4x1x32xf32, #tpu.memory_space<vmem>>, vector<1x1x32xf32>
    %370 = vector.shape_cast %369 : vector<1x1x32xf32> to vector<1x32xf32>
    %371 = vector.broadcast %370 : vector<1x32xf32> to vector<2x32xf32>
    %372 = arith.addf %368, %371 : vector<2x32xf32>
    %c3_275 = arith.constant 3 : index
    %c0_276 = arith.constant 0 : index
    %c0_277 = arith.constant 0 : index
    %373 = vector.load %arg4[%c3_275, %c0_276, %c0_277] : memref<4x32x32xf32, #tpu.memory_space<vmem>>, vector<1x32x32xf32>
    %374 = vector.shape_cast %373 : vector<1x32x32xf32> to vector<32x32xf32>
    %cst_278 = arith.constant dense<0.000000e+00> : vector<2x32xf32>
    %375 = tpu.matmul %339, %374, %cst_278 {dimension_numbers = #tpu.dot_dimension_numbers<[1], [0], [0], [1], [0, 0, 1, 1], [], []>} : vector<2x32xf32>, vector<32x32xf32>, vector<2x32xf32> -> vector<2x32xf32>
    %c3_279 = arith.constant 3 : index
    %c0_280 = arith.constant 0 : index
    %c0_281 = arith.constant 0 : index
    %376 = vector.load %arg5[%c3_279, %c0_280, %c0_281] : memref<4x32x32xf32, #tpu.memory_space<vmem>>, vector<1x32x32xf32>
    %377 = vector.shape_cast %376 : vector<1x32x32xf32> to vector<32x32xf32>
    %cst_282 = arith.constant dense<0.000000e+00> : vector<2x32xf32>
    %378 = tpu.matmul %270, %377, %cst_282 {dimension_numbers = #tpu.dot_dimension_numbers<[1], [0], [0], [1], [0, 0, 1, 1], [], []>} : vector<2x32xf32>, vector<32x32xf32>, vector<2x32xf32> -> vector<2x32xf32>
    %379 = arith.addf %375, %378 : vector<2x32xf32>
    %c3_283 = arith.constant 3 : index
    %c0_284 = arith.constant 0 : index
    %c0_285 = arith.constant 0 : index
    %380 = vector.load %arg6[%c3_283, %c0_284, %c0_285] : memref<4x1x32xf32, #tpu.memory_space<vmem>>, vector<1x1x32xf32>
    %381 = vector.shape_cast %380 : vector<1x1x32xf32> to vector<1x32xf32>
    %382 = vector.broadcast %381 : vector<1x32xf32> to vector<2x32xf32>
    %383 = arith.addf %379, %382 : vector<2x32xf32>
    %384 = arith.negf %350 : vector<2x32xf32>
    %385 = math.exp %384 : vector<2x32xf32>
    %cst_286 = arith.constant 1.000000e+00 : f32
    %386 = vector.broadcast %cst_286 : f32 to vector<2x32xf32>
    %387 = arith.addf %386, %385 : vector<2x32xf32>
    %388 = arith.divf %386, %387 : vector<2x32xf32>
    %389 = arith.negf %361 : vector<2x32xf32>
    %390 = math.exp %389 : vector<2x32xf32>
    %cst_287 = arith.constant 1.000000e+00 : f32
    %391 = vector.broadcast %cst_287 : f32 to vector<2x32xf32>
    %392 = arith.addf %391, %390 : vector<2x32xf32>
    %393 = arith.divf %391, %392 : vector<2x32xf32>
    %394 = math.tanh %372 : vector<2x32xf32>
    %395 = arith.negf %383 : vector<2x32xf32>
    %396 = math.exp %395 : vector<2x32xf32>
    %cst_288 = arith.constant 1.000000e+00 : f32
    %397 = vector.broadcast %cst_288 : f32 to vector<2x32xf32>
    %398 = arith.addf %397, %396 : vector<2x32xf32>
    %399 = arith.divf %397, %398 : vector<2x32xf32>
    %400 = arith.mulf %393, %268 : vector<2x32xf32>
    %401 = arith.mulf %388, %394 : vector<2x32xf32>
    %402 = arith.addf %400, %401 : vector<2x32xf32>
    %403 = math.tanh %402 : vector<2x32xf32>
    %404 = arith.mulf %399, %403 : vector<2x32xf32>
    %c64 = arith.constant 64 : index
    %c0_289 = arith.constant 0 : index
    %405 = vector.load %arg7[%c64, %c0_289] : memref<256x16xf32, #tpu.memory_space<vmem>>, vector<32x16xf32>
    %cst_290 = arith.constant dense<0.000000e+00> : vector<2x16xf32>
    %406 = tpu.matmul %404, %405, %cst_290 {dimension_numbers = #tpu.dot_dimension_numbers<[1], [0], [0], [1], [0, 0, 1, 1], [], []>} : vector<2x32xf32>, vector<32x16xf32>, vector<2x16xf32> -> vector<2x16xf32>
    %407 = arith.addf %273, %406 : vector<2x16xf32>
    %408 = vector.extract_strided_slice %0 {offsets = [0, 48], sizes = [2, 16], strides = [1, 1]} : vector<2x128xf32> to vector<2x16xf32>
    %c0_291 = arith.constant 0 : index
    %c0_292 = arith.constant 0 : index
    %c0_293 = arith.constant 0 : index
    %409 = vector.load %arg1[%c0_291, %c0_292, %c0_293] : memref<4x16x32xf32, #tpu.memory_space<vmem>>, vector<1x16x32xf32>
    %410 = vector.shape_cast %409 : vector<1x16x32xf32> to vector<16x32xf32>
    %cst_294 = arith.constant dense<0.000000e+00> : vector<2x32xf32>
    %411 = tpu.matmul %408, %410, %cst_294 {dimension_numbers = #tpu.dot_dimension_numbers<[1], [0], [0], [1], [0, 0, 1, 1], [], []>} : vector<2x16xf32>, vector<16x32xf32>, vector<2x32xf32> -> vector<2x32xf32>
    %c0_295 = arith.constant 0 : index
    %c0_296 = arith.constant 0 : index
    %c0_297 = arith.constant 0 : index
    %412 = vector.load %arg2[%c0_295, %c0_296, %c0_297] : memref<4x32x32xf32, #tpu.memory_space<vmem>>, vector<1x32x32xf32>
    %413 = vector.shape_cast %412 : vector<1x32x32xf32> to vector<32x32xf32>
    %cst_298 = arith.constant dense<0.000000e+00> : vector<2x32xf32>
    %414 = tpu.matmul %339, %413, %cst_298 {dimension_numbers = #tpu.dot_dimension_numbers<[1], [0], [0], [1], [0, 0, 1, 1], [], []>} : vector<2x32xf32>, vector<32x32xf32>, vector<2x32xf32> -> vector<2x32xf32>
    %415 = arith.addf %411, %414 : vector<2x32xf32>
    %c0_299 = arith.constant 0 : index
    %c0_300 = arith.constant 0 : index
    %c0_301 = arith.constant 0 : index
    %416 = vector.load %arg3[%c0_299, %c0_300, %c0_301] : memref<4x1x32xf32, #tpu.memory_space<vmem>>, vector<1x1x32xf32>
    %417 = vector.shape_cast %416 : vector<1x1x32xf32> to vector<1x32xf32>
    %418 = vector.broadcast %417 : vector<1x32xf32> to vector<2x32xf32>
    %419 = arith.addf %415, %418 : vector<2x32xf32>
    %c1_302 = arith.constant 1 : index
    %c0_303 = arith.constant 0 : index
    %c0_304 = arith.constant 0 : index
    %420 = vector.load %arg1[%c1_302, %c0_303, %c0_304] : memref<4x16x32xf32, #tpu.memory_space<vmem>>, vector<1x16x32xf32>
    %421 = vector.shape_cast %420 : vector<1x16x32xf32> to vector<16x32xf32>
    %cst_305 = arith.constant dense<0.000000e+00> : vector<2x32xf32>
    %422 = tpu.matmul %408, %421, %cst_305 {dimension_numbers = #tpu.dot_dimension_numbers<[1], [0], [0], [1], [0, 0, 1, 1], [], []>} : vector<2x16xf32>, vector<16x32xf32>, vector<2x32xf32> -> vector<2x32xf32>
    %c1_306 = arith.constant 1 : index
    %c0_307 = arith.constant 0 : index
    %c0_308 = arith.constant 0 : index
    %423 = vector.load %arg2[%c1_306, %c0_307, %c0_308] : memref<4x32x32xf32, #tpu.memory_space<vmem>>, vector<1x32x32xf32>
    %424 = vector.shape_cast %423 : vector<1x32x32xf32> to vector<32x32xf32>
    %cst_309 = arith.constant dense<0.000000e+00> : vector<2x32xf32>
    %425 = tpu.matmul %339, %424, %cst_309 {dimension_numbers = #tpu.dot_dimension_numbers<[1], [0], [0], [1], [0, 0, 1, 1], [], []>} : vector<2x32xf32>, vector<32x32xf32>, vector<2x32xf32> -> vector<2x32xf32>
    %426 = arith.addf %422, %425 : vector<2x32xf32>
    %c1_310 = arith.constant 1 : index
    %c0_311 = arith.constant 0 : index
    %c0_312 = arith.constant 0 : index
    %427 = vector.load %arg3[%c1_310, %c0_311, %c0_312] : memref<4x1x32xf32, #tpu.memory_space<vmem>>, vector<1x1x32xf32>
    %428 = vector.shape_cast %427 : vector<1x1x32xf32> to vector<1x32xf32>
    %429 = vector.broadcast %428 : vector<1x32xf32> to vector<2x32xf32>
    %430 = arith.addf %426, %429 : vector<2x32xf32>
    %c2_313 = arith.constant 2 : index
    %c0_314 = arith.constant 0 : index
    %c0_315 = arith.constant 0 : index
    %431 = vector.load %arg1[%c2_313, %c0_314, %c0_315] : memref<4x16x32xf32, #tpu.memory_space<vmem>>, vector<1x16x32xf32>
    %432 = vector.shape_cast %431 : vector<1x16x32xf32> to vector<16x32xf32>
    %cst_316 = arith.constant dense<0.000000e+00> : vector<2x32xf32>
    %433 = tpu.matmul %408, %432, %cst_316 {dimension_numbers = #tpu.dot_dimension_numbers<[1], [0], [0], [1], [0, 0, 1, 1], [], []>} : vector<2x16xf32>, vector<16x32xf32>, vector<2x32xf32> -> vector<2x32xf32>
    %c2_317 = arith.constant 2 : index
    %c0_318 = arith.constant 0 : index
    %c0_319 = arith.constant 0 : index
    %434 = vector.load %arg2[%c2_317, %c0_318, %c0_319] : memref<4x32x32xf32, #tpu.memory_space<vmem>>, vector<1x32x32xf32>
    %435 = vector.shape_cast %434 : vector<1x32x32xf32> to vector<32x32xf32>
    %cst_320 = arith.constant dense<0.000000e+00> : vector<2x32xf32>
    %436 = tpu.matmul %339, %435, %cst_320 {dimension_numbers = #tpu.dot_dimension_numbers<[1], [0], [0], [1], [0, 0, 1, 1], [], []>} : vector<2x32xf32>, vector<32x32xf32>, vector<2x32xf32> -> vector<2x32xf32>
    %437 = arith.addf %433, %436 : vector<2x32xf32>
    %c2_321 = arith.constant 2 : index
    %c0_322 = arith.constant 0 : index
    %c0_323 = arith.constant 0 : index
    %438 = vector.load %arg3[%c2_321, %c0_322, %c0_323] : memref<4x1x32xf32, #tpu.memory_space<vmem>>, vector<1x1x32xf32>
    %439 = vector.shape_cast %438 : vector<1x1x32xf32> to vector<1x32xf32>
    %440 = vector.broadcast %439 : vector<1x32xf32> to vector<2x32xf32>
    %441 = arith.addf %437, %440 : vector<2x32xf32>
    %c3_324 = arith.constant 3 : index
    %c0_325 = arith.constant 0 : index
    %c0_326 = arith.constant 0 : index
    %442 = vector.load %arg1[%c3_324, %c0_325, %c0_326] : memref<4x16x32xf32, #tpu.memory_space<vmem>>, vector<1x16x32xf32>
    %443 = vector.shape_cast %442 : vector<1x16x32xf32> to vector<16x32xf32>
    %cst_327 = arith.constant dense<0.000000e+00> : vector<2x32xf32>
    %444 = tpu.matmul %408, %443, %cst_327 {dimension_numbers = #tpu.dot_dimension_numbers<[1], [0], [0], [1], [0, 0, 1, 1], [], []>} : vector<2x16xf32>, vector<16x32xf32>, vector<2x32xf32> -> vector<2x32xf32>
    %c3_328 = arith.constant 3 : index
    %c0_329 = arith.constant 0 : index
    %c0_330 = arith.constant 0 : index
    %445 = vector.load %arg2[%c3_328, %c0_329, %c0_330] : memref<4x32x32xf32, #tpu.memory_space<vmem>>, vector<1x32x32xf32>
    %446 = vector.shape_cast %445 : vector<1x32x32xf32> to vector<32x32xf32>
    %cst_331 = arith.constant dense<0.000000e+00> : vector<2x32xf32>
    %447 = tpu.matmul %339, %446, %cst_331 {dimension_numbers = #tpu.dot_dimension_numbers<[1], [0], [0], [1], [0, 0, 1, 1], [], []>} : vector<2x32xf32>, vector<32x32xf32>, vector<2x32xf32> -> vector<2x32xf32>
    %448 = arith.addf %444, %447 : vector<2x32xf32>
    %c3_332 = arith.constant 3 : index
    %c0_333 = arith.constant 0 : index
    %c0_334 = arith.constant 0 : index
    %449 = vector.load %arg3[%c3_332, %c0_333, %c0_334] : memref<4x1x32xf32, #tpu.memory_space<vmem>>, vector<1x1x32xf32>
    %450 = vector.shape_cast %449 : vector<1x1x32xf32> to vector<1x32xf32>
    %451 = vector.broadcast %450 : vector<1x32xf32> to vector<2x32xf32>
    %452 = arith.addf %448, %451 : vector<2x32xf32>
    %453 = arith.negf %419 : vector<2x32xf32>
    %454 = math.exp %453 : vector<2x32xf32>
    %cst_335 = arith.constant 1.000000e+00 : f32
    %455 = vector.broadcast %cst_335 : f32 to vector<2x32xf32>
    %456 = arith.addf %455, %454 : vector<2x32xf32>
    %457 = arith.divf %455, %456 : vector<2x32xf32>
    %458 = arith.negf %430 : vector<2x32xf32>
    %459 = math.exp %458 : vector<2x32xf32>
    %cst_336 = arith.constant 1.000000e+00 : f32
    %460 = vector.broadcast %cst_336 : f32 to vector<2x32xf32>
    %461 = arith.addf %460, %459 : vector<2x32xf32>
    %462 = arith.divf %460, %461 : vector<2x32xf32>
    %463 = math.tanh %441 : vector<2x32xf32>
    %464 = arith.negf %452 : vector<2x32xf32>
    %465 = math.exp %464 : vector<2x32xf32>
    %cst_337 = arith.constant 1.000000e+00 : f32
    %466 = vector.broadcast %cst_337 : f32 to vector<2x32xf32>
    %467 = arith.addf %466, %465 : vector<2x32xf32>
    %468 = arith.divf %466, %467 : vector<2x32xf32>
    %469 = arith.mulf %462, %337 : vector<2x32xf32>
    %470 = arith.mulf %457, %463 : vector<2x32xf32>
    %471 = arith.addf %469, %470 : vector<2x32xf32>
    %472 = math.tanh %471 : vector<2x32xf32>
    %473 = arith.mulf %468, %472 : vector<2x32xf32>
    %c0_338 = arith.constant 0 : index
    %c0_339 = arith.constant 0 : index
    %c0_340 = arith.constant 0 : index
    %474 = vector.load %arg4[%c0_338, %c0_339, %c0_340] : memref<4x32x32xf32, #tpu.memory_space<vmem>>, vector<1x32x32xf32>
    %475 = vector.shape_cast %474 : vector<1x32x32xf32> to vector<32x32xf32>
    %cst_341 = arith.constant dense<0.000000e+00> : vector<2x32xf32>
    %476 = tpu.matmul %473, %475, %cst_341 {dimension_numbers = #tpu.dot_dimension_numbers<[1], [0], [0], [1], [0, 0, 1, 1], [], []>} : vector<2x32xf32>, vector<32x32xf32>, vector<2x32xf32> -> vector<2x32xf32>
    %c0_342 = arith.constant 0 : index
    %c0_343 = arith.constant 0 : index
    %c0_344 = arith.constant 0 : index
    %477 = vector.load %arg5[%c0_342, %c0_343, %c0_344] : memref<4x32x32xf32, #tpu.memory_space<vmem>>, vector<1x32x32xf32>
    %478 = vector.shape_cast %477 : vector<1x32x32xf32> to vector<32x32xf32>
    %cst_345 = arith.constant dense<0.000000e+00> : vector<2x32xf32>
    %479 = tpu.matmul %404, %478, %cst_345 {dimension_numbers = #tpu.dot_dimension_numbers<[1], [0], [0], [1], [0, 0, 1, 1], [], []>} : vector<2x32xf32>, vector<32x32xf32>, vector<2x32xf32> -> vector<2x32xf32>
    %480 = arith.addf %476, %479 : vector<2x32xf32>
    %c0_346 = arith.constant 0 : index
    %c0_347 = arith.constant 0 : index
    %c0_348 = arith.constant 0 : index
    %481 = vector.load %arg6[%c0_346, %c0_347, %c0_348] : memref<4x1x32xf32, #tpu.memory_space<vmem>>, vector<1x1x32xf32>
    %482 = vector.shape_cast %481 : vector<1x1x32xf32> to vector<1x32xf32>
    %483 = vector.broadcast %482 : vector<1x32xf32> to vector<2x32xf32>
    %484 = arith.addf %480, %483 : vector<2x32xf32>
    %c1_349 = arith.constant 1 : index
    %c0_350 = arith.constant 0 : index
    %c0_351 = arith.constant 0 : index
    %485 = vector.load %arg4[%c1_349, %c0_350, %c0_351] : memref<4x32x32xf32, #tpu.memory_space<vmem>>, vector<1x32x32xf32>
    %486 = vector.shape_cast %485 : vector<1x32x32xf32> to vector<32x32xf32>
    %cst_352 = arith.constant dense<0.000000e+00> : vector<2x32xf32>
    %487 = tpu.matmul %473, %486, %cst_352 {dimension_numbers = #tpu.dot_dimension_numbers<[1], [0], [0], [1], [0, 0, 1, 1], [], []>} : vector<2x32xf32>, vector<32x32xf32>, vector<2x32xf32> -> vector<2x32xf32>
    %c1_353 = arith.constant 1 : index
    %c0_354 = arith.constant 0 : index
    %c0_355 = arith.constant 0 : index
    %488 = vector.load %arg5[%c1_353, %c0_354, %c0_355] : memref<4x32x32xf32, #tpu.memory_space<vmem>>, vector<1x32x32xf32>
    %489 = vector.shape_cast %488 : vector<1x32x32xf32> to vector<32x32xf32>
    %cst_356 = arith.constant dense<0.000000e+00> : vector<2x32xf32>
    %490 = tpu.matmul %404, %489, %cst_356 {dimension_numbers = #tpu.dot_dimension_numbers<[1], [0], [0], [1], [0, 0, 1, 1], [], []>} : vector<2x32xf32>, vector<32x32xf32>, vector<2x32xf32> -> vector<2x32xf32>
    %491 = arith.addf %487, %490 : vector<2x32xf32>
    %c1_357 = arith.constant 1 : index
    %c0_358 = arith.constant 0 : index
    %c0_359 = arith.constant 0 : index
    %492 = vector.load %arg6[%c1_357, %c0_358, %c0_359] : memref<4x1x32xf32, #tpu.memory_space<vmem>>, vector<1x1x32xf32>
    %493 = vector.shape_cast %492 : vector<1x1x32xf32> to vector<1x32xf32>
    %494 = vector.broadcast %493 : vector<1x32xf32> to vector<2x32xf32>
    %495 = arith.addf %491, %494 : vector<2x32xf32>
    %c2_360 = arith.constant 2 : index
    %c0_361 = arith.constant 0 : index
    %c0_362 = arith.constant 0 : index
    %496 = vector.load %arg4[%c2_360, %c0_361, %c0_362] : memref<4x32x32xf32, #tpu.memory_space<vmem>>, vector<1x32x32xf32>
    %497 = vector.shape_cast %496 : vector<1x32x32xf32> to vector<32x32xf32>
    %cst_363 = arith.constant dense<0.000000e+00> : vector<2x32xf32>
    %498 = tpu.matmul %473, %497, %cst_363 {dimension_numbers = #tpu.dot_dimension_numbers<[1], [0], [0], [1], [0, 0, 1, 1], [], []>} : vector<2x32xf32>, vector<32x32xf32>, vector<2x32xf32> -> vector<2x32xf32>
    %c2_364 = arith.constant 2 : index
    %c0_365 = arith.constant 0 : index
    %c0_366 = arith.constant 0 : index
    %499 = vector.load %arg5[%c2_364, %c0_365, %c0_366] : memref<4x32x32xf32, #tpu.memory_space<vmem>>, vector<1x32x32xf32>
    %500 = vector.shape_cast %499 : vector<1x32x32xf32> to vector<32x32xf32>
    %cst_367 = arith.constant dense<0.000000e+00> : vector<2x32xf32>
    %501 = tpu.matmul %404, %500, %cst_367 {dimension_numbers = #tpu.dot_dimension_numbers<[1], [0], [0], [1], [0, 0, 1, 1], [], []>} : vector<2x32xf32>, vector<32x32xf32>, vector<2x32xf32> -> vector<2x32xf32>
    %502 = arith.addf %498, %501 : vector<2x32xf32>
    %c2_368 = arith.constant 2 : index
    %c0_369 = arith.constant 0 : index
    %c0_370 = arith.constant 0 : index
    %503 = vector.load %arg6[%c2_368, %c0_369, %c0_370] : memref<4x1x32xf32, #tpu.memory_space<vmem>>, vector<1x1x32xf32>
    %504 = vector.shape_cast %503 : vector<1x1x32xf32> to vector<1x32xf32>
    %505 = vector.broadcast %504 : vector<1x32xf32> to vector<2x32xf32>
    %506 = arith.addf %502, %505 : vector<2x32xf32>
    %c3_371 = arith.constant 3 : index
    %c0_372 = arith.constant 0 : index
    %c0_373 = arith.constant 0 : index
    %507 = vector.load %arg4[%c3_371, %c0_372, %c0_373] : memref<4x32x32xf32, #tpu.memory_space<vmem>>, vector<1x32x32xf32>
    %508 = vector.shape_cast %507 : vector<1x32x32xf32> to vector<32x32xf32>
    %cst_374 = arith.constant dense<0.000000e+00> : vector<2x32xf32>
    %509 = tpu.matmul %473, %508, %cst_374 {dimension_numbers = #tpu.dot_dimension_numbers<[1], [0], [0], [1], [0, 0, 1, 1], [], []>} : vector<2x32xf32>, vector<32x32xf32>, vector<2x32xf32> -> vector<2x32xf32>
    %c3_375 = arith.constant 3 : index
    %c0_376 = arith.constant 0 : index
    %c0_377 = arith.constant 0 : index
    %510 = vector.load %arg5[%c3_375, %c0_376, %c0_377] : memref<4x32x32xf32, #tpu.memory_space<vmem>>, vector<1x32x32xf32>
    %511 = vector.shape_cast %510 : vector<1x32x32xf32> to vector<32x32xf32>
    %cst_378 = arith.constant dense<0.000000e+00> : vector<2x32xf32>
    %512 = tpu.matmul %404, %511, %cst_378 {dimension_numbers = #tpu.dot_dimension_numbers<[1], [0], [0], [1], [0, 0, 1, 1], [], []>} : vector<2x32xf32>, vector<32x32xf32>, vector<2x32xf32> -> vector<2x32xf32>
    %513 = arith.addf %509, %512 : vector<2x32xf32>
    %c3_379 = arith.constant 3 : index
    %c0_380 = arith.constant 0 : index
    %c0_381 = arith.constant 0 : index
    %514 = vector.load %arg6[%c3_379, %c0_380, %c0_381] : memref<4x1x32xf32, #tpu.memory_space<vmem>>, vector<1x1x32xf32>
    %515 = vector.shape_cast %514 : vector<1x1x32xf32> to vector<1x32xf32>
    %516 = vector.broadcast %515 : vector<1x32xf32> to vector<2x32xf32>
    %517 = arith.addf %513, %516 : vector<2x32xf32>
    %518 = arith.negf %484 : vector<2x32xf32>
    %519 = math.exp %518 : vector<2x32xf32>
    %cst_382 = arith.constant 1.000000e+00 : f32
    %520 = vector.broadcast %cst_382 : f32 to vector<2x32xf32>
    %521 = arith.addf %520, %519 : vector<2x32xf32>
    %522 = arith.divf %520, %521 : vector<2x32xf32>
    %523 = arith.negf %495 : vector<2x32xf32>
    %524 = math.exp %523 : vector<2x32xf32>
    %cst_383 = arith.constant 1.000000e+00 : f32
    %525 = vector.broadcast %cst_383 : f32 to vector<2x32xf32>
    %526 = arith.addf %525, %524 : vector<2x32xf32>
    %527 = arith.divf %525, %526 : vector<2x32xf32>
    %528 = math.tanh %506 : vector<2x32xf32>
    %529 = arith.negf %517 : vector<2x32xf32>
    %530 = math.exp %529 : vector<2x32xf32>
    %cst_384 = arith.constant 1.000000e+00 : f32
    %531 = vector.broadcast %cst_384 : f32 to vector<2x32xf32>
    %532 = arith.addf %531, %530 : vector<2x32xf32>
    %533 = arith.divf %531, %532 : vector<2x32xf32>
    %534 = arith.mulf %527, %402 : vector<2x32xf32>
    %535 = arith.mulf %522, %528 : vector<2x32xf32>
    %536 = arith.addf %534, %535 : vector<2x32xf32>
    %537 = math.tanh %536 : vector<2x32xf32>
    %538 = arith.mulf %533, %537 : vector<2x32xf32>
    %c96 = arith.constant 96 : index
    %c0_385 = arith.constant 0 : index
    %539 = vector.load %arg7[%c96, %c0_385] : memref<256x16xf32, #tpu.memory_space<vmem>>, vector<32x16xf32>
    %cst_386 = arith.constant dense<0.000000e+00> : vector<2x16xf32>
    %540 = tpu.matmul %538, %539, %cst_386 {dimension_numbers = #tpu.dot_dimension_numbers<[1], [0], [0], [1], [0, 0, 1, 1], [], []>} : vector<2x32xf32>, vector<32x16xf32>, vector<2x16xf32> -> vector<2x16xf32>
    %541 = arith.addf %407, %540 : vector<2x16xf32>
    %542 = vector.extract_strided_slice %0 {offsets = [0, 64], sizes = [2, 16], strides = [1, 1]} : vector<2x128xf32> to vector<2x16xf32>
    %c0_387 = arith.constant 0 : index
    %c0_388 = arith.constant 0 : index
    %c0_389 = arith.constant 0 : index
    %543 = vector.load %arg1[%c0_387, %c0_388, %c0_389] : memref<4x16x32xf32, #tpu.memory_space<vmem>>, vector<1x16x32xf32>
    %544 = vector.shape_cast %543 : vector<1x16x32xf32> to vector<16x32xf32>
    %cst_390 = arith.constant dense<0.000000e+00> : vector<2x32xf32>
    %545 = tpu.matmul %542, %544, %cst_390 {dimension_numbers = #tpu.dot_dimension_numbers<[1], [0], [0], [1], [0, 0, 1, 1], [], []>} : vector<2x16xf32>, vector<16x32xf32>, vector<2x32xf32> -> vector<2x32xf32>
    %c0_391 = arith.constant 0 : index
    %c0_392 = arith.constant 0 : index
    %c0_393 = arith.constant 0 : index
    %546 = vector.load %arg2[%c0_391, %c0_392, %c0_393] : memref<4x32x32xf32, #tpu.memory_space<vmem>>, vector<1x32x32xf32>
    %547 = vector.shape_cast %546 : vector<1x32x32xf32> to vector<32x32xf32>
    %cst_394 = arith.constant dense<0.000000e+00> : vector<2x32xf32>
    %548 = tpu.matmul %473, %547, %cst_394 {dimension_numbers = #tpu.dot_dimension_numbers<[1], [0], [0], [1], [0, 0, 1, 1], [], []>} : vector<2x32xf32>, vector<32x32xf32>, vector<2x32xf32> -> vector<2x32xf32>
    %549 = arith.addf %545, %548 : vector<2x32xf32>
    %c0_395 = arith.constant 0 : index
    %c0_396 = arith.constant 0 : index
    %c0_397 = arith.constant 0 : index
    %550 = vector.load %arg3[%c0_395, %c0_396, %c0_397] : memref<4x1x32xf32, #tpu.memory_space<vmem>>, vector<1x1x32xf32>
    %551 = vector.shape_cast %550 : vector<1x1x32xf32> to vector<1x32xf32>
    %552 = vector.broadcast %551 : vector<1x32xf32> to vector<2x32xf32>
    %553 = arith.addf %549, %552 : vector<2x32xf32>
    %c1_398 = arith.constant 1 : index
    %c0_399 = arith.constant 0 : index
    %c0_400 = arith.constant 0 : index
    %554 = vector.load %arg1[%c1_398, %c0_399, %c0_400] : memref<4x16x32xf32, #tpu.memory_space<vmem>>, vector<1x16x32xf32>
    %555 = vector.shape_cast %554 : vector<1x16x32xf32> to vector<16x32xf32>
    %cst_401 = arith.constant dense<0.000000e+00> : vector<2x32xf32>
    %556 = tpu.matmul %542, %555, %cst_401 {dimension_numbers = #tpu.dot_dimension_numbers<[1], [0], [0], [1], [0, 0, 1, 1], [], []>} : vector<2x16xf32>, vector<16x32xf32>, vector<2x32xf32> -> vector<2x32xf32>
    %c1_402 = arith.constant 1 : index
    %c0_403 = arith.constant 0 : index
    %c0_404 = arith.constant 0 : index
    %557 = vector.load %arg2[%c1_402, %c0_403, %c0_404] : memref<4x32x32xf32, #tpu.memory_space<vmem>>, vector<1x32x32xf32>
    %558 = vector.shape_cast %557 : vector<1x32x32xf32> to vector<32x32xf32>
    %cst_405 = arith.constant dense<0.000000e+00> : vector<2x32xf32>
    %559 = tpu.matmul %473, %558, %cst_405 {dimension_numbers = #tpu.dot_dimension_numbers<[1], [0], [0], [1], [0, 0, 1, 1], [], []>} : vector<2x32xf32>, vector<32x32xf32>, vector<2x32xf32> -> vector<2x32xf32>
    %560 = arith.addf %556, %559 : vector<2x32xf32>
    %c1_406 = arith.constant 1 : index
    %c0_407 = arith.constant 0 : index
    %c0_408 = arith.constant 0 : index
    %561 = vector.load %arg3[%c1_406, %c0_407, %c0_408] : memref<4x1x32xf32, #tpu.memory_space<vmem>>, vector<1x1x32xf32>
    %562 = vector.shape_cast %561 : vector<1x1x32xf32> to vector<1x32xf32>
    %563 = vector.broadcast %562 : vector<1x32xf32> to vector<2x32xf32>
    %564 = arith.addf %560, %563 : vector<2x32xf32>
    %c2_409 = arith.constant 2 : index
    %c0_410 = arith.constant 0 : index
    %c0_411 = arith.constant 0 : index
    %565 = vector.load %arg1[%c2_409, %c0_410, %c0_411] : memref<4x16x32xf32, #tpu.memory_space<vmem>>, vector<1x16x32xf32>
    %566 = vector.shape_cast %565 : vector<1x16x32xf32> to vector<16x32xf32>
    %cst_412 = arith.constant dense<0.000000e+00> : vector<2x32xf32>
    %567 = tpu.matmul %542, %566, %cst_412 {dimension_numbers = #tpu.dot_dimension_numbers<[1], [0], [0], [1], [0, 0, 1, 1], [], []>} : vector<2x16xf32>, vector<16x32xf32>, vector<2x32xf32> -> vector<2x32xf32>
    %c2_413 = arith.constant 2 : index
    %c0_414 = arith.constant 0 : index
    %c0_415 = arith.constant 0 : index
    %568 = vector.load %arg2[%c2_413, %c0_414, %c0_415] : memref<4x32x32xf32, #tpu.memory_space<vmem>>, vector<1x32x32xf32>
    %569 = vector.shape_cast %568 : vector<1x32x32xf32> to vector<32x32xf32>
    %cst_416 = arith.constant dense<0.000000e+00> : vector<2x32xf32>
    %570 = tpu.matmul %473, %569, %cst_416 {dimension_numbers = #tpu.dot_dimension_numbers<[1], [0], [0], [1], [0, 0, 1, 1], [], []>} : vector<2x32xf32>, vector<32x32xf32>, vector<2x32xf32> -> vector<2x32xf32>
    %571 = arith.addf %567, %570 : vector<2x32xf32>
    %c2_417 = arith.constant 2 : index
    %c0_418 = arith.constant 0 : index
    %c0_419 = arith.constant 0 : index
    %572 = vector.load %arg3[%c2_417, %c0_418, %c0_419] : memref<4x1x32xf32, #tpu.memory_space<vmem>>, vector<1x1x32xf32>
    %573 = vector.shape_cast %572 : vector<1x1x32xf32> to vector<1x32xf32>
    %574 = vector.broadcast %573 : vector<1x32xf32> to vector<2x32xf32>
    %575 = arith.addf %571, %574 : vector<2x32xf32>
    %c3_420 = arith.constant 3 : index
    %c0_421 = arith.constant 0 : index
    %c0_422 = arith.constant 0 : index
    %576 = vector.load %arg1[%c3_420, %c0_421, %c0_422] : memref<4x16x32xf32, #tpu.memory_space<vmem>>, vector<1x16x32xf32>
    %577 = vector.shape_cast %576 : vector<1x16x32xf32> to vector<16x32xf32>
    %cst_423 = arith.constant dense<0.000000e+00> : vector<2x32xf32>
    %578 = tpu.matmul %542, %577, %cst_423 {dimension_numbers = #tpu.dot_dimension_numbers<[1], [0], [0], [1], [0, 0, 1, 1], [], []>} : vector<2x16xf32>, vector<16x32xf32>, vector<2x32xf32> -> vector<2x32xf32>
    %c3_424 = arith.constant 3 : index
    %c0_425 = arith.constant 0 : index
    %c0_426 = arith.constant 0 : index
    %579 = vector.load %arg2[%c3_424, %c0_425, %c0_426] : memref<4x32x32xf32, #tpu.memory_space<vmem>>, vector<1x32x32xf32>
    %580 = vector.shape_cast %579 : vector<1x32x32xf32> to vector<32x32xf32>
    %cst_427 = arith.constant dense<0.000000e+00> : vector<2x32xf32>
    %581 = tpu.matmul %473, %580, %cst_427 {dimension_numbers = #tpu.dot_dimension_numbers<[1], [0], [0], [1], [0, 0, 1, 1], [], []>} : vector<2x32xf32>, vector<32x32xf32>, vector<2x32xf32> -> vector<2x32xf32>
    %582 = arith.addf %578, %581 : vector<2x32xf32>
    %c3_428 = arith.constant 3 : index
    %c0_429 = arith.constant 0 : index
    %c0_430 = arith.constant 0 : index
    %583 = vector.load %arg3[%c3_428, %c0_429, %c0_430] : memref<4x1x32xf32, #tpu.memory_space<vmem>>, vector<1x1x32xf32>
    %584 = vector.shape_cast %583 : vector<1x1x32xf32> to vector<1x32xf32>
    %585 = vector.broadcast %584 : vector<1x32xf32> to vector<2x32xf32>
    %586 = arith.addf %582, %585 : vector<2x32xf32>
    %587 = arith.negf %553 : vector<2x32xf32>
    %588 = math.exp %587 : vector<2x32xf32>
    %cst_431 = arith.constant 1.000000e+00 : f32
    %589 = vector.broadcast %cst_431 : f32 to vector<2x32xf32>
    %590 = arith.addf %589, %588 : vector<2x32xf32>
    %591 = arith.divf %589, %590 : vector<2x32xf32>
    %592 = arith.negf %564 : vector<2x32xf32>
    %593 = math.exp %592 : vector<2x32xf32>
    %cst_432 = arith.constant 1.000000e+00 : f32
    %594 = vector.broadcast %cst_432 : f32 to vector<2x32xf32>
    %595 = arith.addf %594, %593 : vector<2x32xf32>
    %596 = arith.divf %594, %595 : vector<2x32xf32>
    %597 = math.tanh %575 : vector<2x32xf32>
    %598 = arith.negf %586 : vector<2x32xf32>
    %599 = math.exp %598 : vector<2x32xf32>
    %cst_433 = arith.constant 1.000000e+00 : f32
    %600 = vector.broadcast %cst_433 : f32 to vector<2x32xf32>
    %601 = arith.addf %600, %599 : vector<2x32xf32>
    %602 = arith.divf %600, %601 : vector<2x32xf32>
    %603 = arith.mulf %596, %471 : vector<2x32xf32>
    %604 = arith.mulf %591, %597 : vector<2x32xf32>
    %605 = arith.addf %603, %604 : vector<2x32xf32>
    %606 = math.tanh %605 : vector<2x32xf32>
    %607 = arith.mulf %602, %606 : vector<2x32xf32>
    %c0_434 = arith.constant 0 : index
    %c0_435 = arith.constant 0 : index
    %c0_436 = arith.constant 0 : index
    %608 = vector.load %arg4[%c0_434, %c0_435, %c0_436] : memref<4x32x32xf32, #tpu.memory_space<vmem>>, vector<1x32x32xf32>
    %609 = vector.shape_cast %608 : vector<1x32x32xf32> to vector<32x32xf32>
    %cst_437 = arith.constant dense<0.000000e+00> : vector<2x32xf32>
    %610 = tpu.matmul %607, %609, %cst_437 {dimension_numbers = #tpu.dot_dimension_numbers<[1], [0], [0], [1], [0, 0, 1, 1], [], []>} : vector<2x32xf32>, vector<32x32xf32>, vector<2x32xf32> -> vector<2x32xf32>
    %c0_438 = arith.constant 0 : index
    %c0_439 = arith.constant 0 : index
    %c0_440 = arith.constant 0 : index
    %611 = vector.load %arg5[%c0_438, %c0_439, %c0_440] : memref<4x32x32xf32, #tpu.memory_space<vmem>>, vector<1x32x32xf32>
    %612 = vector.shape_cast %611 : vector<1x32x32xf32> to vector<32x32xf32>
    %cst_441 = arith.constant dense<0.000000e+00> : vector<2x32xf32>
    %613 = tpu.matmul %538, %612, %cst_441 {dimension_numbers = #tpu.dot_dimension_numbers<[1], [0], [0], [1], [0, 0, 1, 1], [], []>} : vector<2x32xf32>, vector<32x32xf32>, vector<2x32xf32> -> vector<2x32xf32>
    %614 = arith.addf %610, %613 : vector<2x32xf32>
    %c0_442 = arith.constant 0 : index
    %c0_443 = arith.constant 0 : index
    %c0_444 = arith.constant 0 : index
    %615 = vector.load %arg6[%c0_442, %c0_443, %c0_444] : memref<4x1x32xf32, #tpu.memory_space<vmem>>, vector<1x1x32xf32>
    %616 = vector.shape_cast %615 : vector<1x1x32xf32> to vector<1x32xf32>
    %617 = vector.broadcast %616 : vector<1x32xf32> to vector<2x32xf32>
    %618 = arith.addf %614, %617 : vector<2x32xf32>
    %c1_445 = arith.constant 1 : index
    %c0_446 = arith.constant 0 : index
    %c0_447 = arith.constant 0 : index
    %619 = vector.load %arg4[%c1_445, %c0_446, %c0_447] : memref<4x32x32xf32, #tpu.memory_space<vmem>>, vector<1x32x32xf32>
    %620 = vector.shape_cast %619 : vector<1x32x32xf32> to vector<32x32xf32>
    %cst_448 = arith.constant dense<0.000000e+00> : vector<2x32xf32>
    %621 = tpu.matmul %607, %620, %cst_448 {dimension_numbers = #tpu.dot_dimension_numbers<[1], [0], [0], [1], [0, 0, 1, 1], [], []>} : vector<2x32xf32>, vector<32x32xf32>, vector<2x32xf32> -> vector<2x32xf32>
    %c1_449 = arith.constant 1 : index
    %c0_450 = arith.constant 0 : index
    %c0_451 = arith.constant 0 : index
    %622 = vector.load %arg5[%c1_449, %c0_450, %c0_451] : memref<4x32x32xf32, #tpu.memory_space<vmem>>, vector<1x32x32xf32>
    %623 = vector.shape_cast %622 : vector<1x32x32xf32> to vector<32x32xf32>
    %cst_452 = arith.constant dense<0.000000e+00> : vector<2x32xf32>
    %624 = tpu.matmul %538, %623, %cst_452 {dimension_numbers = #tpu.dot_dimension_numbers<[1], [0], [0], [1], [0, 0, 1, 1], [], []>} : vector<2x32xf32>, vector<32x32xf32>, vector<2x32xf32> -> vector<2x32xf32>
    %625 = arith.addf %621, %624 : vector<2x32xf32>
    %c1_453 = arith.constant 1 : index
    %c0_454 = arith.constant 0 : index
    %c0_455 = arith.constant 0 : index
    %626 = vector.load %arg6[%c1_453, %c0_454, %c0_455] : memref<4x1x32xf32, #tpu.memory_space<vmem>>, vector<1x1x32xf32>
    %627 = vector.shape_cast %626 : vector<1x1x32xf32> to vector<1x32xf32>
    %628 = vector.broadcast %627 : vector<1x32xf32> to vector<2x32xf32>
    %629 = arith.addf %625, %628 : vector<2x32xf32>
    %c2_456 = arith.constant 2 : index
    %c0_457 = arith.constant 0 : index
    %c0_458 = arith.constant 0 : index
    %630 = vector.load %arg4[%c2_456, %c0_457, %c0_458] : memref<4x32x32xf32, #tpu.memory_space<vmem>>, vector<1x32x32xf32>
    %631 = vector.shape_cast %630 : vector<1x32x32xf32> to vector<32x32xf32>
    %cst_459 = arith.constant dense<0.000000e+00> : vector<2x32xf32>
    %632 = tpu.matmul %607, %631, %cst_459 {dimension_numbers = #tpu.dot_dimension_numbers<[1], [0], [0], [1], [0, 0, 1, 1], [], []>} : vector<2x32xf32>, vector<32x32xf32>, vector<2x32xf32> -> vector<2x32xf32>
    %c2_460 = arith.constant 2 : index
    %c0_461 = arith.constant 0 : index
    %c0_462 = arith.constant 0 : index
    %633 = vector.load %arg5[%c2_460, %c0_461, %c0_462] : memref<4x32x32xf32, #tpu.memory_space<vmem>>, vector<1x32x32xf32>
    %634 = vector.shape_cast %633 : vector<1x32x32xf32> to vector<32x32xf32>
    %cst_463 = arith.constant dense<0.000000e+00> : vector<2x32xf32>
    %635 = tpu.matmul %538, %634, %cst_463 {dimension_numbers = #tpu.dot_dimension_numbers<[1], [0], [0], [1], [0, 0, 1, 1], [], []>} : vector<2x32xf32>, vector<32x32xf32>, vector<2x32xf32> -> vector<2x32xf32>
    %636 = arith.addf %632, %635 : vector<2x32xf32>
    %c2_464 = arith.constant 2 : index
    %c0_465 = arith.constant 0 : index
    %c0_466 = arith.constant 0 : index
    %637 = vector.load %arg6[%c2_464, %c0_465, %c0_466] : memref<4x1x32xf32, #tpu.memory_space<vmem>>, vector<1x1x32xf32>
    %638 = vector.shape_cast %637 : vector<1x1x32xf32> to vector<1x32xf32>
    %639 = vector.broadcast %638 : vector<1x32xf32> to vector<2x32xf32>
    %640 = arith.addf %636, %639 : vector<2x32xf32>
    %c3_467 = arith.constant 3 : index
    %c0_468 = arith.constant 0 : index
    %c0_469 = arith.constant 0 : index
    %641 = vector.load %arg4[%c3_467, %c0_468, %c0_469] : memref<4x32x32xf32, #tpu.memory_space<vmem>>, vector<1x32x32xf32>
    %642 = vector.shape_cast %641 : vector<1x32x32xf32> to vector<32x32xf32>
    %cst_470 = arith.constant dense<0.000000e+00> : vector<2x32xf32>
    %643 = tpu.matmul %607, %642, %cst_470 {dimension_numbers = #tpu.dot_dimension_numbers<[1], [0], [0], [1], [0, 0, 1, 1], [], []>} : vector<2x32xf32>, vector<32x32xf32>, vector<2x32xf32> -> vector<2x32xf32>
    %c3_471 = arith.constant 3 : index
    %c0_472 = arith.constant 0 : index
    %c0_473 = arith.constant 0 : index
    %644 = vector.load %arg5[%c3_471, %c0_472, %c0_473] : memref<4x32x32xf32, #tpu.memory_space<vmem>>, vector<1x32x32xf32>
    %645 = vector.shape_cast %644 : vector<1x32x32xf32> to vector<32x32xf32>
    %cst_474 = arith.constant dense<0.000000e+00> : vector<2x32xf32>
    %646 = tpu.matmul %538, %645, %cst_474 {dimension_numbers = #tpu.dot_dimension_numbers<[1], [0], [0], [1], [0, 0, 1, 1], [], []>} : vector<2x32xf32>, vector<32x32xf32>, vector<2x32xf32> -> vector<2x32xf32>
    %647 = arith.addf %643, %646 : vector<2x32xf32>
    %c3_475 = arith.constant 3 : index
    %c0_476 = arith.constant 0 : index
    %c0_477 = arith.constant 0 : index
    %648 = vector.load %arg6[%c3_475, %c0_476, %c0_477] : memref<4x1x32xf32, #tpu.memory_space<vmem>>, vector<1x1x32xf32>
    %649 = vector.shape_cast %648 : vector<1x1x32xf32> to vector<1x32xf32>
    %650 = vector.broadcast %649 : vector<1x32xf32> to vector<2x32xf32>
    %651 = arith.addf %647, %650 : vector<2x32xf32>
    %652 = arith.negf %618 : vector<2x32xf32>
    %653 = math.exp %652 : vector<2x32xf32>
    %cst_478 = arith.constant 1.000000e+00 : f32
    %654 = vector.broadcast %cst_478 : f32 to vector<2x32xf32>
    %655 = arith.addf %654, %653 : vector<2x32xf32>
    %656 = arith.divf %654, %655 : vector<2x32xf32>
    %657 = arith.negf %629 : vector<2x32xf32>
    %658 = math.exp %657 : vector<2x32xf32>
    %cst_479 = arith.constant 1.000000e+00 : f32
    %659 = vector.broadcast %cst_479 : f32 to vector<2x32xf32>
    %660 = arith.addf %659, %658 : vector<2x32xf32>
    %661 = arith.divf %659, %660 : vector<2x32xf32>
    %662 = math.tanh %640 : vector<2x32xf32>
    %663 = arith.negf %651 : vector<2x32xf32>
    %664 = math.exp %663 : vector<2x32xf32>
    %cst_480 = arith.constant 1.000000e+00 : f32
    %665 = vector.broadcast %cst_480 : f32 to vector<2x32xf32>
    %666 = arith.addf %665, %664 : vector<2x32xf32>
    %667 = arith.divf %665, %666 : vector<2x32xf32>
    %668 = arith.mulf %661, %536 : vector<2x32xf32>
    %669 = arith.mulf %656, %662 : vector<2x32xf32>
    %670 = arith.addf %668, %669 : vector<2x32xf32>
    %671 = math.tanh %670 : vector<2x32xf32>
    %672 = arith.mulf %667, %671 : vector<2x32xf32>
    %c128 = arith.constant 128 : index
    %c0_481 = arith.constant 0 : index
    %673 = vector.load %arg7[%c128, %c0_481] : memref<256x16xf32, #tpu.memory_space<vmem>>, vector<32x16xf32>
    %cst_482 = arith.constant dense<0.000000e+00> : vector<2x16xf32>
    %674 = tpu.matmul %672, %673, %cst_482 {dimension_numbers = #tpu.dot_dimension_numbers<[1], [0], [0], [1], [0, 0, 1, 1], [], []>} : vector<2x32xf32>, vector<32x16xf32>, vector<2x16xf32> -> vector<2x16xf32>
    %675 = arith.addf %541, %674 : vector<2x16xf32>
    %676 = vector.extract_strided_slice %0 {offsets = [0, 80], sizes = [2, 16], strides = [1, 1]} : vector<2x128xf32> to vector<2x16xf32>
    %c0_483 = arith.constant 0 : index
    %c0_484 = arith.constant 0 : index
    %c0_485 = arith.constant 0 : index
    %677 = vector.load %arg1[%c0_483, %c0_484, %c0_485] : memref<4x16x32xf32, #tpu.memory_space<vmem>>, vector<1x16x32xf32>
    %678 = vector.shape_cast %677 : vector<1x16x32xf32> to vector<16x32xf32>
    %cst_486 = arith.constant dense<0.000000e+00> : vector<2x32xf32>
    %679 = tpu.matmul %676, %678, %cst_486 {dimension_numbers = #tpu.dot_dimension_numbers<[1], [0], [0], [1], [0, 0, 1, 1], [], []>} : vector<2x16xf32>, vector<16x32xf32>, vector<2x32xf32> -> vector<2x32xf32>
    %c0_487 = arith.constant 0 : index
    %c0_488 = arith.constant 0 : index
    %c0_489 = arith.constant 0 : index
    %680 = vector.load %arg2[%c0_487, %c0_488, %c0_489] : memref<4x32x32xf32, #tpu.memory_space<vmem>>, vector<1x32x32xf32>
    %681 = vector.shape_cast %680 : vector<1x32x32xf32> to vector<32x32xf32>
    %cst_490 = arith.constant dense<0.000000e+00> : vector<2x32xf32>
    %682 = tpu.matmul %607, %681, %cst_490 {dimension_numbers = #tpu.dot_dimension_numbers<[1], [0], [0], [1], [0, 0, 1, 1], [], []>} : vector<2x32xf32>, vector<32x32xf32>, vector<2x32xf32> -> vector<2x32xf32>
    %683 = arith.addf %679, %682 : vector<2x32xf32>
    %c0_491 = arith.constant 0 : index
    %c0_492 = arith.constant 0 : index
    %c0_493 = arith.constant 0 : index
    %684 = vector.load %arg3[%c0_491, %c0_492, %c0_493] : memref<4x1x32xf32, #tpu.memory_space<vmem>>, vector<1x1x32xf32>
    %685 = vector.shape_cast %684 : vector<1x1x32xf32> to vector<1x32xf32>
    %686 = vector.broadcast %685 : vector<1x32xf32> to vector<2x32xf32>
    %687 = arith.addf %683, %686 : vector<2x32xf32>
    %c1_494 = arith.constant 1 : index
    %c0_495 = arith.constant 0 : index
    %c0_496 = arith.constant 0 : index
    %688 = vector.load %arg1[%c1_494, %c0_495, %c0_496] : memref<4x16x32xf32, #tpu.memory_space<vmem>>, vector<1x16x32xf32>
    %689 = vector.shape_cast %688 : vector<1x16x32xf32> to vector<16x32xf32>
    %cst_497 = arith.constant dense<0.000000e+00> : vector<2x32xf32>
    %690 = tpu.matmul %676, %689, %cst_497 {dimension_numbers = #tpu.dot_dimension_numbers<[1], [0], [0], [1], [0, 0, 1, 1], [], []>} : vector<2x16xf32>, vector<16x32xf32>, vector<2x32xf32> -> vector<2x32xf32>
    %c1_498 = arith.constant 1 : index
    %c0_499 = arith.constant 0 : index
    %c0_500 = arith.constant 0 : index
    %691 = vector.load %arg2[%c1_498, %c0_499, %c0_500] : memref<4x32x32xf32, #tpu.memory_space<vmem>>, vector<1x32x32xf32>
    %692 = vector.shape_cast %691 : vector<1x32x32xf32> to vector<32x32xf32>
    %cst_501 = arith.constant dense<0.000000e+00> : vector<2x32xf32>
    %693 = tpu.matmul %607, %692, %cst_501 {dimension_numbers = #tpu.dot_dimension_numbers<[1], [0], [0], [1], [0, 0, 1, 1], [], []>} : vector<2x32xf32>, vector<32x32xf32>, vector<2x32xf32> -> vector<2x32xf32>
    %694 = arith.addf %690, %693 : vector<2x32xf32>
    %c1_502 = arith.constant 1 : index
    %c0_503 = arith.constant 0 : index
    %c0_504 = arith.constant 0 : index
    %695 = vector.load %arg3[%c1_502, %c0_503, %c0_504] : memref<4x1x32xf32, #tpu.memory_space<vmem>>, vector<1x1x32xf32>
    %696 = vector.shape_cast %695 : vector<1x1x32xf32> to vector<1x32xf32>
    %697 = vector.broadcast %696 : vector<1x32xf32> to vector<2x32xf32>
    %698 = arith.addf %694, %697 : vector<2x32xf32>
    %c2_505 = arith.constant 2 : index
    %c0_506 = arith.constant 0 : index
    %c0_507 = arith.constant 0 : index
    %699 = vector.load %arg1[%c2_505, %c0_506, %c0_507] : memref<4x16x32xf32, #tpu.memory_space<vmem>>, vector<1x16x32xf32>
    %700 = vector.shape_cast %699 : vector<1x16x32xf32> to vector<16x32xf32>
    %cst_508 = arith.constant dense<0.000000e+00> : vector<2x32xf32>
    %701 = tpu.matmul %676, %700, %cst_508 {dimension_numbers = #tpu.dot_dimension_numbers<[1], [0], [0], [1], [0, 0, 1, 1], [], []>} : vector<2x16xf32>, vector<16x32xf32>, vector<2x32xf32> -> vector<2x32xf32>
    %c2_509 = arith.constant 2 : index
    %c0_510 = arith.constant 0 : index
    %c0_511 = arith.constant 0 : index
    %702 = vector.load %arg2[%c2_509, %c0_510, %c0_511] : memref<4x32x32xf32, #tpu.memory_space<vmem>>, vector<1x32x32xf32>
    %703 = vector.shape_cast %702 : vector<1x32x32xf32> to vector<32x32xf32>
    %cst_512 = arith.constant dense<0.000000e+00> : vector<2x32xf32>
    %704 = tpu.matmul %607, %703, %cst_512 {dimension_numbers = #tpu.dot_dimension_numbers<[1], [0], [0], [1], [0, 0, 1, 1], [], []>} : vector<2x32xf32>, vector<32x32xf32>, vector<2x32xf32> -> vector<2x32xf32>
    %705 = arith.addf %701, %704 : vector<2x32xf32>
    %c2_513 = arith.constant 2 : index
    %c0_514 = arith.constant 0 : index
    %c0_515 = arith.constant 0 : index
    %706 = vector.load %arg3[%c2_513, %c0_514, %c0_515] : memref<4x1x32xf32, #tpu.memory_space<vmem>>, vector<1x1x32xf32>
    %707 = vector.shape_cast %706 : vector<1x1x32xf32> to vector<1x32xf32>
    %708 = vector.broadcast %707 : vector<1x32xf32> to vector<2x32xf32>
    %709 = arith.addf %705, %708 : vector<2x32xf32>
    %c3_516 = arith.constant 3 : index
    %c0_517 = arith.constant 0 : index
    %c0_518 = arith.constant 0 : index
    %710 = vector.load %arg1[%c3_516, %c0_517, %c0_518] : memref<4x16x32xf32, #tpu.memory_space<vmem>>, vector<1x16x32xf32>
    %711 = vector.shape_cast %710 : vector<1x16x32xf32> to vector<16x32xf32>
    %cst_519 = arith.constant dense<0.000000e+00> : vector<2x32xf32>
    %712 = tpu.matmul %676, %711, %cst_519 {dimension_numbers = #tpu.dot_dimension_numbers<[1], [0], [0], [1], [0, 0, 1, 1], [], []>} : vector<2x16xf32>, vector<16x32xf32>, vector<2x32xf32> -> vector<2x32xf32>
    %c3_520 = arith.constant 3 : index
    %c0_521 = arith.constant 0 : index
    %c0_522 = arith.constant 0 : index
    %713 = vector.load %arg2[%c3_520, %c0_521, %c0_522] : memref<4x32x32xf32, #tpu.memory_space<vmem>>, vector<1x32x32xf32>
    %714 = vector.shape_cast %713 : vector<1x32x32xf32> to vector<32x32xf32>
    %cst_523 = arith.constant dense<0.000000e+00> : vector<2x32xf32>
    %715 = tpu.matmul %607, %714, %cst_523 {dimension_numbers = #tpu.dot_dimension_numbers<[1], [0], [0], [1], [0, 0, 1, 1], [], []>} : vector<2x32xf32>, vector<32x32xf32>, vector<2x32xf32> -> vector<2x32xf32>
    %716 = arith.addf %712, %715 : vector<2x32xf32>
    %c3_524 = arith.constant 3 : index
    %c0_525 = arith.constant 0 : index
    %c0_526 = arith.constant 0 : index
    %717 = vector.load %arg3[%c3_524, %c0_525, %c0_526] : memref<4x1x32xf32, #tpu.memory_space<vmem>>, vector<1x1x32xf32>
    %718 = vector.shape_cast %717 : vector<1x1x32xf32> to vector<1x32xf32>
    %719 = vector.broadcast %718 : vector<1x32xf32> to vector<2x32xf32>
    %720 = arith.addf %716, %719 : vector<2x32xf32>
    %721 = arith.negf %687 : vector<2x32xf32>
    %722 = math.exp %721 : vector<2x32xf32>
    %cst_527 = arith.constant 1.000000e+00 : f32
    %723 = vector.broadcast %cst_527 : f32 to vector<2x32xf32>
    %724 = arith.addf %723, %722 : vector<2x32xf32>
    %725 = arith.divf %723, %724 : vector<2x32xf32>
    %726 = arith.negf %698 : vector<2x32xf32>
    %727 = math.exp %726 : vector<2x32xf32>
    %cst_528 = arith.constant 1.000000e+00 : f32
    %728 = vector.broadcast %cst_528 : f32 to vector<2x32xf32>
    %729 = arith.addf %728, %727 : vector<2x32xf32>
    %730 = arith.divf %728, %729 : vector<2x32xf32>
    %731 = math.tanh %709 : vector<2x32xf32>
    %732 = arith.negf %720 : vector<2x32xf32>
    %733 = math.exp %732 : vector<2x32xf32>
    %cst_529 = arith.constant 1.000000e+00 : f32
    %734 = vector.broadcast %cst_529 : f32 to vector<2x32xf32>
    %735 = arith.addf %734, %733 : vector<2x32xf32>
    %736 = arith.divf %734, %735 : vector<2x32xf32>
    %737 = arith.mulf %730, %605 : vector<2x32xf32>
    %738 = arith.mulf %725, %731 : vector<2x32xf32>
    %739 = arith.addf %737, %738 : vector<2x32xf32>
    %740 = math.tanh %739 : vector<2x32xf32>
    %741 = arith.mulf %736, %740 : vector<2x32xf32>
    %c0_530 = arith.constant 0 : index
    %c0_531 = arith.constant 0 : index
    %c0_532 = arith.constant 0 : index
    %742 = vector.load %arg4[%c0_530, %c0_531, %c0_532] : memref<4x32x32xf32, #tpu.memory_space<vmem>>, vector<1x32x32xf32>
    %743 = vector.shape_cast %742 : vector<1x32x32xf32> to vector<32x32xf32>
    %cst_533 = arith.constant dense<0.000000e+00> : vector<2x32xf32>
    %744 = tpu.matmul %741, %743, %cst_533 {dimension_numbers = #tpu.dot_dimension_numbers<[1], [0], [0], [1], [0, 0, 1, 1], [], []>} : vector<2x32xf32>, vector<32x32xf32>, vector<2x32xf32> -> vector<2x32xf32>
    %c0_534 = arith.constant 0 : index
    %c0_535 = arith.constant 0 : index
    %c0_536 = arith.constant 0 : index
    %745 = vector.load %arg5[%c0_534, %c0_535, %c0_536] : memref<4x32x32xf32, #tpu.memory_space<vmem>>, vector<1x32x32xf32>
    %746 = vector.shape_cast %745 : vector<1x32x32xf32> to vector<32x32xf32>
    %cst_537 = arith.constant dense<0.000000e+00> : vector<2x32xf32>
    %747 = tpu.matmul %672, %746, %cst_537 {dimension_numbers = #tpu.dot_dimension_numbers<[1], [0], [0], [1], [0, 0, 1, 1], [], []>} : vector<2x32xf32>, vector<32x32xf32>, vector<2x32xf32> -> vector<2x32xf32>
    %748 = arith.addf %744, %747 : vector<2x32xf32>
    %c0_538 = arith.constant 0 : index
    %c0_539 = arith.constant 0 : index
    %c0_540 = arith.constant 0 : index
    %749 = vector.load %arg6[%c0_538, %c0_539, %c0_540] : memref<4x1x32xf32, #tpu.memory_space<vmem>>, vector<1x1x32xf32>
    %750 = vector.shape_cast %749 : vector<1x1x32xf32> to vector<1x32xf32>
    %751 = vector.broadcast %750 : vector<1x32xf32> to vector<2x32xf32>
    %752 = arith.addf %748, %751 : vector<2x32xf32>
    %c1_541 = arith.constant 1 : index
    %c0_542 = arith.constant 0 : index
    %c0_543 = arith.constant 0 : index
    %753 = vector.load %arg4[%c1_541, %c0_542, %c0_543] : memref<4x32x32xf32, #tpu.memory_space<vmem>>, vector<1x32x32xf32>
    %754 = vector.shape_cast %753 : vector<1x32x32xf32> to vector<32x32xf32>
    %cst_544 = arith.constant dense<0.000000e+00> : vector<2x32xf32>
    %755 = tpu.matmul %741, %754, %cst_544 {dimension_numbers = #tpu.dot_dimension_numbers<[1], [0], [0], [1], [0, 0, 1, 1], [], []>} : vector<2x32xf32>, vector<32x32xf32>, vector<2x32xf32> -> vector<2x32xf32>
    %c1_545 = arith.constant 1 : index
    %c0_546 = arith.constant 0 : index
    %c0_547 = arith.constant 0 : index
    %756 = vector.load %arg5[%c1_545, %c0_546, %c0_547] : memref<4x32x32xf32, #tpu.memory_space<vmem>>, vector<1x32x32xf32>
    %757 = vector.shape_cast %756 : vector<1x32x32xf32> to vector<32x32xf32>
    %cst_548 = arith.constant dense<0.000000e+00> : vector<2x32xf32>
    %758 = tpu.matmul %672, %757, %cst_548 {dimension_numbers = #tpu.dot_dimension_numbers<[1], [0], [0], [1], [0, 0, 1, 1], [], []>} : vector<2x32xf32>, vector<32x32xf32>, vector<2x32xf32> -> vector<2x32xf32>
    %759 = arith.addf %755, %758 : vector<2x32xf32>
    %c1_549 = arith.constant 1 : index
    %c0_550 = arith.constant 0 : index
    %c0_551 = arith.constant 0 : index
    %760 = vector.load %arg6[%c1_549, %c0_550, %c0_551] : memref<4x1x32xf32, #tpu.memory_space<vmem>>, vector<1x1x32xf32>
    %761 = vector.shape_cast %760 : vector<1x1x32xf32> to vector<1x32xf32>
    %762 = vector.broadcast %761 : vector<1x32xf32> to vector<2x32xf32>
    %763 = arith.addf %759, %762 : vector<2x32xf32>
    %c2_552 = arith.constant 2 : index
    %c0_553 = arith.constant 0 : index
    %c0_554 = arith.constant 0 : index
    %764 = vector.load %arg4[%c2_552, %c0_553, %c0_554] : memref<4x32x32xf32, #tpu.memory_space<vmem>>, vector<1x32x32xf32>
    %765 = vector.shape_cast %764 : vector<1x32x32xf32> to vector<32x32xf32>
    %cst_555 = arith.constant dense<0.000000e+00> : vector<2x32xf32>
    %766 = tpu.matmul %741, %765, %cst_555 {dimension_numbers = #tpu.dot_dimension_numbers<[1], [0], [0], [1], [0, 0, 1, 1], [], []>} : vector<2x32xf32>, vector<32x32xf32>, vector<2x32xf32> -> vector<2x32xf32>
    %c2_556 = arith.constant 2 : index
    %c0_557 = arith.constant 0 : index
    %c0_558 = arith.constant 0 : index
    %767 = vector.load %arg5[%c2_556, %c0_557, %c0_558] : memref<4x32x32xf32, #tpu.memory_space<vmem>>, vector<1x32x32xf32>
    %768 = vector.shape_cast %767 : vector<1x32x32xf32> to vector<32x32xf32>
    %cst_559 = arith.constant dense<0.000000e+00> : vector<2x32xf32>
    %769 = tpu.matmul %672, %768, %cst_559 {dimension_numbers = #tpu.dot_dimension_numbers<[1], [0], [0], [1], [0, 0, 1, 1], [], []>} : vector<2x32xf32>, vector<32x32xf32>, vector<2x32xf32> -> vector<2x32xf32>
    %770 = arith.addf %766, %769 : vector<2x32xf32>
    %c2_560 = arith.constant 2 : index
    %c0_561 = arith.constant 0 : index
    %c0_562 = arith.constant 0 : index
    %771 = vector.load %arg6[%c2_560, %c0_561, %c0_562] : memref<4x1x32xf32, #tpu.memory_space<vmem>>, vector<1x1x32xf32>
    %772 = vector.shape_cast %771 : vector<1x1x32xf32> to vector<1x32xf32>
    %773 = vector.broadcast %772 : vector<1x32xf32> to vector<2x32xf32>
    %774 = arith.addf %770, %773 : vector<2x32xf32>
    %c3_563 = arith.constant 3 : index
    %c0_564 = arith.constant 0 : index
    %c0_565 = arith.constant 0 : index
    %775 = vector.load %arg4[%c3_563, %c0_564, %c0_565] : memref<4x32x32xf32, #tpu.memory_space<vmem>>, vector<1x32x32xf32>
    %776 = vector.shape_cast %775 : vector<1x32x32xf32> to vector<32x32xf32>
    %cst_566 = arith.constant dense<0.000000e+00> : vector<2x32xf32>
    %777 = tpu.matmul %741, %776, %cst_566 {dimension_numbers = #tpu.dot_dimension_numbers<[1], [0], [0], [1], [0, 0, 1, 1], [], []>} : vector<2x32xf32>, vector<32x32xf32>, vector<2x32xf32> -> vector<2x32xf32>
    %c3_567 = arith.constant 3 : index
    %c0_568 = arith.constant 0 : index
    %c0_569 = arith.constant 0 : index
    %778 = vector.load %arg5[%c3_567, %c0_568, %c0_569] : memref<4x32x32xf32, #tpu.memory_space<vmem>>, vector<1x32x32xf32>
    %779 = vector.shape_cast %778 : vector<1x32x32xf32> to vector<32x32xf32>
    %cst_570 = arith.constant dense<0.000000e+00> : vector<2x32xf32>
    %780 = tpu.matmul %672, %779, %cst_570 {dimension_numbers = #tpu.dot_dimension_numbers<[1], [0], [0], [1], [0, 0, 1, 1], [], []>} : vector<2x32xf32>, vector<32x32xf32>, vector<2x32xf32> -> vector<2x32xf32>
    %781 = arith.addf %777, %780 : vector<2x32xf32>
    %c3_571 = arith.constant 3 : index
    %c0_572 = arith.constant 0 : index
    %c0_573 = arith.constant 0 : index
    %782 = vector.load %arg6[%c3_571, %c0_572, %c0_573] : memref<4x1x32xf32, #tpu.memory_space<vmem>>, vector<1x1x32xf32>
    %783 = vector.shape_cast %782 : vector<1x1x32xf32> to vector<1x32xf32>
    %784 = vector.broadcast %783 : vector<1x32xf32> to vector<2x32xf32>
    %785 = arith.addf %781, %784 : vector<2x32xf32>
    %786 = arith.negf %752 : vector<2x32xf32>
    %787 = math.exp %786 : vector<2x32xf32>
    %cst_574 = arith.constant 1.000000e+00 : f32
    %788 = vector.broadcast %cst_574 : f32 to vector<2x32xf32>
    %789 = arith.addf %788, %787 : vector<2x32xf32>
    %790 = arith.divf %788, %789 : vector<2x32xf32>
    %791 = arith.negf %763 : vector<2x32xf32>
    %792 = math.exp %791 : vector<2x32xf32>
    %cst_575 = arith.constant 1.000000e+00 : f32
    %793 = vector.broadcast %cst_575 : f32 to vector<2x32xf32>
    %794 = arith.addf %793, %792 : vector<2x32xf32>
    %795 = arith.divf %793, %794 : vector<2x32xf32>
    %796 = math.tanh %774 : vector<2x32xf32>
    %797 = arith.negf %785 : vector<2x32xf32>
    %798 = math.exp %797 : vector<2x32xf32>
    %cst_576 = arith.constant 1.000000e+00 : f32
    %799 = vector.broadcast %cst_576 : f32 to vector<2x32xf32>
    %800 = arith.addf %799, %798 : vector<2x32xf32>
    %801 = arith.divf %799, %800 : vector<2x32xf32>
    %802 = arith.mulf %795, %670 : vector<2x32xf32>
    %803 = arith.mulf %790, %796 : vector<2x32xf32>
    %804 = arith.addf %802, %803 : vector<2x32xf32>
    %805 = math.tanh %804 : vector<2x32xf32>
    %806 = arith.mulf %801, %805 : vector<2x32xf32>
    %c160 = arith.constant 160 : index
    %c0_577 = arith.constant 0 : index
    %807 = vector.load %arg7[%c160, %c0_577] : memref<256x16xf32, #tpu.memory_space<vmem>>, vector<32x16xf32>
    %cst_578 = arith.constant dense<0.000000e+00> : vector<2x16xf32>
    %808 = tpu.matmul %806, %807, %cst_578 {dimension_numbers = #tpu.dot_dimension_numbers<[1], [0], [0], [1], [0, 0, 1, 1], [], []>} : vector<2x32xf32>, vector<32x16xf32>, vector<2x16xf32> -> vector<2x16xf32>
    %809 = arith.addf %675, %808 : vector<2x16xf32>
    %810 = vector.extract_strided_slice %0 {offsets = [0, 96], sizes = [2, 16], strides = [1, 1]} : vector<2x128xf32> to vector<2x16xf32>
    %c0_579 = arith.constant 0 : index
    %c0_580 = arith.constant 0 : index
    %c0_581 = arith.constant 0 : index
    %811 = vector.load %arg1[%c0_579, %c0_580, %c0_581] : memref<4x16x32xf32, #tpu.memory_space<vmem>>, vector<1x16x32xf32>
    %812 = vector.shape_cast %811 : vector<1x16x32xf32> to vector<16x32xf32>
    %cst_582 = arith.constant dense<0.000000e+00> : vector<2x32xf32>
    %813 = tpu.matmul %810, %812, %cst_582 {dimension_numbers = #tpu.dot_dimension_numbers<[1], [0], [0], [1], [0, 0, 1, 1], [], []>} : vector<2x16xf32>, vector<16x32xf32>, vector<2x32xf32> -> vector<2x32xf32>
    %c0_583 = arith.constant 0 : index
    %c0_584 = arith.constant 0 : index
    %c0_585 = arith.constant 0 : index
    %814 = vector.load %arg2[%c0_583, %c0_584, %c0_585] : memref<4x32x32xf32, #tpu.memory_space<vmem>>, vector<1x32x32xf32>
    %815 = vector.shape_cast %814 : vector<1x32x32xf32> to vector<32x32xf32>
    %cst_586 = arith.constant dense<0.000000e+00> : vector<2x32xf32>
    %816 = tpu.matmul %741, %815, %cst_586 {dimension_numbers = #tpu.dot_dimension_numbers<[1], [0], [0], [1], [0, 0, 1, 1], [], []>} : vector<2x32xf32>, vector<32x32xf32>, vector<2x32xf32> -> vector<2x32xf32>
    %817 = arith.addf %813, %816 : vector<2x32xf32>
    %c0_587 = arith.constant 0 : index
    %c0_588 = arith.constant 0 : index
    %c0_589 = arith.constant 0 : index
    %818 = vector.load %arg3[%c0_587, %c0_588, %c0_589] : memref<4x1x32xf32, #tpu.memory_space<vmem>>, vector<1x1x32xf32>
    %819 = vector.shape_cast %818 : vector<1x1x32xf32> to vector<1x32xf32>
    %820 = vector.broadcast %819 : vector<1x32xf32> to vector<2x32xf32>
    %821 = arith.addf %817, %820 : vector<2x32xf32>
    %c1_590 = arith.constant 1 : index
    %c0_591 = arith.constant 0 : index
    %c0_592 = arith.constant 0 : index
    %822 = vector.load %arg1[%c1_590, %c0_591, %c0_592] : memref<4x16x32xf32, #tpu.memory_space<vmem>>, vector<1x16x32xf32>
    %823 = vector.shape_cast %822 : vector<1x16x32xf32> to vector<16x32xf32>
    %cst_593 = arith.constant dense<0.000000e+00> : vector<2x32xf32>
    %824 = tpu.matmul %810, %823, %cst_593 {dimension_numbers = #tpu.dot_dimension_numbers<[1], [0], [0], [1], [0, 0, 1, 1], [], []>} : vector<2x16xf32>, vector<16x32xf32>, vector<2x32xf32> -> vector<2x32xf32>
    %c1_594 = arith.constant 1 : index
    %c0_595 = arith.constant 0 : index
    %c0_596 = arith.constant 0 : index
    %825 = vector.load %arg2[%c1_594, %c0_595, %c0_596] : memref<4x32x32xf32, #tpu.memory_space<vmem>>, vector<1x32x32xf32>
    %826 = vector.shape_cast %825 : vector<1x32x32xf32> to vector<32x32xf32>
    %cst_597 = arith.constant dense<0.000000e+00> : vector<2x32xf32>
    %827 = tpu.matmul %741, %826, %cst_597 {dimension_numbers = #tpu.dot_dimension_numbers<[1], [0], [0], [1], [0, 0, 1, 1], [], []>} : vector<2x32xf32>, vector<32x32xf32>, vector<2x32xf32> -> vector<2x32xf32>
    %828 = arith.addf %824, %827 : vector<2x32xf32>
    %c1_598 = arith.constant 1 : index
    %c0_599 = arith.constant 0 : index
    %c0_600 = arith.constant 0 : index
    %829 = vector.load %arg3[%c1_598, %c0_599, %c0_600] : memref<4x1x32xf32, #tpu.memory_space<vmem>>, vector<1x1x32xf32>
    %830 = vector.shape_cast %829 : vector<1x1x32xf32> to vector<1x32xf32>
    %831 = vector.broadcast %830 : vector<1x32xf32> to vector<2x32xf32>
    %832 = arith.addf %828, %831 : vector<2x32xf32>
    %c2_601 = arith.constant 2 : index
    %c0_602 = arith.constant 0 : index
    %c0_603 = arith.constant 0 : index
    %833 = vector.load %arg1[%c2_601, %c0_602, %c0_603] : memref<4x16x32xf32, #tpu.memory_space<vmem>>, vector<1x16x32xf32>
    %834 = vector.shape_cast %833 : vector<1x16x32xf32> to vector<16x32xf32>
    %cst_604 = arith.constant dense<0.000000e+00> : vector<2x32xf32>
    %835 = tpu.matmul %810, %834, %cst_604 {dimension_numbers = #tpu.dot_dimension_numbers<[1], [0], [0], [1], [0, 0, 1, 1], [], []>} : vector<2x16xf32>, vector<16x32xf32>, vector<2x32xf32> -> vector<2x32xf32>
    %c2_605 = arith.constant 2 : index
    %c0_606 = arith.constant 0 : index
    %c0_607 = arith.constant 0 : index
    %836 = vector.load %arg2[%c2_605, %c0_606, %c0_607] : memref<4x32x32xf32, #tpu.memory_space<vmem>>, vector<1x32x32xf32>
    %837 = vector.shape_cast %836 : vector<1x32x32xf32> to vector<32x32xf32>
    %cst_608 = arith.constant dense<0.000000e+00> : vector<2x32xf32>
    %838 = tpu.matmul %741, %837, %cst_608 {dimension_numbers = #tpu.dot_dimension_numbers<[1], [0], [0], [1], [0, 0, 1, 1], [], []>} : vector<2x32xf32>, vector<32x32xf32>, vector<2x32xf32> -> vector<2x32xf32>
    %839 = arith.addf %835, %838 : vector<2x32xf32>
    %c2_609 = arith.constant 2 : index
    %c0_610 = arith.constant 0 : index
    %c0_611 = arith.constant 0 : index
    %840 = vector.load %arg3[%c2_609, %c0_610, %c0_611] : memref<4x1x32xf32, #tpu.memory_space<vmem>>, vector<1x1x32xf32>
    %841 = vector.shape_cast %840 : vector<1x1x32xf32> to vector<1x32xf32>
    %842 = vector.broadcast %841 : vector<1x32xf32> to vector<2x32xf32>
    %843 = arith.addf %839, %842 : vector<2x32xf32>
    %c3_612 = arith.constant 3 : index
    %c0_613 = arith.constant 0 : index
    %c0_614 = arith.constant 0 : index
    %844 = vector.load %arg1[%c3_612, %c0_613, %c0_614] : memref<4x16x32xf32, #tpu.memory_space<vmem>>, vector<1x16x32xf32>
    %845 = vector.shape_cast %844 : vector<1x16x32xf32> to vector<16x32xf32>
    %cst_615 = arith.constant dense<0.000000e+00> : vector<2x32xf32>
    %846 = tpu.matmul %810, %845, %cst_615 {dimension_numbers = #tpu.dot_dimension_numbers<[1], [0], [0], [1], [0, 0, 1, 1], [], []>} : vector<2x16xf32>, vector<16x32xf32>, vector<2x32xf32> -> vector<2x32xf32>
    %c3_616 = arith.constant 3 : index
    %c0_617 = arith.constant 0 : index
    %c0_618 = arith.constant 0 : index
    %847 = vector.load %arg2[%c3_616, %c0_617, %c0_618] : memref<4x32x32xf32, #tpu.memory_space<vmem>>, vector<1x32x32xf32>
    %848 = vector.shape_cast %847 : vector<1x32x32xf32> to vector<32x32xf32>
    %cst_619 = arith.constant dense<0.000000e+00> : vector<2x32xf32>
    %849 = tpu.matmul %741, %848, %cst_619 {dimension_numbers = #tpu.dot_dimension_numbers<[1], [0], [0], [1], [0, 0, 1, 1], [], []>} : vector<2x32xf32>, vector<32x32xf32>, vector<2x32xf32> -> vector<2x32xf32>
    %850 = arith.addf %846, %849 : vector<2x32xf32>
    %c3_620 = arith.constant 3 : index
    %c0_621 = arith.constant 0 : index
    %c0_622 = arith.constant 0 : index
    %851 = vector.load %arg3[%c3_620, %c0_621, %c0_622] : memref<4x1x32xf32, #tpu.memory_space<vmem>>, vector<1x1x32xf32>
    %852 = vector.shape_cast %851 : vector<1x1x32xf32> to vector<1x32xf32>
    %853 = vector.broadcast %852 : vector<1x32xf32> to vector<2x32xf32>
    %854 = arith.addf %850, %853 : vector<2x32xf32>
    %855 = arith.negf %821 : vector<2x32xf32>
    %856 = math.exp %855 : vector<2x32xf32>
    %cst_623 = arith.constant 1.000000e+00 : f32
    %857 = vector.broadcast %cst_623 : f32 to vector<2x32xf32>
    %858 = arith.addf %857, %856 : vector<2x32xf32>
    %859 = arith.divf %857, %858 : vector<2x32xf32>
    %860 = arith.negf %832 : vector<2x32xf32>
    %861 = math.exp %860 : vector<2x32xf32>
    %cst_624 = arith.constant 1.000000e+00 : f32
    %862 = vector.broadcast %cst_624 : f32 to vector<2x32xf32>
    %863 = arith.addf %862, %861 : vector<2x32xf32>
    %864 = arith.divf %862, %863 : vector<2x32xf32>
    %865 = math.tanh %843 : vector<2x32xf32>
    %866 = arith.negf %854 : vector<2x32xf32>
    %867 = math.exp %866 : vector<2x32xf32>
    %cst_625 = arith.constant 1.000000e+00 : f32
    %868 = vector.broadcast %cst_625 : f32 to vector<2x32xf32>
    %869 = arith.addf %868, %867 : vector<2x32xf32>
    %870 = arith.divf %868, %869 : vector<2x32xf32>
    %871 = arith.mulf %864, %739 : vector<2x32xf32>
    %872 = arith.mulf %859, %865 : vector<2x32xf32>
    %873 = arith.addf %871, %872 : vector<2x32xf32>
    %874 = math.tanh %873 : vector<2x32xf32>
    %875 = arith.mulf %870, %874 : vector<2x32xf32>
    %c0_626 = arith.constant 0 : index
    %c0_627 = arith.constant 0 : index
    %c0_628 = arith.constant 0 : index
    %876 = vector.load %arg4[%c0_626, %c0_627, %c0_628] : memref<4x32x32xf32, #tpu.memory_space<vmem>>, vector<1x32x32xf32>
    %877 = vector.shape_cast %876 : vector<1x32x32xf32> to vector<32x32xf32>
    %cst_629 = arith.constant dense<0.000000e+00> : vector<2x32xf32>
    %878 = tpu.matmul %875, %877, %cst_629 {dimension_numbers = #tpu.dot_dimension_numbers<[1], [0], [0], [1], [0, 0, 1, 1], [], []>} : vector<2x32xf32>, vector<32x32xf32>, vector<2x32xf32> -> vector<2x32xf32>
    %c0_630 = arith.constant 0 : index
    %c0_631 = arith.constant 0 : index
    %c0_632 = arith.constant 0 : index
    %879 = vector.load %arg5[%c0_630, %c0_631, %c0_632] : memref<4x32x32xf32, #tpu.memory_space<vmem>>, vector<1x32x32xf32>
    %880 = vector.shape_cast %879 : vector<1x32x32xf32> to vector<32x32xf32>
    %cst_633 = arith.constant dense<0.000000e+00> : vector<2x32xf32>
    %881 = tpu.matmul %806, %880, %cst_633 {dimension_numbers = #tpu.dot_dimension_numbers<[1], [0], [0], [1], [0, 0, 1, 1], [], []>} : vector<2x32xf32>, vector<32x32xf32>, vector<2x32xf32> -> vector<2x32xf32>
    %882 = arith.addf %878, %881 : vector<2x32xf32>
    %c0_634 = arith.constant 0 : index
    %c0_635 = arith.constant 0 : index
    %c0_636 = arith.constant 0 : index
    %883 = vector.load %arg6[%c0_634, %c0_635, %c0_636] : memref<4x1x32xf32, #tpu.memory_space<vmem>>, vector<1x1x32xf32>
    %884 = vector.shape_cast %883 : vector<1x1x32xf32> to vector<1x32xf32>
    %885 = vector.broadcast %884 : vector<1x32xf32> to vector<2x32xf32>
    %886 = arith.addf %882, %885 : vector<2x32xf32>
    %c1_637 = arith.constant 1 : index
    %c0_638 = arith.constant 0 : index
    %c0_639 = arith.constant 0 : index
    %887 = vector.load %arg4[%c1_637, %c0_638, %c0_639] : memref<4x32x32xf32, #tpu.memory_space<vmem>>, vector<1x32x32xf32>
    %888 = vector.shape_cast %887 : vector<1x32x32xf32> to vector<32x32xf32>
    %cst_640 = arith.constant dense<0.000000e+00> : vector<2x32xf32>
    %889 = tpu.matmul %875, %888, %cst_640 {dimension_numbers = #tpu.dot_dimension_numbers<[1], [0], [0], [1], [0, 0, 1, 1], [], []>} : vector<2x32xf32>, vector<32x32xf32>, vector<2x32xf32> -> vector<2x32xf32>
    %c1_641 = arith.constant 1 : index
    %c0_642 = arith.constant 0 : index
    %c0_643 = arith.constant 0 : index
    %890 = vector.load %arg5[%c1_641, %c0_642, %c0_643] : memref<4x32x32xf32, #tpu.memory_space<vmem>>, vector<1x32x32xf32>
    %891 = vector.shape_cast %890 : vector<1x32x32xf32> to vector<32x32xf32>
    %cst_644 = arith.constant dense<0.000000e+00> : vector<2x32xf32>
    %892 = tpu.matmul %806, %891, %cst_644 {dimension_numbers = #tpu.dot_dimension_numbers<[1], [0], [0], [1], [0, 0, 1, 1], [], []>} : vector<2x32xf32>, vector<32x32xf32>, vector<2x32xf32> -> vector<2x32xf32>
    %893 = arith.addf %889, %892 : vector<2x32xf32>
    %c1_645 = arith.constant 1 : index
    %c0_646 = arith.constant 0 : index
    %c0_647 = arith.constant 0 : index
    %894 = vector.load %arg6[%c1_645, %c0_646, %c0_647] : memref<4x1x32xf32, #tpu.memory_space<vmem>>, vector<1x1x32xf32>
    %895 = vector.shape_cast %894 : vector<1x1x32xf32> to vector<1x32xf32>
    %896 = vector.broadcast %895 : vector<1x32xf32> to vector<2x32xf32>
    %897 = arith.addf %893, %896 : vector<2x32xf32>
    %c2_648 = arith.constant 2 : index
    %c0_649 = arith.constant 0 : index
    %c0_650 = arith.constant 0 : index
    %898 = vector.load %arg4[%c2_648, %c0_649, %c0_650] : memref<4x32x32xf32, #tpu.memory_space<vmem>>, vector<1x32x32xf32>
    %899 = vector.shape_cast %898 : vector<1x32x32xf32> to vector<32x32xf32>
    %cst_651 = arith.constant dense<0.000000e+00> : vector<2x32xf32>
    %900 = tpu.matmul %875, %899, %cst_651 {dimension_numbers = #tpu.dot_dimension_numbers<[1], [0], [0], [1], [0, 0, 1, 1], [], []>} : vector<2x32xf32>, vector<32x32xf32>, vector<2x32xf32> -> vector<2x32xf32>
    %c2_652 = arith.constant 2 : index
    %c0_653 = arith.constant 0 : index
    %c0_654 = arith.constant 0 : index
    %901 = vector.load %arg5[%c2_652, %c0_653, %c0_654] : memref<4x32x32xf32, #tpu.memory_space<vmem>>, vector<1x32x32xf32>
    %902 = vector.shape_cast %901 : vector<1x32x32xf32> to vector<32x32xf32>
    %cst_655 = arith.constant dense<0.000000e+00> : vector<2x32xf32>
    %903 = tpu.matmul %806, %902, %cst_655 {dimension_numbers = #tpu.dot_dimension_numbers<[1], [0], [0], [1], [0, 0, 1, 1], [], []>} : vector<2x32xf32>, vector<32x32xf32>, vector<2x32xf32> -> vector<2x32xf32>
    %904 = arith.addf %900, %903 : vector<2x32xf32>
    %c2_656 = arith.constant 2 : index
    %c0_657 = arith.constant 0 : index
    %c0_658 = arith.constant 0 : index
    %905 = vector.load %arg6[%c2_656, %c0_657, %c0_658] : memref<4x1x32xf32, #tpu.memory_space<vmem>>, vector<1x1x32xf32>
    %906 = vector.shape_cast %905 : vector<1x1x32xf32> to vector<1x32xf32>
    %907 = vector.broadcast %906 : vector<1x32xf32> to vector<2x32xf32>
    %908 = arith.addf %904, %907 : vector<2x32xf32>
    %c3_659 = arith.constant 3 : index
    %c0_660 = arith.constant 0 : index
    %c0_661 = arith.constant 0 : index
    %909 = vector.load %arg4[%c3_659, %c0_660, %c0_661] : memref<4x32x32xf32, #tpu.memory_space<vmem>>, vector<1x32x32xf32>
    %910 = vector.shape_cast %909 : vector<1x32x32xf32> to vector<32x32xf32>
    %cst_662 = arith.constant dense<0.000000e+00> : vector<2x32xf32>
    %911 = tpu.matmul %875, %910, %cst_662 {dimension_numbers = #tpu.dot_dimension_numbers<[1], [0], [0], [1], [0, 0, 1, 1], [], []>} : vector<2x32xf32>, vector<32x32xf32>, vector<2x32xf32> -> vector<2x32xf32>
    %c3_663 = arith.constant 3 : index
    %c0_664 = arith.constant 0 : index
    %c0_665 = arith.constant 0 : index
    %912 = vector.load %arg5[%c3_663, %c0_664, %c0_665] : memref<4x32x32xf32, #tpu.memory_space<vmem>>, vector<1x32x32xf32>
    %913 = vector.shape_cast %912 : vector<1x32x32xf32> to vector<32x32xf32>
    %cst_666 = arith.constant dense<0.000000e+00> : vector<2x32xf32>
    %914 = tpu.matmul %806, %913, %cst_666 {dimension_numbers = #tpu.dot_dimension_numbers<[1], [0], [0], [1], [0, 0, 1, 1], [], []>} : vector<2x32xf32>, vector<32x32xf32>, vector<2x32xf32> -> vector<2x32xf32>
    %915 = arith.addf %911, %914 : vector<2x32xf32>
    %c3_667 = arith.constant 3 : index
    %c0_668 = arith.constant 0 : index
    %c0_669 = arith.constant 0 : index
    %916 = vector.load %arg6[%c3_667, %c0_668, %c0_669] : memref<4x1x32xf32, #tpu.memory_space<vmem>>, vector<1x1x32xf32>
    %917 = vector.shape_cast %916 : vector<1x1x32xf32> to vector<1x32xf32>
    %918 = vector.broadcast %917 : vector<1x32xf32> to vector<2x32xf32>
    %919 = arith.addf %915, %918 : vector<2x32xf32>
    %920 = arith.negf %886 : vector<2x32xf32>
    %921 = math.exp %920 : vector<2x32xf32>
    %cst_670 = arith.constant 1.000000e+00 : f32
    %922 = vector.broadcast %cst_670 : f32 to vector<2x32xf32>
    %923 = arith.addf %922, %921 : vector<2x32xf32>
    %924 = arith.divf %922, %923 : vector<2x32xf32>
    %925 = arith.negf %897 : vector<2x32xf32>
    %926 = math.exp %925 : vector<2x32xf32>
    %cst_671 = arith.constant 1.000000e+00 : f32
    %927 = vector.broadcast %cst_671 : f32 to vector<2x32xf32>
    %928 = arith.addf %927, %926 : vector<2x32xf32>
    %929 = arith.divf %927, %928 : vector<2x32xf32>
    %930 = math.tanh %908 : vector<2x32xf32>
    %931 = arith.negf %919 : vector<2x32xf32>
    %932 = math.exp %931 : vector<2x32xf32>
    %cst_672 = arith.constant 1.000000e+00 : f32
    %933 = vector.broadcast %cst_672 : f32 to vector<2x32xf32>
    %934 = arith.addf %933, %932 : vector<2x32xf32>
    %935 = arith.divf %933, %934 : vector<2x32xf32>
    %936 = arith.mulf %929, %804 : vector<2x32xf32>
    %937 = arith.mulf %924, %930 : vector<2x32xf32>
    %938 = arith.addf %936, %937 : vector<2x32xf32>
    %939 = math.tanh %938 : vector<2x32xf32>
    %940 = arith.mulf %935, %939 : vector<2x32xf32>
    %c192 = arith.constant 192 : index
    %c0_673 = arith.constant 0 : index
    %941 = vector.load %arg7[%c192, %c0_673] : memref<256x16xf32, #tpu.memory_space<vmem>>, vector<32x16xf32>
    %cst_674 = arith.constant dense<0.000000e+00> : vector<2x16xf32>
    %942 = tpu.matmul %940, %941, %cst_674 {dimension_numbers = #tpu.dot_dimension_numbers<[1], [0], [0], [1], [0, 0, 1, 1], [], []>} : vector<2x32xf32>, vector<32x16xf32>, vector<2x16xf32> -> vector<2x16xf32>
    %943 = arith.addf %809, %942 : vector<2x16xf32>
    %944 = vector.extract_strided_slice %0 {offsets = [0, 112], sizes = [2, 16], strides = [1, 1]} : vector<2x128xf32> to vector<2x16xf32>
    %c0_675 = arith.constant 0 : index
    %c0_676 = arith.constant 0 : index
    %c0_677 = arith.constant 0 : index
    %945 = vector.load %arg1[%c0_675, %c0_676, %c0_677] : memref<4x16x32xf32, #tpu.memory_space<vmem>>, vector<1x16x32xf32>
    %946 = vector.shape_cast %945 : vector<1x16x32xf32> to vector<16x32xf32>
    %cst_678 = arith.constant dense<0.000000e+00> : vector<2x32xf32>
    %947 = tpu.matmul %944, %946, %cst_678 {dimension_numbers = #tpu.dot_dimension_numbers<[1], [0], [0], [1], [0, 0, 1, 1], [], []>} : vector<2x16xf32>, vector<16x32xf32>, vector<2x32xf32> -> vector<2x32xf32>
    %c0_679 = arith.constant 0 : index
    %c0_680 = arith.constant 0 : index
    %c0_681 = arith.constant 0 : index
    %948 = vector.load %arg2[%c0_679, %c0_680, %c0_681] : memref<4x32x32xf32, #tpu.memory_space<vmem>>, vector<1x32x32xf32>
    %949 = vector.shape_cast %948 : vector<1x32x32xf32> to vector<32x32xf32>
    %cst_682 = arith.constant dense<0.000000e+00> : vector<2x32xf32>
    %950 = tpu.matmul %875, %949, %cst_682 {dimension_numbers = #tpu.dot_dimension_numbers<[1], [0], [0], [1], [0, 0, 1, 1], [], []>} : vector<2x32xf32>, vector<32x32xf32>, vector<2x32xf32> -> vector<2x32xf32>
    %951 = arith.addf %947, %950 : vector<2x32xf32>
    %c0_683 = arith.constant 0 : index
    %c0_684 = arith.constant 0 : index
    %c0_685 = arith.constant 0 : index
    %952 = vector.load %arg3[%c0_683, %c0_684, %c0_685] : memref<4x1x32xf32, #tpu.memory_space<vmem>>, vector<1x1x32xf32>
    %953 = vector.shape_cast %952 : vector<1x1x32xf32> to vector<1x32xf32>
    %954 = vector.broadcast %953 : vector<1x32xf32> to vector<2x32xf32>
    %955 = arith.addf %951, %954 : vector<2x32xf32>
    %c1_686 = arith.constant 1 : index
    %c0_687 = arith.constant 0 : index
    %c0_688 = arith.constant 0 : index
    %956 = vector.load %arg1[%c1_686, %c0_687, %c0_688] : memref<4x16x32xf32, #tpu.memory_space<vmem>>, vector<1x16x32xf32>
    %957 = vector.shape_cast %956 : vector<1x16x32xf32> to vector<16x32xf32>
    %cst_689 = arith.constant dense<0.000000e+00> : vector<2x32xf32>
    %958 = tpu.matmul %944, %957, %cst_689 {dimension_numbers = #tpu.dot_dimension_numbers<[1], [0], [0], [1], [0, 0, 1, 1], [], []>} : vector<2x16xf32>, vector<16x32xf32>, vector<2x32xf32> -> vector<2x32xf32>
    %c1_690 = arith.constant 1 : index
    %c0_691 = arith.constant 0 : index
    %c0_692 = arith.constant 0 : index
    %959 = vector.load %arg2[%c1_690, %c0_691, %c0_692] : memref<4x32x32xf32, #tpu.memory_space<vmem>>, vector<1x32x32xf32>
    %960 = vector.shape_cast %959 : vector<1x32x32xf32> to vector<32x32xf32>
    %cst_693 = arith.constant dense<0.000000e+00> : vector<2x32xf32>
    %961 = tpu.matmul %875, %960, %cst_693 {dimension_numbers = #tpu.dot_dimension_numbers<[1], [0], [0], [1], [0, 0, 1, 1], [], []>} : vector<2x32xf32>, vector<32x32xf32>, vector<2x32xf32> -> vector<2x32xf32>
    %962 = arith.addf %958, %961 : vector<2x32xf32>
    %c1_694 = arith.constant 1 : index
    %c0_695 = arith.constant 0 : index
    %c0_696 = arith.constant 0 : index
    %963 = vector.load %arg3[%c1_694, %c0_695, %c0_696] : memref<4x1x32xf32, #tpu.memory_space<vmem>>, vector<1x1x32xf32>
    %964 = vector.shape_cast %963 : vector<1x1x32xf32> to vector<1x32xf32>
    %965 = vector.broadcast %964 : vector<1x32xf32> to vector<2x32xf32>
    %966 = arith.addf %962, %965 : vector<2x32xf32>
    %c2_697 = arith.constant 2 : index
    %c0_698 = arith.constant 0 : index
    %c0_699 = arith.constant 0 : index
    %967 = vector.load %arg1[%c2_697, %c0_698, %c0_699] : memref<4x16x32xf32, #tpu.memory_space<vmem>>, vector<1x16x32xf32>
    %968 = vector.shape_cast %967 : vector<1x16x32xf32> to vector<16x32xf32>
    %cst_700 = arith.constant dense<0.000000e+00> : vector<2x32xf32>
    %969 = tpu.matmul %944, %968, %cst_700 {dimension_numbers = #tpu.dot_dimension_numbers<[1], [0], [0], [1], [0, 0, 1, 1], [], []>} : vector<2x16xf32>, vector<16x32xf32>, vector<2x32xf32> -> vector<2x32xf32>
    %c2_701 = arith.constant 2 : index
    %c0_702 = arith.constant 0 : index
    %c0_703 = arith.constant 0 : index
    %970 = vector.load %arg2[%c2_701, %c0_702, %c0_703] : memref<4x32x32xf32, #tpu.memory_space<vmem>>, vector<1x32x32xf32>
    %971 = vector.shape_cast %970 : vector<1x32x32xf32> to vector<32x32xf32>
    %cst_704 = arith.constant dense<0.000000e+00> : vector<2x32xf32>
    %972 = tpu.matmul %875, %971, %cst_704 {dimension_numbers = #tpu.dot_dimension_numbers<[1], [0], [0], [1], [0, 0, 1, 1], [], []>} : vector<2x32xf32>, vector<32x32xf32>, vector<2x32xf32> -> vector<2x32xf32>
    %973 = arith.addf %969, %972 : vector<2x32xf32>
    %c2_705 = arith.constant 2 : index
    %c0_706 = arith.constant 0 : index
    %c0_707 = arith.constant 0 : index
    %974 = vector.load %arg3[%c2_705, %c0_706, %c0_707] : memref<4x1x32xf32, #tpu.memory_space<vmem>>, vector<1x1x32xf32>
    %975 = vector.shape_cast %974 : vector<1x1x32xf32> to vector<1x32xf32>
    %976 = vector.broadcast %975 : vector<1x32xf32> to vector<2x32xf32>
    %977 = arith.addf %973, %976 : vector<2x32xf32>
    %c3_708 = arith.constant 3 : index
    %c0_709 = arith.constant 0 : index
    %c0_710 = arith.constant 0 : index
    %978 = vector.load %arg1[%c3_708, %c0_709, %c0_710] : memref<4x16x32xf32, #tpu.memory_space<vmem>>, vector<1x16x32xf32>
    %979 = vector.shape_cast %978 : vector<1x16x32xf32> to vector<16x32xf32>
    %cst_711 = arith.constant dense<0.000000e+00> : vector<2x32xf32>
    %980 = tpu.matmul %944, %979, %cst_711 {dimension_numbers = #tpu.dot_dimension_numbers<[1], [0], [0], [1], [0, 0, 1, 1], [], []>} : vector<2x16xf32>, vector<16x32xf32>, vector<2x32xf32> -> vector<2x32xf32>
    %c3_712 = arith.constant 3 : index
    %c0_713 = arith.constant 0 : index
    %c0_714 = arith.constant 0 : index
    %981 = vector.load %arg2[%c3_712, %c0_713, %c0_714] : memref<4x32x32xf32, #tpu.memory_space<vmem>>, vector<1x32x32xf32>
    %982 = vector.shape_cast %981 : vector<1x32x32xf32> to vector<32x32xf32>
    %cst_715 = arith.constant dense<0.000000e+00> : vector<2x32xf32>
    %983 = tpu.matmul %875, %982, %cst_715 {dimension_numbers = #tpu.dot_dimension_numbers<[1], [0], [0], [1], [0, 0, 1, 1], [], []>} : vector<2x32xf32>, vector<32x32xf32>, vector<2x32xf32> -> vector<2x32xf32>
    %984 = arith.addf %980, %983 : vector<2x32xf32>
    %c3_716 = arith.constant 3 : index
    %c0_717 = arith.constant 0 : index
    %c0_718 = arith.constant 0 : index
    %985 = vector.load %arg3[%c3_716, %c0_717, %c0_718] : memref<4x1x32xf32, #tpu.memory_space<vmem>>, vector<1x1x32xf32>
    %986 = vector.shape_cast %985 : vector<1x1x32xf32> to vector<1x32xf32>
    %987 = vector.broadcast %986 : vector<1x32xf32> to vector<2x32xf32>
    %988 = arith.addf %984, %987 : vector<2x32xf32>
    %989 = arith.negf %955 : vector<2x32xf32>
    %990 = math.exp %989 : vector<2x32xf32>
    %cst_719 = arith.constant 1.000000e+00 : f32
    %991 = vector.broadcast %cst_719 : f32 to vector<2x32xf32>
    %992 = arith.addf %991, %990 : vector<2x32xf32>
    %993 = arith.divf %991, %992 : vector<2x32xf32>
    %994 = arith.negf %966 : vector<2x32xf32>
    %995 = math.exp %994 : vector<2x32xf32>
    %cst_720 = arith.constant 1.000000e+00 : f32
    %996 = vector.broadcast %cst_720 : f32 to vector<2x32xf32>
    %997 = arith.addf %996, %995 : vector<2x32xf32>
    %998 = arith.divf %996, %997 : vector<2x32xf32>
    %999 = math.tanh %977 : vector<2x32xf32>
    %1000 = arith.negf %988 : vector<2x32xf32>
    %1001 = math.exp %1000 : vector<2x32xf32>
    %cst_721 = arith.constant 1.000000e+00 : f32
    %1002 = vector.broadcast %cst_721 : f32 to vector<2x32xf32>
    %1003 = arith.addf %1002, %1001 : vector<2x32xf32>
    %1004 = arith.divf %1002, %1003 : vector<2x32xf32>
    %1005 = arith.mulf %998, %873 : vector<2x32xf32>
    %1006 = arith.mulf %993, %999 : vector<2x32xf32>
    %1007 = arith.addf %1005, %1006 : vector<2x32xf32>
    %1008 = math.tanh %1007 : vector<2x32xf32>
    %1009 = arith.mulf %1004, %1008 : vector<2x32xf32>
    %c0_722 = arith.constant 0 : index
    %c0_723 = arith.constant 0 : index
    %c0_724 = arith.constant 0 : index
    %1010 = vector.load %arg4[%c0_722, %c0_723, %c0_724] : memref<4x32x32xf32, #tpu.memory_space<vmem>>, vector<1x32x32xf32>
    %1011 = vector.shape_cast %1010 : vector<1x32x32xf32> to vector<32x32xf32>
    %cst_725 = arith.constant dense<0.000000e+00> : vector<2x32xf32>
    %1012 = tpu.matmul %1009, %1011, %cst_725 {dimension_numbers = #tpu.dot_dimension_numbers<[1], [0], [0], [1], [0, 0, 1, 1], [], []>} : vector<2x32xf32>, vector<32x32xf32>, vector<2x32xf32> -> vector<2x32xf32>
    %c0_726 = arith.constant 0 : index
    %c0_727 = arith.constant 0 : index
    %c0_728 = arith.constant 0 : index
    %1013 = vector.load %arg5[%c0_726, %c0_727, %c0_728] : memref<4x32x32xf32, #tpu.memory_space<vmem>>, vector<1x32x32xf32>
    %1014 = vector.shape_cast %1013 : vector<1x32x32xf32> to vector<32x32xf32>
    %cst_729 = arith.constant dense<0.000000e+00> : vector<2x32xf32>
    %1015 = tpu.matmul %940, %1014, %cst_729 {dimension_numbers = #tpu.dot_dimension_numbers<[1], [0], [0], [1], [0, 0, 1, 1], [], []>} : vector<2x32xf32>, vector<32x32xf32>, vector<2x32xf32> -> vector<2x32xf32>
    %1016 = arith.addf %1012, %1015 : vector<2x32xf32>
    %c0_730 = arith.constant 0 : index
    %c0_731 = arith.constant 0 : index
    %c0_732 = arith.constant 0 : index
    %1017 = vector.load %arg6[%c0_730, %c0_731, %c0_732] : memref<4x1x32xf32, #tpu.memory_space<vmem>>, vector<1x1x32xf32>
    %1018 = vector.shape_cast %1017 : vector<1x1x32xf32> to vector<1x32xf32>
    %1019 = vector.broadcast %1018 : vector<1x32xf32> to vector<2x32xf32>
    %1020 = arith.addf %1016, %1019 : vector<2x32xf32>
    %c1_733 = arith.constant 1 : index
    %c0_734 = arith.constant 0 : index
    %c0_735 = arith.constant 0 : index
    %1021 = vector.load %arg4[%c1_733, %c0_734, %c0_735] : memref<4x32x32xf32, #tpu.memory_space<vmem>>, vector<1x32x32xf32>
    %1022 = vector.shape_cast %1021 : vector<1x32x32xf32> to vector<32x32xf32>
    %cst_736 = arith.constant dense<0.000000e+00> : vector<2x32xf32>
    %1023 = tpu.matmul %1009, %1022, %cst_736 {dimension_numbers = #tpu.dot_dimension_numbers<[1], [0], [0], [1], [0, 0, 1, 1], [], []>} : vector<2x32xf32>, vector<32x32xf32>, vector<2x32xf32> -> vector<2x32xf32>
    %c1_737 = arith.constant 1 : index
    %c0_738 = arith.constant 0 : index
    %c0_739 = arith.constant 0 : index
    %1024 = vector.load %arg5[%c1_737, %c0_738, %c0_739] : memref<4x32x32xf32, #tpu.memory_space<vmem>>, vector<1x32x32xf32>
    %1025 = vector.shape_cast %1024 : vector<1x32x32xf32> to vector<32x32xf32>
    %cst_740 = arith.constant dense<0.000000e+00> : vector<2x32xf32>
    %1026 = tpu.matmul %940, %1025, %cst_740 {dimension_numbers = #tpu.dot_dimension_numbers<[1], [0], [0], [1], [0, 0, 1, 1], [], []>} : vector<2x32xf32>, vector<32x32xf32>, vector<2x32xf32> -> vector<2x32xf32>
    %1027 = arith.addf %1023, %1026 : vector<2x32xf32>
    %c1_741 = arith.constant 1 : index
    %c0_742 = arith.constant 0 : index
    %c0_743 = arith.constant 0 : index
    %1028 = vector.load %arg6[%c1_741, %c0_742, %c0_743] : memref<4x1x32xf32, #tpu.memory_space<vmem>>, vector<1x1x32xf32>
    %1029 = vector.shape_cast %1028 : vector<1x1x32xf32> to vector<1x32xf32>
    %1030 = vector.broadcast %1029 : vector<1x32xf32> to vector<2x32xf32>
    %1031 = arith.addf %1027, %1030 : vector<2x32xf32>
    %c2_744 = arith.constant 2 : index
    %c0_745 = arith.constant 0 : index
    %c0_746 = arith.constant 0 : index
    %1032 = vector.load %arg4[%c2_744, %c0_745, %c0_746] : memref<4x32x32xf32, #tpu.memory_space<vmem>>, vector<1x32x32xf32>
    %1033 = vector.shape_cast %1032 : vector<1x32x32xf32> to vector<32x32xf32>
    %cst_747 = arith.constant dense<0.000000e+00> : vector<2x32xf32>
    %1034 = tpu.matmul %1009, %1033, %cst_747 {dimension_numbers = #tpu.dot_dimension_numbers<[1], [0], [0], [1], [0, 0, 1, 1], [], []>} : vector<2x32xf32>, vector<32x32xf32>, vector<2x32xf32> -> vector<2x32xf32>
    %c2_748 = arith.constant 2 : index
    %c0_749 = arith.constant 0 : index
    %c0_750 = arith.constant 0 : index
    %1035 = vector.load %arg5[%c2_748, %c0_749, %c0_750] : memref<4x32x32xf32, #tpu.memory_space<vmem>>, vector<1x32x32xf32>
    %1036 = vector.shape_cast %1035 : vector<1x32x32xf32> to vector<32x32xf32>
    %cst_751 = arith.constant dense<0.000000e+00> : vector<2x32xf32>
    %1037 = tpu.matmul %940, %1036, %cst_751 {dimension_numbers = #tpu.dot_dimension_numbers<[1], [0], [0], [1], [0, 0, 1, 1], [], []>} : vector<2x32xf32>, vector<32x32xf32>, vector<2x32xf32> -> vector<2x32xf32>
    %1038 = arith.addf %1034, %1037 : vector<2x32xf32>
    %c2_752 = arith.constant 2 : index
    %c0_753 = arith.constant 0 : index
    %c0_754 = arith.constant 0 : index
    %1039 = vector.load %arg6[%c2_752, %c0_753, %c0_754] : memref<4x1x32xf32, #tpu.memory_space<vmem>>, vector<1x1x32xf32>
    %1040 = vector.shape_cast %1039 : vector<1x1x32xf32> to vector<1x32xf32>
    %1041 = vector.broadcast %1040 : vector<1x32xf32> to vector<2x32xf32>
    %1042 = arith.addf %1038, %1041 : vector<2x32xf32>
    %c3_755 = arith.constant 3 : index
    %c0_756 = arith.constant 0 : index
    %c0_757 = arith.constant 0 : index
    %1043 = vector.load %arg4[%c3_755, %c0_756, %c0_757] : memref<4x32x32xf32, #tpu.memory_space<vmem>>, vector<1x32x32xf32>
    %1044 = vector.shape_cast %1043 : vector<1x32x32xf32> to vector<32x32xf32>
    %cst_758 = arith.constant dense<0.000000e+00> : vector<2x32xf32>
    %1045 = tpu.matmul %1009, %1044, %cst_758 {dimension_numbers = #tpu.dot_dimension_numbers<[1], [0], [0], [1], [0, 0, 1, 1], [], []>} : vector<2x32xf32>, vector<32x32xf32>, vector<2x32xf32> -> vector<2x32xf32>
    %c3_759 = arith.constant 3 : index
    %c0_760 = arith.constant 0 : index
    %c0_761 = arith.constant 0 : index
    %1046 = vector.load %arg5[%c3_759, %c0_760, %c0_761] : memref<4x32x32xf32, #tpu.memory_space<vmem>>, vector<1x32x32xf32>
    %1047 = vector.shape_cast %1046 : vector<1x32x32xf32> to vector<32x32xf32>
    %cst_762 = arith.constant dense<0.000000e+00> : vector<2x32xf32>
    %1048 = tpu.matmul %940, %1047, %cst_762 {dimension_numbers = #tpu.dot_dimension_numbers<[1], [0], [0], [1], [0, 0, 1, 1], [], []>} : vector<2x32xf32>, vector<32x32xf32>, vector<2x32xf32> -> vector<2x32xf32>
    %1049 = arith.addf %1045, %1048 : vector<2x32xf32>
    %c3_763 = arith.constant 3 : index
    %c0_764 = arith.constant 0 : index
    %c0_765 = arith.constant 0 : index
    %1050 = vector.load %arg6[%c3_763, %c0_764, %c0_765] : memref<4x1x32xf32, #tpu.memory_space<vmem>>, vector<1x1x32xf32>
    %1051 = vector.shape_cast %1050 : vector<1x1x32xf32> to vector<1x32xf32>
    %1052 = vector.broadcast %1051 : vector<1x32xf32> to vector<2x32xf32>
    %1053 = arith.addf %1049, %1052 : vector<2x32xf32>
    %1054 = arith.negf %1020 : vector<2x32xf32>
    %1055 = math.exp %1054 : vector<2x32xf32>
    %cst_766 = arith.constant 1.000000e+00 : f32
    %1056 = vector.broadcast %cst_766 : f32 to vector<2x32xf32>
    %1057 = arith.addf %1056, %1055 : vector<2x32xf32>
    %1058 = arith.divf %1056, %1057 : vector<2x32xf32>
    %1059 = arith.negf %1031 : vector<2x32xf32>
    %1060 = math.exp %1059 : vector<2x32xf32>
    %cst_767 = arith.constant 1.000000e+00 : f32
    %1061 = vector.broadcast %cst_767 : f32 to vector<2x32xf32>
    %1062 = arith.addf %1061, %1060 : vector<2x32xf32>
    %1063 = arith.divf %1061, %1062 : vector<2x32xf32>
    %1064 = math.tanh %1042 : vector<2x32xf32>
    %1065 = arith.negf %1053 : vector<2x32xf32>
    %1066 = math.exp %1065 : vector<2x32xf32>
    %cst_768 = arith.constant 1.000000e+00 : f32
    %1067 = vector.broadcast %cst_768 : f32 to vector<2x32xf32>
    %1068 = arith.addf %1067, %1066 : vector<2x32xf32>
    %1069 = arith.divf %1067, %1068 : vector<2x32xf32>
    %1070 = arith.mulf %1063, %938 : vector<2x32xf32>
    %1071 = arith.mulf %1058, %1064 : vector<2x32xf32>
    %1072 = arith.addf %1070, %1071 : vector<2x32xf32>
    %1073 = math.tanh %1072 : vector<2x32xf32>
    %1074 = arith.mulf %1069, %1073 : vector<2x32xf32>
    %c224 = arith.constant 224 : index
    %c0_769 = arith.constant 0 : index
    %1075 = vector.load %arg7[%c224, %c0_769] : memref<256x16xf32, #tpu.memory_space<vmem>>, vector<32x16xf32>
    %cst_770 = arith.constant dense<0.000000e+00> : vector<2x16xf32>
    %1076 = tpu.matmul %1074, %1075, %cst_770 {dimension_numbers = #tpu.dot_dimension_numbers<[1], [0], [0], [1], [0, 0, 1, 1], [], []>} : vector<2x32xf32>, vector<32x16xf32>, vector<2x16xf32> -> vector<2x16xf32>
    %1077 = arith.addf %943, %1076 : vector<2x16xf32>
    %c0_771 = arith.constant 0 : index
    %c0_772 = arith.constant 0 : index
    %1078 = vector.load %arg8[%c0_771, %c0_772] : memref<1x16xf32, #tpu.memory_space<vmem>>, vector<1x16xf32>
    %1079 = vector.broadcast %1078 : vector<1x16xf32> to vector<2x16xf32>
    %1080 = arith.addf %1077, %1079 : vector<2x16xf32>
    %cst_773 = arith.constant 0.000000e+00 : f32
    %1081 = vector.broadcast %cst_773 : f32 to vector<2x16xf32>
    %1082 = arith.maximumf %1080, %1081 : vector<2x16xf32>
    %c0_774 = arith.constant 0 : index
    %c0_775 = arith.constant 0 : index
    %1083 = vector.load %arg9[%c0_774, %c0_775] : memref<2x16xf32, #tpu.memory_space<vmem>>, vector<2x16xf32>
    tpu.vector_store %arg9[%c0_774, %c0_775], %1082 {strides = array<i32>} : memref<2x16xf32, #tpu.memory_space<vmem>>, vector<2x16xf32>,
    return
  }
}

</mosaic_0001>

<bundles_post_ra>
// kernel: lstmnet_onelinear_forward.1
= control target key start
LH: loop header
LB: loop body
LE: loop exit
PB: predicated region body
PF: predicated region fallthrough
CT: control target
= control target key end

     0   :  { %v13489_v0 = vmov 0.0|0.0   ;;  %vm13490_vm0 = vmmov 0   ;;  %v13491_v6 = vmov 0.0   ;;  %s13492_s27 = smov 112   ;;  %vm113_vm1 = vcmask 130048   ;;  %s13496_s19 = smov 48   ;;  %s15276_s2 = inlined_call_operand.vmem [shape: f32[4,32,32], index: 2, kind: input, shape index: {}]   ;;  %s15277_s1 = inlined_call_operand.vmem [shape: f32[4,16,32], index: 1, kind: input, shape index: {}]   ;;  %s15278_s0 = inlined_call_operand.vmem [shape: f32[2,128], index: 0, kind: input, shape index: {}]   ;;  %s15279_s5 = inlined_call_operand.vmem [shape: f32[4,32,32], index: 5, kind: input, shape index: {}]   ;;  %s15280_s4 = inlined_call_operand.vmem [shape: f32[4,32,32], index: 4, kind: input, shape index: {}]   ;;  %s15281_s3 = inlined_call_operand.vmem [shape: f32[4,1,32], index: 3, kind: input, shape index: {}]   ;;  %s15282_s6 = inlined_call_operand.vmem [shape: f32[4,1,32], index: 6, kind: input, shape index: {}]   ;;  %s15283_s7 = inlined_call_operand.vmem [shape: f32[256,16], index: 7, kind: input, shape index: {}]   ;;  %s15284_s8 = inlined_call_operand.vmem [shape: f32[1,16], index: 8, kind: input, shape index: {}]   ;;  %s15285_s9 = inlined_call_operand.vmem [shape: f32[2,16], index: 9, kind: output, shape index: {}]  }
   0x1   :  { %12485 = vmatprep.subr.bf16.mxu0 %v13489_v0  ;;  %12491 = vmatprep.subr.bf16.mxu1 %v13489_v0  ;;  %v35_v1 = vld [vmem:[%s15276_s2] sm:$0xff]  ;;  %v36_v2 = vld [vmem:[%s15276_s2 + $0x8] sm:$0xff]  ;;  %v37_v8 = vld [vmem:[%s15276_s2 + $0x10] sm:$0xff]  ;;  %vm39_vm2 = vcmask 261120   ;;  %s13497_s13 = smov 32   ;;  %s13498_s22 = smov 16  }
   0x2   :  { %v33_v3 = vld [vmem:[%s15277_s1] sm:$0xff]  ;;  %v13560_v4 = vpack.c.bf16 %v36_v2, %v35_v1  ;;  %v34_v5 = vld [vmem:[%s15277_s1 + $0x8] sm:$0xff]  ;;  %11132 = vmatprep.mubr.msk.f32.mxu1 %vm13490_vm0, %v13491_v6  ;;  %11125 = vmatprep.mubr.msk.f32.mxu0 %vm13490_vm0, %v13491_v6  ;;  %v38_v10 = vld [vmem:[%s15276_s2 + $0x18] sm:$0xff]  ;;  %vm10262_vm3 = vcmask 123904  }
   0x3   :  { %v13570_v7 = vld [vmem:[%s15278_s0] sm:$0x3]  ;;  %v13577_v9 = vpack.c.bf16 %v34_v5, %v33_v3  ;;  %v10273_v12 = vld [vmem:[%s15276_s2 + $0x28] sm:$0xff]  ;;  %v13590_v13 = vpack.c.bf16 %v38_v10, %v37_v8  ;;  %v10274_v17 = vld [vmem:[%s15276_s2 + $0x30] sm:$0xff] }
   0x4   :  { %v10272_v11 = vld [vmem:[%s15276_s2 + $0x20] sm:$0xff]  ;;  %1424 = vrot.lane.b32.xlu0 %v13570_v7, %s13492_s27  ;;  %12487 = vmatpush3.bf16.msra.mxu0 %v13560_v4  ;;  %v10282_v16 = vld [vmem:[%s15276_s2 + $0x48] sm:$0xff]  ;;  %v10275_v18 = vld [vmem:[%s15276_s2 + $0x38] sm:$0xff]  ;;  %s13495_s27 = smov 64  }
   0x5   :  { %12493 = vmatpush3.bf16.msra.mxu1 %v13577_v9  ;;  %12488 = vmatprep.subr.bf16.mxu0 %v13489_v0  ;;  %v13594_v14 = vpack.c.bf16 %v10273_v12, %v10272_v11  ;;  %v10281_v15 = vld [vmem:[%s15276_s2 + $0x40] sm:$0xff]  ;;  %v13615_v20 = vpack.c.bf16 %v10275_v18, %v10274_v17  ;;  %v10283_v21 = vld [vmem:[%s15276_s2 + $0x50] sm:$0xff]  ;;  %v10284_v22 = vld [vmem:[%s15276_s2 + $0x58] sm:$0xff] }
   0x6   :  { %12494 = vmatprep.subr.bf16.mxu1 %v13489_v0  ;;  %v13612_v19 = vpack.c.bf16 %v10282_v16, %v10281_v15  ;;  %v10270_v23 = vld [vmem:[%s15277_s1 + $0x10] sm:$0xff]  ;;  %v10271_v24 = vld [vmem:[%s15277_s1 + $0x18] sm:$0xff]  ;;  %v13635_v25 = vpack.c.bf16 %v10284_v22, %v10283_v21  ;;  %v10279_v29 = vld [vmem:[%s15277_s1 + $0x20] sm:$0xff] }
   0x7   :  { %v13640_v26 = vpack.c.bf16 %v10271_v24, %v10270_v23  ;;  %v10288_v27 = vld [vmem:[%s15277_s1 + $0x30] sm:$0xff]  ;;  %v10289_v28 = vld [vmem:[%s15277_s1 + $0x38] sm:$0xff]  ;;  %v10280_v30 = vld [vmem:[%s15277_s1 + $0x28] sm:$0xff] }
   0x8   :  { %11133 = vmatmul.mubr.msk.f32.vlgmr.msra.gmra.mrb[0].mxu1 %vm113_vm1, %v13570_v7  ;;  %12490 = vmatpush3.bf16.msra.mxu0 %v13590_v13  ;;  %v13658_v31 = vpack.c.bf16 %v10289_v28, %v10288_v27  ;;  %v13663_v32 = vpack.c.bf16 %v10280_v30, %v10279_v29  ;;  %v10290_v33 = vld [vmem:[%s15276_s2 + $0x60] sm:$0xff]  ;;  %v10291_v34 = vld [vmem:[%s15276_s2 + $0x68] sm:$0xff]  ;;  %v10292_v36 = vld [vmem:[%s15276_s2 + $0x70] sm:$0xff] }
   0x9   :  { %12496 = vmatpush3.bf16.msra.mxu1 %v13594_v14  ;;  %11143 = vmatprep.mubr.msk.f32.mxu1 %vm13490_vm0, %v13491_v6  ;;  %v13680_v35 = vpack.c.bf16 %v10291_v34, %v10290_v33  ;;  %v10293_v37 = vld [vmem:[%s15276_s2 + $0x78] sm:$0xff]  ;;  %v694_v39 = vld [vmem:[%s15279_s5] sm:$0xff]  ;;  %v695_v40 = vld [vmem:[%s15279_s5 + $0x8] sm:$0xff] }
   0xa   :  { %12497 = vmatprep.subr.bf16.mxu1 %v13489_v0  ;;  %12503 = vmatprep.subr.bf16.mxu0 %v13489_v0  ;;  %v13699_v38 = vpack.c.bf16 %v10293_v37, %v10292_v36  ;;  %v13715_v41 = vpack.c.bf16 %v695_v40, %v694_v39  ;;  %v696_v42 = vld [vmem:[%s15279_s5 + $0x10] sm:$0xff]  ;;  %v697_v43 = vld [vmem:[%s15279_s5 + $0x18] sm:$0xff]  ;;  %v10306_v45 = vld [vmem:[%s15279_s5 + $0x20] sm:$0xff] }
   0xb   :  { %11126 = vmatmul.mubr.f32.vlgmr.msra.gmra.mrb[0].mxu0 %v13491_v6  ;;  %v13725_v44 = vpack.c.bf16 %v697_v43, %v696_v42  ;;  %v10307_v46 = vld [vmem:[%s15279_s5 + $0x28] sm:$0xff]  ;;  %v10308_v48 = vld [vmem:[%s15279_s5 + $0x30] sm:$0xff]  ;;  %v10309_v49 = vld [vmem:[%s15279_s5 + $0x38] sm:$0xff] }
   0xc   :  { %12505 = vmatpush3.bf16.msra.mxu0 %v13612_v19  ;;  %11161 = vmatprep.mubr.msk.f32.mxu0 %vm13490_vm0, %v13491_v6  ;;  %v13735_v47 = vpack.c.bf16 %v10307_v46, %v10306_v45  ;;  %v13748_v50 = vpack.c.bf16 %v10309_v49, %v10308_v48  ;;  %v10317_v51 = vld [vmem:[%s15279_s5 + $0x40] sm:$0xff]  ;;  %v10318_v52 = vld [vmem:[%s15279_s5 + $0x48] sm:$0xff]  ;;  %v10319_v54 = vld [vmem:[%s15279_s5 + $0x50] sm:$0xff] }
   0xd   :  { %12499 = vmatpush3.bf16.msra.mxu1 %v13615_v20  ;;  %12506 = vmatprep.subr.bf16.mxu0 %v13489_v0  ;;  %v13758_v53 = vpack.c.bf16 %v10318_v52, %v10317_v51  ;;  %v10320_v55 = vld [vmem:[%s15279_s5 + $0x58] sm:$0xff]  ;;  %v10328_v57 = vld [vmem:[%s15279_s5 + $0x60] sm:$0xff]  ;;  %v10329_v58 = vld [vmem:[%s15279_s5 + $0x68] sm:$0xff] }
   0xe   :  { %12500 = vmatprep.subr.bf16.mxu1 %v13489_v0  ;;  %v13771_v56 = vpack.c.bf16 %v10320_v55, %v10319_v54  ;;  %v13781_v59 = vpack.c.bf16 %v10329_v58, %v10328_v57  ;;  %v10330_v60 = vld [vmem:[%s15279_s5 + $0x70] sm:$0xff]  ;;  %v10331_v61 = vld [vmem:[%s15279_s5 + $0x78] sm:$0xff]  ;;  %v690_v63 = vld [vmem:[%s15280_s4] sm:$0xff] }
   0xf   :  { %v13794_v62 = vpack.c.bf16 %v10331_v61, %v10330_v60  ;;  %v691_v1 = vld [vmem:[%s15280_s4 + $0x8] sm:$0xff]  ;;  %v692_v3 = vld [vmem:[%s15280_s4 + $0x10] sm:$0xff]  ;;  %v693_v5 = vld [vmem:[%s15280_s4 + $0x18] sm:$0xff] }
  0x10   :  { %11144 = vmatmul.mubr.f32.vlgmr.msra.gmra.mrb[2].mxu1 %v13491_v6  ;;  %12508 = vmatpush3.bf16.msra.mxu0 %v13635_v25  ;;  %v13804_v2 = vpack.c.bf16 %v691_v1, %v690_v63  ;;  %v13817_v8 = vpack.c.bf16 %v693_v5, %v692_v3  ;;  %v13828_v15 = vld [vmem:[%s15281_s3] ss:$0 sm:$0xff]  ;;  %v13834_v28 = vld [vmem:[%s15281_s3 + $0x1] ss:$0 sm:$0xff]  ;;  %v13840_v39 = vld [vmem:[%s15281_s3 + $0x2] ss:$0 sm:$0xff] }
  0x11   :  { %12502 = vmatpush3.bf16.msra.mxu1 %v13640_v26  ;;  %11150 = vmatprep.mubr.msk.f32.mxu1 %vm13490_vm0, %v13491_v6  ;;  %v13846_v52 = vld [vmem:[%s15281_s3 + $0x3] ss:$0 sm:$0xff] }
  0x12   :  { %12509 = vmatprep.subr.bf16.mxu1 %v13489_v0  ;;  %12518 = vmatprep.subr.bf16.mxu0 %v13489_v0 }
  0x13   :  { %11162 = vmatmul.mubr.f32.vlgmr.msra.gmra.mrb[2].mxu0 %v13491_v6 }
  0x14   :  { %11151 = vmatmul.mubr.msk.f32.vlgmr.msra.gmra.mrb[4].mxu1 %vm113_vm1, %v13570_v7  ;;  %12520 = vmatpush3.bf16.msra.mxu0 %v13658_v31 }
  0x15   :  { %12511 = vmatpush3.bf16.msra.mxu1 %v13663_v32  ;;  %11168 = vmatprep.mubr.msk.f32.mxu1 %vm13490_vm0, %v13491_v6 }
  0x16   :  { %12512 = vmatprep.subr.bf16.mxu1 %v13489_v0  ;;  %11186 = vmatprep.mubr.msk.f32.mxu0 %vm13490_vm0, %v13491_v6 }
  0x17   :  { %11187 = vmatmul.mubr.msk.f32.vlgmr.msra.gmra.mrb[4].mxu0 %vm113_vm1, %v13570_v7  ;;  %12521 = vmatprep.subr.bf16.mxu0 %v13489_v0 }
  0x18   :  { %11169 = vmatmul.mubr.msk.f32.vlgmr.msra.gmra.mrb[6].mxu1 %vm113_vm1, %v13570_v7  ;;  %11197 = vmatprep.mubr.msk.f32.mxu0 %vm13490_vm0, %v13491_v6 }
  0x19   :  { %12514 = vmatpush3.bf16.msra.mxu1 %v13680_v35  ;;  %11179 = vmatprep.mubr.msk.f32.mxu1 %vm13490_vm0, %v13491_v6 }
  0x1a   :  { %12515 = vmatprep.subr.bf16.mxu1 %v13489_v0  ;;  %12523 = vmatpush3.bf16.msra.mxu0 %v13715_v41 }
  0x1b   :  { %12524 = vmatprep.subr.bf16.mxu0 %v13489_v0 }
  0x1d   :  { %12517 = vmatpush3.bf16.msra.mxu1 %v13699_v38 }
  0x1e   :  { %12527 = vmatprep.subr.bf16.mxu1 %v13489_v0  ;;  %12526 = vmatpush3.bf16.msra.mxu0 %v13725_v44 }
  0x1f   :  { %12533 = vmatprep.subr.bf16.mxu0 %v13489_v0 }
  0x20   :  { %11180 = vmatmul.mubr.f32.vlgmr.msra.gmra.mrb[8].mxu1 %v13491_v6 }
  0x21   :  { %11208 = vmatprep.mubr.msk.f32.mxu1 %vm13490_vm0, %v13491_v6  ;;  %11198 = vmatmul.mubr.f32.vlgmr.msra.gmra.mrb[6].mxu0 %v13491_v6 }
  0x22   :  { %12535 = vmatpush3.bf16.msra.mxu0 %v13735_v47  ;;  %11219 = vmatprep.mubr.msk.f32.mxu0 %vm13490_vm0, %v13491_v6 }
  0x23   :  { %12536 = vmatprep.subr.bf16.mxu0 %v13489_v0  ;;  %12529 = vmatpush3.bf16.msra.mxu1 %v13804_v2 }
  0x24   :  { %12530 = vmatprep.subr.bf16.mxu1 %v13489_v0 }
  0x26   :  { %12538 = vmatpush3.bf16.msra.mxu0 %v13748_v50 }
  0x27   :  { %12545 = vmatprep.subr.bf16.mxu0 %v13489_v0  ;;  %12532 = vmatpush3.bf16.msra.mxu1 %v13817_v8 }
  0x28   :  { %12539 = vmatprep.subr.bf16.mxu1 %v13489_v0 }
  0x29   :  { %11220 = vmatmul.mubr.f32.vlgmr.msra.gmra.mrb[8].mxu0 %v13491_v6 }
  0x2a   :  { %12547 = vmatpush3.bf16.msra.mxu0 %v13758_v53  ;;  %11241 = vmatprep.mubr.msk.f32.mxu0 %vm13490_vm0, %v13491_v6 }
  0x2b   :  { %12548 = vmatprep.subr.bf16.mxu0 %v13489_v0 }
  0x2e   :  { %12550 = vmatpush3.bf16.msra.mxu0 %v13771_v56 }
  0x2f   :  { %12557 = vmatprep.subr.bf16.mxu0 %v13489_v0 }
  0x31   :  { %11242 = vmatmul.mubr.f32.vlgmr.msra.gmra.mrb[10].mxu0 %v13491_v6 }
  0x32   :  { %12559 = vmatpush3.bf16.msra.mxu0 %v13781_v59  ;;  %11263 = vmatprep.mubr.msk.f32.mxu0 %vm13490_vm0, %v13491_v6 }
  0x33   :  { %12560 = vmatprep.subr.bf16.mxu0 %v13489_v0 }
  0x36   :  { %12562 = vmatpush3.bf16.msra.mxu0 %v13794_v62 }
  0x37   :  { %12569 = vmatprep.subr.bf16.mxu0 %v13489_v0 }
  0x39   :  { %11264 = vmatmul.mubr.f32.vlgmr.msra.gmra.mrb[12].mxu0 %v13491_v6 }
  0x3a   :  { %12571 = vmatpush3.bf16.msra.mxu0 %v13560_v4  ;;  %11285 = vmatprep.mubr.msk.f32.mxu0 %vm13490_vm0, %v13491_v6 }
  0x3b   :  { %12572 = vmatprep.subr.bf16.mxu0 %v13489_v0 }
  0x3e   :  { %12574 = vmatpush3.bf16.msra.mxu0 %v13590_v13 }
  0x3f   :  { %12584 = vmatprep.subr.bf16.mxu0 %v13489_v0 }
  0xdb   :  { %v183_v10 = vpop.f32.mrb[0].mxu1 }
  0xdc   :  { %v11134_v11 = vpop.f32.mrb[1].mxu1 }
  0xde   :  { %v109_v12 = vpop.f32.mrb[0].mxu0 }
  0xdf   :  { %v184_v16 = vadd.f32 %v183_v10, %v109_v12  ;;  %v11127_v17 = vpop.f32.mrb[1].mxu0 }
  0xe0   :  { %v10302_v17 = vld [vmem:[%s15280_s4 + $0x20] sm:$0xff] }
  0xe1   :  { %v194_v18 = vadd.f32 %v13828_v15, %v184_v16 }
  0xe3   :  { %v10297_v21 = vmul.f32 -1.442695, %v194_v18  ;;  %v269_v22 = vpop.f32.mrb[2].mxu1  ;;  %v10303_v18 = vld [vmem:[%s15280_s4 + $0x28] sm:$0xff] }
  0xe4   :  { %v11145_v23 = vpop.f32.mrb[3].mxu1 }
  0xe5   :  { %13215 = vpow2.f32 %v10297_v21  ;;  %v13858_v23 = vpack.c.bf16 %v10303_v18, %v10302_v17 }
  0xe6   :  { %v426_v24 = vpop.f32.mrb[2].mxu0 }
  0xe7   :  { %v339_v27 = vpop.f32.mrb[4].mxu1  ;;  %v11163_v29 = vpop.f32.mrb[3].mxu0 }
  0xe8   :  { %v340_v30 = vadd.f32 %v339_v27, %v269_v22  ;;  %v11152_v33 = vpop.f32.mrb[5].mxu1  ;;  %v10304_v27 = vld [vmem:[%s15280_s4 + $0x30] sm:$0xff]  ;;  %v10305_v29 = vld [vmem:[%s15280_s4 + $0x38] sm:$0xff] }
  0xe9   :  { %v13874_v33 = vpack.c.bf16 %v10305_v29, %v10304_v27 }
  0xea   :  { %v351_v34 = vadd.f32 %v13834_v28, %v340_v30  ;;  %v653_v36 = vpop.f32.mrb[4].mxu0  ;;  %v1425_v30 = vpop.permute.xlu0 %1424 }
  0xeb   :  { %v496_v37 = vpop.f32.mrb[6].mxu1  ;;  %v11188_v40 = vpop.f32.mrb[5].mxu0 }
  0xec   :  { %v10298_v42 = vmul.f32 -1.442695, %v351_v34  ;;  %v497_v43 = vadd.f32 %v496_v37, %v426_v24  ;;  %v11170_v45 = vpop.f32.mrb[7].mxu1  ;;  %v10313_v34 = vld [vmem:[%s15280_s4 + $0x40] sm:$0xff]  ;;  %v10315_v40 = vld [vmem:[%s15280_s4 + $0x50] sm:$0xff] }
  0xed   :  { %v10324_v45 = vld [vmem:[%s15280_s4 + $0x60] sm:$0xff] }
  0xee   :  { %13217 = vpow2.f32 %v10298_v42  ;;  %v508_v46 = vadd.f32 %v13840_v39, %v497_v43  ;;  %v10316_v42 = vld [vmem:[%s15280_s4 + $0x58] sm:$0xff] }
  0xef   :  { %v13216_v48 = vpop.eup %13215  ;;  %v13907_v43 = vpack.c.bf16 %v10316_v42, %v10315_v40 }
  0xf0   :  { %v669_v49 = vadd.f32 1.0, %v13216_v48  ;;  %13219 = vtanh.f32 %v508_v46  ;;  %v10325_v46 = vld [vmem:[%s15280_s4 + $0x68] sm:$0xff] }
  0xf1   :  { %v13922_v48 = vpack.c.bf16 %v10325_v46, %v10324_v45 }
  0xf2   :  { %13221 = vrcp.f32 %v669_v49  ;;  %v10326_v49 = vld [vmem:[%s15280_s4 + $0x70] sm:$0xff] }
  0xf3   :  { %v583_v51 = vpop.f32.mrb[8].mxu1 }
  0xf4   :  { %v654_v54 = vadd.f32 %v653_v36, %v583_v51  ;;  %v11181_v55 = vpop.f32.mrb[9].mxu1  ;;  %v10314_v36 = vld [vmem:[%s15280_s4 + $0x48] sm:$0xff]  ;;  %v10327_v51 = vld [vmem:[%s15280_s4 + $0x78] sm:$0xff]  ;;  %s13493_s4 = smov 96  }
  0xf5   :  { %v13891_v37 = vpack.c.bf16 %v10314_v36, %v10313_v34  ;;  %v764_v55 = vpop.f32.mrb[6].mxu0  ;;  %2757 = vrot.lane.b32.xlu0 %v13570_v7, %s13493_s4  ;;  %s13494_s4 = smov 80  }
  0xf6   :  { %v665_v57 = vadd.f32 %v13846_v52, %v654_v54  ;;  %v13939_v54 = vpack.c.bf16 %v10327_v51, %v10326_v49  ;;  %v14002_v51 = vld [vmem:[%s15282_s6 + $0x2] ss:$0 sm:$0xff]  ;;  %4018 = vrot.lane.b32.xlu1 %v13570_v7, %s13494_s4 }
  0xf8   :  { %v13218_v58 = vpop.eup %13217  ;;  %v10299_v60 = vmul.f32 -1.442695, %v665_v57  ;;  %v11199_v57 = vpop.f32.mrb[7].mxu0 }
  0xf9   :  { %v675_v61 = vadd.f32 1.0, %v13218_v58 }
  0xfa   :  { %v13220_v63 = vpop.eup %13219  ;;  %13223 = vpow2.f32 %v10299_v60 }
  0xfb   :  { %13225 = vrcp.f32 %v675_v61 }
  0xfc   :  { %v13222_v1 = vpop.eup %13221  ;;  %v925_v58 = vpop.f32.mrb[8].mxu0 }
  0xfd   :  { %v686_v3 = vmul.f32 %v13222_v1, %v13220_v63  ;;  %v11221_v60 = vpop.f32.mrb[9].mxu0 }
 0x104   :  { %v13224_v5 = vpop.eup %13223  ;;  %v1084_v61 = vpop.f32.mrb[10].mxu0 }
 0x105   :  { %v13226_v10 = vpop.eup %13225  ;;  %v682_v11 = vadd.f32 1.0, %v13224_v5  ;;  %v11243_v63 = vpop.f32.mrb[11].mxu0 }
 0x106   :  { %v685_v12 = vmul.f32 0.0, %v13226_v10  ;;  %v13990_v10 = vld [vmem:[%s15282_s6] ss:$0 sm:$0xff] }
 0x107   :  { %13227 = vrcp.f32 %v682_v11 }
 0x108   :  { %v13849_v16 = vadd.f32 %v686_v3, %v685_v12 }
 0x10a   :  { %13229 = vtanh.f32 %v13849_v16 }
 0x10c   :  { %v1243_v1 = vpop.f32.mrb[12].mxu0 }
 0x10d   :  { %v11265_v3 = vpop.f32.mrb[13].mxu0 }
 0x111   :  { %v13228_v21 = vpop.eup %13227 }
 0x114   :  { %v13230_v22 = vpop.eup %13229 }
 0x115   :  { %v13860_v24 = vmul.f32 %v13230_v22, %v13228_v21 }
 0x117   :  { %11209 = vmatmul.mubr.msk.f32.vlgmr.msra.gmra.mrb[10].mxu1 %vm39_vm2, %v13860_v24  ;;  %11286 = vmatmul.mubr.msk.f32.vlgmr.msra.gmra.mrb[14].mxu0 %vm39_vm2, %v13860_v24 }
 0x118   :  { %12541 = vmatpush3.bf16.msra.mxu1 %v13858_v23  ;;  %12586 = vmatpush3.bf16.msra.mxu0 %v13640_v26 }
 0x119   :  { %12542 = vmatprep.subr.bf16.mxu1 %v13489_v0  ;;  %11310 = vmatprep.mubr.msk.f32.mxu0 %vm13490_vm0, %v13491_v6 }
 0x11a   :  { %12587 = vmatprep.subr.bf16.mxu0 %v13489_v0  ;;  %11230 = vmatprep.mubr.msk.f32.mxu1 %vm13490_vm0, %v13491_v6 }
 0x11b   :  { %11311 = vmatmul.mubr.msk.f32.vlgmr.msra.gmra.mrb[16].mxu0 %vm113_vm1, %v1425_v30 }
 0x11c   :  { %12544 = vmatpush3.bf16.msra.mxu1 %v13874_v33  ;;  %12589 = vmatpush3.bf16.msra.mxu0 %v13612_v19 }
 0x11d   :  { %12551 = vmatprep.subr.bf16.mxu1 %v13489_v0  ;;  %12590 = vmatprep.subr.bf16.mxu0 %v13489_v0 }
 0x11e   :  { %11321 = vmatprep.mubr.msk.f32.mxu0 %vm13490_vm0, %v13491_v6 }
 0x11f   :  { %11231 = vmatmul.mubr.msk.f32.vlgmr.msra.gmra.mrb[12].mxu1 %vm39_vm2, %v13860_v24 }
 0x120   :  { %12553 = vmatpush3.bf16.msra.mxu1 %v13891_v37  ;;  %12592 = vmatpush3.bf16.msra.mxu0 %v13635_v25 }
 0x121   :  { %12554 = vmatprep.subr.bf16.mxu1 %v13489_v0  ;;  %11252 = vmatprep.mubr.msk.f32.mxu1 %vm13490_vm0, %v13491_v6 }
 0x122   :  { %12602 = vmatprep.subr.bf16.mxu0 %v13489_v0 }
 0x123   :  { %11322 = vmatmul.mubr.msk.f32.vlgmr.msra.gmra.mrb[18].mxu0 %vm39_vm2, %v13860_v24 }
 0x124   :  { %12556 = vmatpush3.bf16.msra.mxu1 %v13907_v43  ;;  %12604 = vmatpush3.bf16.msra.mxu0 %v13658_v31 }
 0x125   :  { %12563 = vmatprep.subr.bf16.mxu1 %v13489_v0  ;;  %11346 = vmatprep.mubr.msk.f32.mxu0 %vm13490_vm0, %v13491_v6 }
 0x126   :  { %12605 = vmatprep.subr.bf16.mxu0 %v13489_v0 }
 0x127   :  { %11253 = vmatmul.mubr.msk.f32.vlgmr.msra.gmra.mrb[14].mxu1 %vm39_vm2, %v13860_v24  ;;  %11347 = vmatmul.mubr.msk.f32.vlgmr.msra.gmra.mrb[20].mxu0 %vm113_vm1, %v1425_v30 }
 0x128   :  { %12565 = vmatpush3.bf16.msra.mxu1 %v13922_v48  ;;  %11274 = vmatprep.mubr.msk.f32.mxu1 %vm13490_vm0, %v13491_v6 }
 0x129   :  { %12566 = vmatprep.subr.bf16.mxu1 %v13489_v0  ;;  %12607 = vmatpush3.bf16.msra.mxu0 %v13715_v41 }
 0x12a   :  { %12608 = vmatprep.subr.bf16.mxu0 %v13489_v0  ;;  %11357 = vmatprep.mubr.msk.f32.mxu0 %vm13490_vm0, %v13491_v6 }
 0x12c   :  { %12568 = vmatpush3.bf16.msra.mxu1 %v13939_v54 }
 0x12d   :  { %12575 = vmatprep.subr.bf16.mxu1 %v13489_v0  ;;  %12610 = vmatpush3.bf16.msra.mxu0 %v13725_v44 }
 0x12e   :  { %12617 = vmatprep.subr.bf16.mxu0 %v13489_v0 }
 0x12f   :  { %11275 = vmatmul.mubr.msk.f32.vlgmr.msra.gmra.mrb[16].mxu1 %vm39_vm2, %v13860_v24 }
 0x130   :  { %12577 = vmatpush3.bf16.msra.mxu1 %v13577_v9  ;;  %11292 = vmatprep.mubr.msk.f32.mxu1 %vm13490_vm0, %v13491_v6 }
 0x131   :  { %12578 = vmatprep.subr.bf16.mxu1 %v13489_v0 }
 0x133   :  { %11293 = vmatmul.mubr.msk.f32.vlgmr.msra.gmra.mrb[18].mxu1 %vm113_vm1, %v1425_v30 }
 0x134   :  { %12580 = vmatpush3.bf16.msra.mxu1 %v13594_v14  ;;  %11303 = vmatprep.mubr.msk.f32.mxu1 %vm13490_vm0, %v13491_v6 }
 0x135   :  { %12581 = vmatprep.subr.bf16.mxu1 %v13489_v0 }
 0x138   :  { %12583 = vmatpush3.bf16.msra.mxu1 %v13615_v20 }
 0x139   :  { %12593 = vmatprep.subr.bf16.mxu1 %v13489_v0 }
 0x13b   :  { %11304 = vmatmul.mubr.msk.f32.vlgmr.msra.gmra.mrb[20].mxu1 %vm39_vm2, %v13860_v24 }
 0x13c   :  { %12595 = vmatpush3.bf16.msra.mxu1 %v13663_v32  ;;  %11328 = vmatprep.mubr.msk.f32.mxu1 %vm13490_vm0, %v13491_v6 }
 0x13d   :  { %12596 = vmatprep.subr.bf16.mxu1 %v13489_v0 }
 0x13f   :  { %11329 = vmatmul.mubr.msk.f32.vlgmr.msra.gmra.mrb[22].mxu1 %vm113_vm1, %v1425_v30  ;;  %v13996_v30 = vld [vmem:[%s15282_s6 + $0x1] ss:$0 sm:$0xff] }
 0x140   :  { %12598 = vmatpush3.bf16.msra.mxu1 %v13680_v35  ;;  %11339 = vmatprep.mubr.msk.f32.mxu1 %vm13490_vm0, %v13491_v6 }
 0x141   :  { %12599 = vmatprep.subr.bf16.mxu1 %v13489_v0 }
 0x144   :  { %12601 = vmatpush3.bf16.msra.mxu1 %v13699_v38 }
 0x145   :  { %12611 = vmatprep.subr.bf16.mxu1 %v13489_v0 }
 0x147   :  { %11340 = vmatmul.mubr.msk.f32.vlgmr.msra.gmra.mrb[24].mxu1 %vm39_vm2, %v13860_v24 }
 0x148   :  { %12613 = vmatpush3.bf16.msra.mxu1 %v13804_v2  ;;  %11368 = vmatprep.mubr.msk.f32.mxu1 %vm13490_vm0, %v13491_v6 }
 0x149   :  { %12614 = vmatprep.subr.bf16.mxu1 %v13489_v0 }
 0x14c   :  { %12616 = vmatpush3.bf16.msra.mxu1 %v13817_v8 }
 0x14d   :  { %12623 = vmatprep.subr.bf16.mxu1 %v13489_v0 }
 0x1ea   :  { %v837_v5 = vpop.f32.mrb[10].mxu1  ;;  %v1420_v11 = vpop.f32.mrb[14].mxu0 }
 0x1eb   :  { %v838_v12 = vadd.f32 %v837_v5, %v764_v55  ;;  %v11210_v17 = vpop.f32.mrb[11].mxu1  ;;  %v11287_v18 = vpop.f32.mrb[15].mxu0 }
 0x1ec   :  { %v14008_v17 = vld [vmem:[%s15282_s6 + $0x3] ss:$0 sm:$0xff] }
 0x1ed   :  { %v848_v21 = vadd.f32 %v13990_v10, %v838_v12 }
 0x1ee   :  { %v1635_v22 = vpop.f32.mrb[16].mxu0 }
 0x1ef   :  { %v10335_v24 = vmul.f32 -1.442695, %v848_v21  ;;  %v11312_v27 = vpop.f32.mrb[17].mxu0 }
 0x1f1   :  { %13231 = vpow2.f32 %v10335_v24 }
 0x1f2   :  { %v995_v29 = vpop.f32.mrb[12].mxu1 }
 0x1f3   :  { %v996_v34 = vadd.f32 %v995_v29, %v925_v58  ;;  %v11232_v36 = vpop.f32.mrb[13].mxu1 }
 0x1f5   :  { %v1007_v40 = vadd.f32 %v13996_v30, %v996_v34 }
 0x1f6   :  { %v1706_v42 = vpop.f32.mrb[18].mxu0 }
 0x1f7   :  { %v10336_v45 = vmul.f32 -1.442695, %v1007_v40  ;;  %v11323_v46 = vpop.f32.mrb[19].mxu0 }
 0x1f9   :  { %13233 = vpow2.f32 %v10336_v45 }
 0x1fa   :  { %v1154_v49 = vpop.f32.mrb[14].mxu1  ;;  %v1917_v55 = vpop.f32.mrb[20].mxu0 }
 0x1fb   :  { %v13232_v57 = vpop.eup %13231  ;;  %v1155_v60 = vadd.f32 %v1154_v49, %v1084_v61  ;;  %v11254_v63 = vpop.f32.mrb[15].mxu1 }
 0x1fc   :  { %v11348_v3 = vpop.f32.mrb[21].mxu0  ;;  %v1329_v5 = vadd.f32 1.0, %v13232_v57 }
 0x1fd   :  { %v1166_v58 = vadd.f32 %v14002_v51, %v1155_v60 }
 0x1fe   :  { %13235 = vrcp.f32 %v1329_v5 }
 0x1ff   :  { %13237 = vtanh.f32 %v1166_v58 }
 0x202   :  { %v1313_v12 = vpop.f32.mrb[16].mxu1 }
 0x203   :  { %v13234_v18 = vpop.eup %13233  ;;  %v1314_v21 = vadd.f32 %v1313_v12, %v1243_v1  ;;  %v11276_v24 = vpop.f32.mrb[17].mxu1 }
 0x204   :  { %v1335_v27 = vadd.f32 1.0, %v13234_v18 }
 0x205   :  { %v1325_v29 = vadd.f32 %v14008_v17, %v1314_v21 }
 0x206   :  { %13239 = vrcp.f32 %v1335_v27  ;;  %v1494_v61 = vpop.f32.mrb[18].mxu1 }
 0x207   :  { %v10337_v34 = vmul.f32 -1.442695, %v1325_v29  ;;  %v1495_v36 = vadd.f32 %v1494_v61, %v1420_v11  ;;  %v11294_v40 = vpop.f32.mrb[19].mxu1 }
 0x208   :  { %v13236_v45 = vpop.eup %13235 }
 0x209   :  { %v13238_v46 = vpop.eup %13237  ;;  %13241 = vpow2.f32 %v10337_v34  ;;  %v1498_v49 = vadd.f32 %v13828_v15, %v1495_v36 }
 0x20a   :  { %v1346_v57 = vmul.f32 %v13238_v46, %v13236_v45 }
 0x20b   :  { %v10346_v60 = vmul.f32 -1.442695, %v1498_v49 }
 0x20d   :  { %13243 = vpow2.f32 %v10346_v60 }
 0x20e   :  { %v1565_v63 = vpop.f32.mrb[20].mxu1 }
 0x20f   :  { %v1636_v3 = vadd.f32 %v1635_v22, %v1565_v63  ;;  %v11305_v1 = vpop.f32.mrb[21].mxu1 }
 0x210   :  { %v13240_v5 = vpop.eup %13239 }
 0x211   :  { %v1345_v58 = vmul.f32 0.0, %v13240_v5  ;;  %v1639_v12 = vadd.f32 %v13834_v28, %v1636_v3 }
 0x212   :  { %v1776_v18 = vpop.f32.mrb[22].mxu1 }
 0x213   :  { %v13242_v21 = vpop.eup %13241  ;;  %v14013_v24 = vadd.f32 %v1346_v57, %v1345_v58  ;;  %v10347_v11 = vmul.f32 -1.442695, %v1639_v12  ;;  %v1777_v27 = vadd.f32 %v1776_v18, %v1706_v42  ;;  %v11330_v29 = vpop.f32.mrb[23].mxu1 }
 0x214   :  { %v1342_v61 = vadd.f32 1.0, %v13242_v21 }
 0x215   :  { %13245 = vtanh.f32 %v14013_v24  ;;  %v1780_v34 = vadd.f32 %v13840_v39, %v1777_v27 }
 0x216   :  { %13247 = vrcp.f32 %v1342_v61 }
 0x217   :  { %v13244_v36 = vpop.eup %13243  ;;  %13249 = vpow2.f32 %v10347_v11 }
 0x218   :  { %v1925_v22 = vadd.f32 1.0, %v13244_v36  ;;  %13251 = vtanh.f32 %v1780_v34  ;;  %v1350_v34 = vld [vmem:[%s15283_s7] sm:$0xff]  ;;  %v1351_v36 = vld [vmem:[%s15283_s7 + $0x8] sm:$0xff] }
 0x21a   :  { %13253 = vrcp.f32 %v1925_v22  ;;  %v1847_v40 = vpop.f32.mrb[24].mxu1  ;;  %v12660_v22 = vpack.c.bf16 %v1351_v36, %v1350_v34 }
 0x21b   :  { %v1918_v45 = vadd.f32 %v1917_v55, %v1847_v40  ;;  %v11341_v46 = vpop.f32.mrb[25].mxu1  ;;  %v1352_v40 = vld [vmem:[%s15283_s7 + $0x10] sm:$0xff] }
 0x21d   :  { %v1921_v49 = vadd.f32 %v13846_v52, %v1918_v45  ;;  %v1353_v45 = vld [vmem:[%s15283_s7 + $0x18] sm:$0xff] }
 0x21e   :  { %v12663_v46 = vpack.c.bf16 %v1353_v45, %v1352_v40 }
 0x21f   :  { %v13246_v57 = vpop.eup %13245  ;;  %v10348_v60 = vmul.f32 -1.442695, %v1921_v49  ;;  %v14099_v49 = vpop.permute.xlu0 %2757 }
 0x220   :  { %v13248_v42 = vpop.eup %13247 }
 0x221   :  { %v13250_v63 = vpop.eup %13249  ;;  %13255 = vpow2.f32 %v10348_v60  ;;  %v14018_v3 = vmul.f32 %v13248_v42, %v13246_v57  ;;  %v2540_v57 = vld [vmem:[%s15283_s7 + $0x20] sm:$0xff]  ;;  %v2541_v60 = vld [vmem:[%s15283_s7 + $0x28] sm:$0xff]  ;;  %v2542_v42 = vld [vmem:[%s15283_s7 + $0x30] sm:$0xff] }
 0x222   :  { %v1931_v1 = vadd.f32 1.0, %v13250_v63  ;;  %v13252_v5 = vpop.eup %13251  ;;  %v12654_v63 = vpack.c.bf16 %v2541_v60, %v2540_v57 }
 0x223   :  { %11358 = vmatmul.mubr.msk.f32.vlgmr.msra.gmra.mrb[22].mxu0 %vm39_vm2, %v14018_v3 }
 0x224   :  { %v13254_v58 = vpop.eup %13253  ;;  %13257 = vrcp.f32 %v1931_v1  ;;  %12619 = vmatpush3.bf16.msra.mxu0 %v13735_v47  ;;  %11379 = vmatprep.mubr.msk.f32.mxu0 %vm13490_vm0, %v13491_v6 }
 0x225   :  { %v1942_v55 = vmul.f32 %v13254_v58, %v13252_v5  ;;  %12620 = vmatprep.subr.bf16.mxu0 %v13489_v0 }
 0x228   :  { %12622 = vmatpush3.bf16.msra.mxu0 %v13748_v50 }
 0x229   :  { %12629 = vmatprep.subr.bf16.mxu0 %v13489_v0 }
 0x22b   :  { %v13256_v12 = vpop.eup %13255  ;;  %11380 = vmatmul.mubr.msk.f32.vlgmr.msra.gmra.mrb[24].mxu0 %vm39_vm2, %v14018_v3 }
 0x22c   :  { %12631 = vmatpush3.bf16.msra.mxu0 %v13758_v53  ;;  %11401 = vmatprep.mubr.msk.f32.mxu0 %vm13490_vm0, %v13491_v6  ;;  %v1938_v21 = vadd.f32 1.0, %v13256_v12 }
 0x22d   :  { %12632 = vmatprep.subr.bf16.mxu0 %v13489_v0 }
 0x22e   :  { %v13258_v18 = vpop.eup %13257  ;;  %13259 = vrcp.f32 %v1938_v21 }
 0x22f   :  { %v1941_v11 = vmul.f32 %v13258_v18, %v13849_v16 }
 0x230   :  { %12634 = vmatpush3.bf16.msra.mxu0 %v13771_v56 }
 0x231   :  { %v14036_v27 = vadd.f32 %v1942_v55, %v1941_v11  ;;  %12641 = vmatprep.subr.bf16.mxu0 %v13489_v0 }
 0x233   :  { %13261 = vtanh.f32 %v14036_v27  ;;  %11402 = vmatmul.mubr.msk.f32.vlgmr.msra.gmra.mrb[26].mxu0 %vm39_vm2, %v14018_v3 }
 0x234   :  { %12643 = vmatpush3.bf16.msra.mxu0 %v13781_v59  ;;  %11423 = vmatprep.mubr.msk.f32.mxu0 %vm13490_vm0, %v13491_v6 }
 0x235   :  { %12644 = vmatprep.subr.bf16.mxu0 %v13489_v0 }
 0x238   :  { %12646 = vmatpush3.bf16.msra.mxu0 %v13794_v62  ;;  %v13260_v16 = vpop.eup %13259 }
 0x239   :  { %12653 = vmatprep.subr.bf16.mxu0 %v13489_v0 }
 0x23b   :  { %11424 = vmatmul.mubr.msk.f32.vlgmr.msra.gmra.mrb[28].mxu0 %vm39_vm2, %v14018_v3 }
 0x23c   :  { %11445 = vmatprep.mubr.msk.f32.mxu0 %vm13490_vm0, %v13491_v6  ;;  %12655 = vmatpush3.bf16.msra.mxu0 %v12654_v63 }
 0x23d   :  { %v13262_v29 = vpop.eup %13261  ;;  %12656 = vmatprep.subr.bf16.mxu0 %v13489_v0 }
 0x23e   :  { %v14052_v61 = vmul.f32 %v13262_v29, %v13260_v16 }
 0x240   :  { %11369 = vmatmul.mubr.msk.f32.vlgmr.msra.gmra.mrb[26].mxu1 %vm39_vm2, %v14052_v61 }
 0x241   :  { %12625 = vmatpush3.bf16.msra.mxu1 %v13858_v23  ;;  %11390 = vmatprep.mubr.msk.f32.mxu1 %vm13490_vm0, %v13491_v6 }
 0x242   :  { %12626 = vmatprep.subr.bf16.mxu1 %v13489_v0 }
 0x245   :  { %12628 = vmatpush3.bf16.msra.mxu1 %v13874_v33 }
 0x246   :  { %12635 = vmatprep.subr.bf16.mxu1 %v13489_v0 }
 0x248   :  { %11391 = vmatmul.mubr.msk.f32.vlgmr.msra.gmra.mrb[28].mxu1 %vm39_vm2, %v14052_v61 }
 0x249   :  { %12637 = vmatpush3.bf16.msra.mxu1 %v13891_v37  ;;  %11412 = vmatprep.mubr.msk.f32.mxu1 %vm13490_vm0, %v13491_v6 }
 0x24a   :  { %12638 = vmatprep.subr.bf16.mxu1 %v13489_v0 }
 0x24d   :  { %12640 = vmatpush3.bf16.msra.mxu1 %v13907_v43 }
 0x24e   :  { %12647 = vmatprep.subr.bf16.mxu1 %v13489_v0 }
 0x250   :  { %11413 = vmatmul.mubr.msk.f32.vlgmr.msra.gmra.mrb[30].mxu1 %vm39_vm2, %v14052_v61 }
 0x251   :  { %12649 = vmatpush3.bf16.msra.mxu1 %v13922_v48  ;;  %11434 = vmatprep.mubr.msk.f32.mxu1 %vm13490_vm0, %v13491_v6 }
 0x252   :  { %12650 = vmatprep.subr.bf16.mxu1 %v13489_v0 }
 0x255   :  { %12652 = vmatpush3.bf16.msra.mxu1 %v13939_v54 }
 0x256   :  { %12659 = vmatprep.subr.bf16.mxu1 %v13489_v0 }
 0x258   :  { %11435 = vmatmul.mubr.msk.f32.vlgmr.msra.gmra.mrb[32].mxu1 %vm39_vm2, %v14052_v61 }
 0x259   :  { %12661 = vmatpush3.bf16.msra.mxu1 %v12660_v22  ;;  %11456 = vmatprep.mubr.msk.f32.mxu1 %vm13490_vm0, %v13491_v6 }
 0x25a   :  { %12662 = vmatprep.subr.bf16.mxu1 %v13489_v0 }
 0x25d   :  { %12664 = vmatpush3.bf16.msra.mxu1 %v12663_v46 }
 0x25e   :  { %12671 = vmatprep.subr.bf16.mxu1 %v13489_v0 }
 0x260   :  { %11457 = vmatmul.mubr.msk.f32.vlgmr.msra.gmra.mrb[34].mxu1 %vm39_vm2, %v14018_v3  ;;  %v2543_v3 = vld [vmem:[%s15283_s7 + $0x38] sm:$0xff] }
 0x261   :  { %12673 = vmatpush3.bf16.msra.mxu1 %v13577_v9  ;;  %11474 = vmatprep.mubr.msk.f32.mxu1 %vm13490_vm0, %v13491_v6  ;;  %v12657_v1 = vpack.c.bf16 %v2543_v3, %v2542_v42 }
 0x262   :  { %12674 = vmatprep.subr.bf16.mxu1 %v13489_v0 }
 0x263   :  { %12658 = vmatpush3.bf16.msra.mxu0 %v12657_v1 }
 0x264   :  { %11475 = vmatmul.mubr.msk.f32.vlgmr.msra.gmra.mrb[36].mxu1 %vm113_vm1, %v14099_v49  ;;  %12665 = vmatprep.subr.bf16.mxu0 %v13489_v0 }
 0x265   :  { %12676 = vmatpush3.bf16.msra.mxu1 %v13594_v14  ;;  %11485 = vmatprep.mubr.msk.f32.mxu1 %vm13490_vm0, %v13491_v6 }
 0x266   :  { %12677 = vmatprep.subr.bf16.mxu1 %v13489_v0 }
 0x269   :  { %12679 = vmatpush3.bf16.msra.mxu1 %v13615_v20 }
 0x26a   :  { %12689 = vmatprep.subr.bf16.mxu1 %v13489_v0 }
 0x26c   :  { %11486 = vmatmul.mubr.msk.f32.vlgmr.msra.gmra.mrb[38].mxu1 %vm39_vm2, %v14052_v61 }
 0x26d   :  { %12691 = vmatpush3.bf16.msra.mxu1 %v13663_v32  ;;  %11510 = vmatprep.mubr.msk.f32.mxu1 %vm13490_vm0, %v13491_v6 }
 0x26e   :  { %12692 = vmatprep.subr.bf16.mxu1 %v13489_v0 }
 0x270   :  { %11511 = vmatmul.mubr.msk.f32.vlgmr.msra.gmra.mrb[40].mxu1 %vm113_vm1, %v14099_v49 }
 0x271   :  { %12694 = vmatpush3.bf16.msra.mxu1 %v13680_v35  ;;  %11521 = vmatprep.mubr.msk.f32.mxu1 %vm13490_vm0, %v13491_v6 }
 0x272   :  { %12695 = vmatprep.subr.bf16.mxu1 %v13489_v0 }
 0x275   :  { %12697 = vmatpush3.bf16.msra.mxu1 %v13699_v38 }
 0x276   :  { %12707 = vmatprep.subr.bf16.mxu1 %v13489_v0 }
 0x278   :  { %11522 = vmatmul.mubr.msk.f32.vlgmr.msra.gmra.mrb[42].mxu1 %vm39_vm2, %v14052_v61 }
 0x279   :  { %12709 = vmatpush3.bf16.msra.mxu1 %v13804_v2  ;;  %11550 = vmatprep.mubr.msk.f32.mxu1 %vm13490_vm0, %v13491_v6 }
 0x27a   :  { %12710 = vmatprep.subr.bf16.mxu1 %v13489_v0 }
 0x27d   :  { %12712 = vmatpush3.bf16.msra.mxu1 %v13817_v8 }
 0x27e   :  { %12719 = vmatprep.subr.bf16.mxu1 %v13489_v0 }
 0x2f6   :  { %v2015_v5 = vpop.f32.mrb[22].mxu0 }
 0x2f7   :  { %v11359_v58 = vpop.f32.mrb[23].mxu0 }
 0x2fe   :  { %v2159_v55 = vpop.f32.mrb[24].mxu0 }
 0x2ff   :  { %v11381_v12 = vpop.f32.mrb[25].mxu0 }
 0x306   :  { %v2300_v18 = vpop.f32.mrb[26].mxu0 }
 0x307   :  { %v11403_v21 = vpop.f32.mrb[27].mxu0 }
 0x30e   :  { %v2441_v11 = vpop.f32.mrb[28].mxu0 }
 0x30f   :  { %v11425_v16 = vpop.f32.mrb[29].mxu0 }
 0x313   :  { %v2088_v29 = vpop.f32.mrb[26].mxu1 }
 0x314   :  { %v2089_v34 = vadd.f32 %v2088_v29, %v2015_v5  ;;  %v11370_v36 = vpop.f32.mrb[27].mxu1 }
 0x316   :  { %v2092_v22 = vadd.f32 %v13990_v10, %v2089_v34 }
 0x318   :  { %v10357_v40 = vmul.f32 -1.442695, %v2092_v22 }
 0x31a   :  { %13263 = vpow2.f32 %v10357_v40 }
 0x31b   :  { %v2229_v45 = vpop.f32.mrb[28].mxu1 }
 0x31c   :  { %v2230_v46 = vadd.f32 %v2229_v45, %v2159_v55  ;;  %v11392_v57 = vpop.f32.mrb[29].mxu1 }
 0x31e   :  { %v2233_v60 = vadd.f32 %v13996_v30, %v2230_v46 }
 0x320   :  { %v10358_v42 = vmul.f32 -1.442695, %v2233_v60 }
 0x322   :  { %13265 = vpow2.f32 %v10358_v42 }
 0x323   :  { %v2370_v63 = vpop.f32.mrb[30].mxu1 }
 0x324   :  { %v13264_v7 = vpop.eup %13263  ;;  %v2371_v3 = vadd.f32 %v2370_v63, %v2300_v18  ;;  %v11414_v1 = vpop.f32.mrb[31].mxu1 }
 0x325   :  { %v2519_v58 = vadd.f32 1.0, %v13264_v7 }
 0x326   :  { %v2374_v12 = vadd.f32 %v14002_v51, %v2371_v3 }
 0x327   :  { %13267 = vrcp.f32 %v2519_v58 }
 0x328   :  { %13269 = vtanh.f32 %v2374_v12 }
 0x32b   :  { %v2511_v5 = vpop.f32.mrb[32].mxu1 }
 0x32c   :  { %v13266_v21 = vpop.eup %13265  ;;  %v2512_v16 = vadd.f32 %v2511_v5, %v2441_v11  ;;  %v11436_v29 = vpop.f32.mrb[33].mxu1 }
 0x32d   :  { %v2525_v34 = vadd.f32 1.0, %v13266_v21 }
 0x32e   :  { %v2515_v55 = vadd.f32 %v14008_v17, %v2512_v16 }
 0x32f   :  { %13271 = vrcp.f32 %v2525_v34 }
 0x330   :  { %v10359_v36 = vmul.f32 -1.442695, %v2515_v55 }
 0x331   :  { %v13268_v22 = vpop.eup %13267 }
 0x332   :  { %v13270_v40 = vpop.eup %13269  ;;  %13273 = vpow2.f32 %v10359_v36 }
 0x333   :  { %v2536_v45 = vmul.f32 %v13270_v40, %v13268_v22  ;;  %v14153_v18 = vpop.f32.mrb[34].mxu1 }
 0x334   :  { %v11458_v46 = vpop.f32.mrb[35].mxu1 }
 0x337   :  { %v14155_v57 = vpop.f32.mrb[36].mxu1 }
 0x338   :  { %v11476_v60 = vpop.f32.mrb[37].mxu1 }
 0x339   :  { %v13272_v42 = vpop.eup %13271 }
 0x33a   :  { %v2535_v63 = vmul.f32 %v13272_v42, %v14013_v24 }
 0x33c   :  { %v13274_v11 = vpop.eup %13273  ;;  %v14158_v7 = vadd.f32 %v2536_v45, %v2535_v63 }
 0x33d   :  { %v2532_v3 = vadd.f32 1.0, %v13274_v11 }
 0x33e   :  { %13275 = vtanh.f32 %v14158_v7 }
 0x33f   :  { %13277 = vrcp.f32 %v2532_v3  ;;  %v14161_v1 = vpop.f32.mrb[38].mxu1 }
 0x340   :  { %v11487_v58 = vpop.f32.mrb[39].mxu1 }
 0x343   :  { %v14163_v12 = vpop.f32.mrb[40].mxu1 }
 0x344   :  { %v11512_v5 = vpop.f32.mrb[41].mxu1 }
 0x348   :  { %v13276_v21 = vpop.eup %13275 }
 0x349   :  { %v13278_v16 = vpop.eup %13277 }
 0x34a   :  { %v2539_v29 = vmul.f32 %v13278_v16, %v13276_v21 }
 0x34b   :  { %v14165_v34 = vpop.f32.mrb[42].mxu1 }
 0x34c   :  { %11446 = vmatmul.mubr.msk.f32.vlgmr.msra.gmra.mrb[30].mxu0 %vm39_vm2, %v2539_v29  ;;  %v11523_v24 = vpop.f32.mrb[43].mxu1 }
 0x34d   :  { %12667 = vmatpush3.bf16.msra.mxu0 %v13560_v4  ;;  %11467 = vmatprep.mubr.msk.f32.mxu0 %vm13490_vm0, %v13491_v6 }
 0x34e   :  { %12668 = vmatprep.subr.bf16.mxu0 %v13489_v0 }
 0x351   :  { %12670 = vmatpush3.bf16.msra.mxu0 %v13590_v13 }
 0x352   :  { %12680 = vmatprep.subr.bf16.mxu0 %v13489_v0 }
 0x354   :  { %11468 = vmatmul.mubr.msk.f32.vlgmr.msra.gmra.mrb[32].mxu0 %vm39_vm2, %v14052_v61 }
 0x355   :  { %12682 = vmatpush3.bf16.msra.mxu0 %v13640_v26  ;;  %11492 = vmatprep.mubr.msk.f32.mxu0 %vm13490_vm0, %v13491_v6 }
 0x356   :  { %12683 = vmatprep.subr.bf16.mxu0 %v13489_v0 }
 0x358   :  { %11493 = vmatmul.mubr.msk.f32.vlgmr.msra.gmra.mrb[34].mxu0 %vm113_vm1, %v14099_v49 }
 0x359   :  { %12685 = vmatpush3.bf16.msra.mxu0 %v13612_v19  ;;  %11503 = vmatprep.mubr.msk.f32.mxu0 %vm13490_vm0, %v13491_v6 }
 0x35a   :  { %12686 = vmatprep.subr.bf16.mxu0 %v13489_v0 }
 0x35d   :  { %12688 = vmatpush3.bf16.msra.mxu0 %v13635_v25 }
 0x35e   :  { %12698 = vmatprep.subr.bf16.mxu0 %v13489_v0 }
 0x360   :  { %11504 = vmatmul.mubr.msk.f32.vlgmr.msra.gmra.mrb[36].mxu0 %vm39_vm2, %v14052_v61 }
 0x361   :  { %12700 = vmatpush3.bf16.msra.mxu0 %v13658_v31  ;;  %11528 = vmatprep.mubr.msk.f32.mxu0 %vm13490_vm0, %v13491_v6 }
 0x362   :  { %12701 = vmatprep.subr.bf16.mxu0 %v13489_v0 }
 0x364   :  { %11529 = vmatmul.mubr.msk.f32.vlgmr.msra.gmra.mrb[38].mxu0 %vm113_vm1, %v14099_v49 }
 0x365   :  { %12703 = vmatpush3.bf16.msra.mxu0 %v13715_v41  ;;  %11539 = vmatprep.mubr.msk.f32.mxu0 %vm13490_vm0, %v13491_v6 }
 0x366   :  { %12704 = vmatprep.subr.bf16.mxu0 %v13489_v0 }
 0x369   :  { %12706 = vmatpush3.bf16.msra.mxu0 %v13725_v44 }
 0x36a   :  { %12713 = vmatprep.subr.bf16.mxu0 %v13489_v0 }
 0x36c   :  { %11540 = vmatmul.mubr.msk.f32.vlgmr.msra.gmra.mrb[40].mxu0 %vm39_vm2, %v2539_v29 }
 0x36d   :  { %12715 = vmatpush3.bf16.msra.mxu0 %v13735_v47  ;;  %11561 = vmatprep.mubr.msk.f32.mxu0 %vm13490_vm0, %v13491_v6 }
 0x36e   :  { %12716 = vmatprep.subr.bf16.mxu0 %v13489_v0 }
 0x371   :  { %12718 = vmatpush3.bf16.msra.mxu0 %v13748_v50 }
 0x372   :  { %12725 = vmatprep.subr.bf16.mxu0 %v13489_v0 }
 0x374   :  { %11562 = vmatmul.mubr.msk.f32.vlgmr.msra.gmra.mrb[42].mxu0 %vm39_vm2, %v2539_v29 }
 0x375   :  { %12727 = vmatpush3.bf16.msra.mxu0 %v13758_v53  ;;  %11583 = vmatprep.mubr.msk.f32.mxu0 %vm13490_vm0, %v13491_v6 }
 0x376   :  { %12728 = vmatprep.subr.bf16.mxu0 %v13489_v0 }
 0x379   :  { %12730 = vmatpush3.bf16.msra.mxu0 %v13771_v56 }
 0x37a   :  { %12737 = vmatprep.subr.bf16.mxu0 %v13489_v0 }
 0x37c   :  { %11584 = vmatmul.mubr.msk.f32.vlgmr.msra.gmra.mrb[44].mxu0 %vm39_vm2, %v2539_v29 }
 0x37d   :  { %12739 = vmatpush3.bf16.msra.mxu0 %v13781_v59  ;;  %11605 = vmatprep.mubr.msk.f32.mxu0 %vm13490_vm0, %v13491_v6 }
 0x37e   :  { %12740 = vmatprep.subr.bf16.mxu0 %v13489_v0 }
 0x381   :  { %12742 = vmatpush3.bf16.msra.mxu0 %v13794_v62 }
 0x382   :  { %12749 = vmatprep.subr.bf16.mxu0 %v13489_v0 }
 0x384   :  { %11606 = vmatmul.mubr.msk.f32.vlgmr.msra.gmra.mrb[46].mxu0 %vm39_vm2, %v2539_v29 }
 0x385   :  { %11627 = vmatprep.mubr.msk.f32.mxu0 %vm13490_vm0, %v13491_v6 }
 0x41f   :  { %v2613_v61 = vpop.f32.mrb[30].mxu0 }
 0x420   :  { %v14227_v49 = vadd.f32 %v14153_v18, %v2613_v61  ;;  %v11447_v55 = vpop.f32.mrb[31].mxu0 }
 0x427   :  { %v2753_v36 = vpop.f32.mrb[32].mxu0 }
 0x428   :  { %v2828_v22 = vadd.f32 %v14155_v57, %v2753_v36  ;;  %v11469_v40 = vpop.f32.mrb[33].mxu0 }
 0x42a   :  { %v2831_v45 = vadd.f32 %v13828_v15, %v2828_v22 }
 0x42b   :  { %v2968_v46 = vpop.f32.mrb[34].mxu0 }
 0x42c   :  { %v10370_v60 = vmul.f32 -1.442695, %v2831_v45  ;;  %v2969_v42 = vadd.f32 %v2968_v46, %v14161_v1  ;;  %v11494_v63 = vpop.f32.mrb[35].mxu0 }
 0x42e   :  { %13279 = vpow2.f32 %v10370_v60  ;;  %v2972_v11 = vadd.f32 %v13834_v28, %v2969_v42 }
 0x430   :  { %v10371_v3 = vmul.f32 -1.442695, %v2972_v11 }
 0x432   :  { %13281 = vpow2.f32 %v10371_v3 }
 0x433   :  { %v3039_v58 = vpop.f32.mrb[36].mxu0 }
 0x434   :  { %v3110_v18 = vadd.f32 %v14163_v12, %v3039_v58  ;;  %v11505_v5 = vpop.f32.mrb[37].mxu0 }
 0x436   :  { %v3113_v21 = vadd.f32 %v13840_v39, %v3110_v18 }
 0x437   :  { %v3250_v57 = vpop.f32.mrb[38].mxu0 }
 0x438   :  { %v13280_v16 = vpop.eup %13279  ;;  %v3251_v15 = vadd.f32 %v3250_v57, %v14165_v34  ;;  %v11530_v29 = vpop.f32.mrb[39].mxu0  ;;  %13283 = vtanh.f32 %v3113_v21 }
 0x439   :  { %v3258_v24 = vadd.f32 1.0, %v13280_v16  ;;  %v3870_v16 = vld [vmem:[%s15283_s7 + $0x40] sm:$0xff] }
 0x43a   :  { %v3254_v1 = vadd.f32 %v13846_v52, %v3251_v15  ;;  %v3871_v15 = vld [vmem:[%s15283_s7 + $0x48] sm:$0xff] }
 0x43b   :  { %13285 = vrcp.f32 %v3258_v24  ;;  %v12750_v29 = vpack.c.bf16 %v3871_v15, %v3870_v16  ;;  %v3872_v24 = vld [vmem:[%s15283_s7 + $0x50] sm:$0xff] }
 0x43c   :  { %v13282_v61 = vpop.eup %13281  ;;  %v10372_v28 = vmul.f32 -1.442695, %v3254_v1  ;;  %v3873_v1 = vld [vmem:[%s15283_s7 + $0x58] sm:$0xff] }
 0x43d   :  { %v3264_v55 = vadd.f32 1.0, %v13282_v61  ;;  %12751 = vmatpush3.bf16.msra.mxu0 %v12750_v29  ;;  %v12753_v61 = vpack.c.bf16 %v3873_v1, %v3872_v24 }
 0x43e   :  { %13287 = vpow2.f32 %v10372_v28  ;;  %12752 = vmatprep.subr.bf16.mxu0 %v13489_v0  ;;  %v14332_v28 = vld [vmem:[%s15278_s0] sm:$0x3] }
 0x43f   :  { %13289 = vrcp.f32 %v3264_v55  ;;  %v14237_v36 = vpop.f32.mrb[40].mxu0  ;;  %5279 = vrot.lane.b32.xlu1 %v14332_v28, %s13495_s27  ;;  %6540 = vrot.lane.b32.xlu0 %v14332_v28, %s13496_s19 }
 0x440   :  { %v11541_v12 = vpop.f32.mrb[41].mxu0 }
 0x441   :  { %12754 = vmatpush3.bf16.msra.mxu0 %v12753_v61 }
 0x442   :  { %v13284_v22 = vpop.eup %13283  ;;  %12761 = vmatprep.subr.bf16.mxu0 %v13489_v0 }
 0x443   :  { %7801 = vrot.lane.b32.xlu1 %v14332_v28, %s13497_s13 }
 0x445   :  { %v13286_v39 = vpop.eup %13285 }
 0x446   :  { %v3275_v40 = vmul.f32 %v13286_v39, %v13284_v22 }
 0x447   :  { %v14239_v45 = vpop.f32.mrb[42].mxu0 }
 0x448   :  { %v13288_v34 = vpop.eup %13287  ;;  %v11563_v46 = vpop.f32.mrb[43].mxu0 }
 0x449   :  { %v13290_v60 = vpop.eup %13289  ;;  %v3271_v42 = vadd.f32 1.0, %v13288_v34 }
 0x44a   :  { %v3274_v52 = vmul.f32 %v13290_v60, %v14036_v27  ;;  %v14294_v27 = vpop.permute.xlu1 %4018 }
 0x44b   :  { %13291 = vrcp.f32 %v3271_v42 }
 0x44c   :  { %v14242_v63 = vadd.f32 %v3275_v40, %v3274_v52 }
 0x44e   :  { %13293 = vtanh.f32 %v14242_v63 }
 0x44f   :  { %v14245_v11 = vpop.f32.mrb[44].mxu0 }
 0x450   :  { %v11585_v3 = vpop.f32.mrb[45].mxu0 }
 0x455   :  { %v13292_v58 = vpop.eup %13291 }
 0x457   :  { %v14247_v18 = vpop.f32.mrb[46].mxu0 }
 0x458   :  { %v13294_v5 = vpop.eup %13293  ;;  %v11607_v21 = vpop.f32.mrb[47].mxu0 }
 0x459   :  { %v14249_v57 = vmul.f32 %v13294_v5, %v13292_v58 }
 0x45b   :  { %11551 = vmatmul.mubr.msk.f32.vlgmr.msra.gmra.mrb[44].mxu1 %vm39_vm2, %v14249_v57 }
 0x45c   :  { %12721 = vmatpush3.bf16.msra.mxu1 %v13858_v23  ;;  %11572 = vmatprep.mubr.msk.f32.mxu1 %vm13490_vm0, %v13491_v6 }
 0x45d   :  { %12722 = vmatprep.subr.bf16.mxu1 %v13489_v0 }
 0x460   :  { %12724 = vmatpush3.bf16.msra.mxu1 %v13874_v33 }
 0x461   :  { %12731 = vmatprep.subr.bf16.mxu1 %v13489_v0 }
 0x463   :  { %11573 = vmatmul.mubr.msk.f32.vlgmr.msra.gmra.mrb[46].mxu1 %vm39_vm2, %v14249_v57 }
 0x464   :  { %12733 = vmatpush3.bf16.msra.mxu1 %v13891_v37  ;;  %11594 = vmatprep.mubr.msk.f32.mxu1 %vm13490_vm0, %v13491_v6 }
 0x465   :  { %12734 = vmatprep.subr.bf16.mxu1 %v13489_v0 }
 0x468   :  { %12736 = vmatpush3.bf16.msra.mxu1 %v13907_v43 }
 0x469   :  { %12743 = vmatprep.subr.bf16.mxu1 %v13489_v0 }
 0x46b   :  { %11595 = vmatmul.mubr.msk.f32.vlgmr.msra.gmra.mrb[48].mxu1 %vm39_vm2, %v14249_v57 }
 0x46c   :  { %12745 = vmatpush3.bf16.msra.mxu1 %v13922_v48  ;;  %11616 = vmatprep.mubr.msk.f32.mxu1 %vm13490_vm0, %v13491_v6 }
 0x46d   :  { %12746 = vmatprep.subr.bf16.mxu1 %v13489_v0 }
 0x470   :  { %12748 = vmatpush3.bf16.msra.mxu1 %v13939_v54 }
 0x471   :  { %12755 = vmatprep.subr.bf16.mxu1 %v13489_v0 }
 0x473   :  { %11617 = vmatmul.mubr.msk.f32.vlgmr.msra.gmra.mrb[50].mxu1 %vm39_vm2, %v14249_v57 }
 0x474   :  { %12757 = vmatpush3.bf16.msra.mxu1 %v13560_v4  ;;  %11638 = vmatprep.mubr.msk.f32.mxu1 %vm13490_vm0, %v13491_v6 }
 0x475   :  { %12758 = vmatprep.subr.bf16.mxu1 %v13489_v0 }
 0x478   :  { %12760 = vmatpush3.bf16.msra.mxu1 %v13590_v13 }
 0x479   :  { %12764 = vmatprep.subr.bf16.mxu1 %v13489_v0 }
 0x47b   :  { %11639 = vmatmul.mubr.msk.f32.vlgmr.msra.gmra.mrb[52].mxu1 %vm39_vm2, %v14249_v57 }
 0x47c   :  { %12766 = vmatpush3.bf16.msra.mxu1 %v13594_v14  ;;  %11656 = vmatprep.mubr.msk.f32.mxu1 %vm13490_vm0, %v13491_v6 }
 0x47d   :  { %12767 = vmatprep.subr.bf16.mxu1 %v13489_v0 }
 0x480   :  { %12769 = vmatpush3.bf16.msra.mxu1 %v13615_v20 }
 0x481   :  { %12779 = vmatprep.subr.bf16.mxu1 %v13489_v0 }
 0x483   :  { %11657 = vmatmul.mubr.msk.f32.vlgmr.msra.gmra.mrb[54].mxu1 %vm39_vm2, %v14249_v57 }
 0x484   :  { %12781 = vmatpush3.bf16.msra.mxu1 %v13663_v32  ;;  %11681 = vmatprep.mubr.msk.f32.mxu1 %vm13490_vm0, %v13491_v6 }
 0x485   :  { %12782 = vmatprep.subr.bf16.mxu1 %v13489_v0 }
 0x487   :  { %11682 = vmatmul.mubr.msk.f32.vlgmr.msra.gmra.mrb[56].mxu1 %vm113_vm1, %v14294_v27 }
 0x488   :  { %12784 = vmatpush3.bf16.msra.mxu1 %v13680_v35  ;;  %11692 = vmatprep.mubr.msk.f32.mxu1 %vm13490_vm0, %v13491_v6 }
 0x489   :  { %12785 = vmatprep.subr.bf16.mxu1 %v13489_v0 }
 0x48c   :  { %12787 = vmatpush3.bf16.msra.mxu1 %v13699_v38 }
 0x48d   :  { %12797 = vmatprep.subr.bf16.mxu1 %v13489_v0 }
 0x48f   :  { %11693 = vmatmul.mubr.msk.f32.vlgmr.msra.gmra.mrb[58].mxu1 %vm39_vm2, %v14249_v57 }
 0x490   :  { %12799 = vmatpush3.bf16.msra.mxu1 %v13804_v2  ;;  %11721 = vmatprep.mubr.msk.f32.mxu1 %vm13490_vm0, %v13491_v6 }
 0x491   :  { %12800 = vmatprep.subr.bf16.mxu1 %v13489_v0 }
 0x494   :  { %12802 = vmatpush3.bf16.msra.mxu1 %v13817_v8 }
 0x495   :  { %12809 = vmatprep.subr.bf16.mxu1 %v13489_v0 }
 0x52e   :  { %v3418_v55 = vpop.f32.mrb[44].mxu1 }
 0x52f   :  { %v3419_v12 = vadd.f32 %v3418_v55, %v14237_v36  ;;  %v11552_v22 = vpop.f32.mrb[45].mxu1 }
 0x531   :  { %v3422_v39 = vadd.f32 %v13990_v10, %v3419_v12 }
 0x533   :  { %v10381_v40 = vmul.f32 -1.442695, %v3422_v39 }
 0x535   :  { %13295 = vpow2.f32 %v10381_v40 }
 0x536   :  { %v3559_v34 = vpop.f32.mrb[46].mxu1 }
 0x537   :  { %v3560_v46 = vadd.f32 %v3559_v34, %v14239_v45  ;;  %v11574_v60 = vpop.f32.mrb[47].mxu1 }
 0x539   :  { %v3563_v42 = vadd.f32 %v13996_v30, %v3560_v46 }
 0x53b   :  { %v10382_v52 = vmul.f32 -1.442695, %v3563_v42 }
 0x53d   :  { %13297 = vpow2.f32 %v10382_v52 }
 0x53e   :  { %v3700_v3 = vpop.f32.mrb[48].mxu1 }
 0x53f   :  { %v13296_v58 = vpop.eup %13295  ;;  %v3701_v5 = vadd.f32 %v3700_v3, %v14245_v11  ;;  %v11596_v21 = vpop.f32.mrb[49].mxu1 }
 0x540   :  { %v3849_v16 = vadd.f32 1.0, %v13296_v58 }
 0x541   :  { %v3704_v36 = vadd.f32 %v14002_v51, %v3701_v5 }
 0x542   :  { %13299 = vrcp.f32 %v3849_v16 }
 0x543   :  { %13301 = vtanh.f32 %v3704_v36 }
 0x546   :  { %v3841_v10 = vpop.f32.mrb[50].mxu1 }
 0x547   :  { %v13298_v15 = vpop.eup %13297  ;;  %v3842_v29 = vadd.f32 %v3841_v10, %v14247_v18  ;;  %v11618_v45 = vpop.f32.mrb[51].mxu1 }
 0x548   :  { %v3855_v24 = vadd.f32 1.0, %v13298_v15  ;;  %v14419_v15 = vld [vmem:[%s15281_s3] ss:$0 sm:$0xff] }
 0x549   :  { %v3845_v30 = vadd.f32 %v14008_v17, %v3842_v29 }
 0x54a   :  { %13303 = vrcp.f32 %v3855_v24 }
 0x54b   :  { %v10383_v1 = vmul.f32 -1.442695, %v3845_v30 }
 0x54c   :  { %v13300_v61 = vpop.eup %13299 }
 0x54d   :  { %v13302_v55 = vpop.eup %13301  ;;  %13305 = vpow2.f32 %v10383_v1 }
 0x54e   :  { %v3866_v11 = vmul.f32 %v13302_v55, %v13300_v61  ;;  %v14343_v12 = vpop.f32.mrb[52].mxu1 }
 0x54f   :  { %v11640_v22 = vpop.f32.mrb[53].mxu1 }
 0x554   :  { %v13304_v51 = vpop.eup %13303 }
 0x555   :  { %v3865_v39 = vmul.f32 %v13304_v51, %v14158_v7  ;;  %v14433_v51 = vld [vmem:[%s15281_s3 + $0x2] ss:$0 sm:$0xff] }
 0x556   :  { %v14346_v40 = vpop.f32.mrb[54].mxu1 }
 0x557   :  { %v13306_v34 = vpop.eup %13305  ;;  %v14348_v18 = vadd.f32 %v3866_v11, %v3865_v39  ;;  %v11658_v46 = vpop.f32.mrb[55].mxu1 }
 0x558   :  { %v3862_v60 = vadd.f32 1.0, %v13306_v34 }
 0x559   :  { %13307 = vtanh.f32 %v14348_v18 }
 0x55a   :  { %13309 = vrcp.f32 %v3862_v60  ;;  %v14351_v17 = vpop.f32.mrb[56].mxu1 }
 0x55b   :  { %v11683_v42 = vpop.f32.mrb[57].mxu1 }
 0x562   :  { %v14353_v52 = vpop.f32.mrb[58].mxu1 }
 0x563   :  { %v13308_v3 = vpop.eup %13307  ;;  %v11694_v58 = vpop.f32.mrb[59].mxu1 }
 0x564   :  { %v13310_v5 = vpop.eup %13309 }
 0x565   :  { %v3869_v21 = vmul.f32 %v13310_v5, %v13308_v3  ;;  %v14440_v3 = vld [vmem:[%s15281_s3 + $0x3] ss:$0 sm:$0xff] }
 0x567   :  { %11628 = vmatmul.mubr.msk.f32.vlgmr.msra.gmra.mrb[48].mxu0 %vm39_vm2, %v3869_v21 }
 0x568   :  { %12763 = vmatpush3.bf16.msra.mxu0 %v13577_v9  ;;  %11645 = vmatprep.mubr.msk.f32.mxu0 %vm13490_vm0, %v13491_v6 }
 0x569   :  { %12770 = vmatprep.subr.bf16.mxu0 %v13489_v0 }
 0x56b   :  { %11646 = vmatmul.mubr.msk.f32.vlgmr.msra.gmra.mrb[50].mxu0 %vm113_vm1, %v14294_v27 }
 0x56c   :  { %12772 = vmatpush3.bf16.msra.mxu0 %v13640_v26  ;;  %11663 = vmatprep.mubr.msk.f32.mxu0 %vm13490_vm0, %v13491_v6 }
 0x56d   :  { %12773 = vmatprep.subr.bf16.mxu0 %v13489_v0 }
 0x56f   :  { %11664 = vmatmul.mubr.msk.f32.vlgmr.msra.gmra.mrb[52].mxu0 %vm113_vm1, %v14294_v27 }
 0x570   :  { %12775 = vmatpush3.bf16.msra.mxu0 %v13612_v19  ;;  %11674 = vmatprep.mubr.msk.f32.mxu0 %vm13490_vm0, %v13491_v6 }
 0x571   :  { %12776 = vmatprep.subr.bf16.mxu0 %v13489_v0 }
 0x574   :  { %12778 = vmatpush3.bf16.msra.mxu0 %v13635_v25 }
 0x575   :  { %12788 = vmatprep.subr.bf16.mxu0 %v13489_v0 }
 0x577   :  { %11675 = vmatmul.mubr.msk.f32.vlgmr.msra.gmra.mrb[54].mxu0 %vm39_vm2, %v14249_v57 }
 0x578   :  { %12790 = vmatpush3.bf16.msra.mxu0 %v13658_v31  ;;  %11699 = vmatprep.mubr.msk.f32.mxu0 %vm13490_vm0, %v13491_v6 }
 0x579   :  { %12791 = vmatprep.subr.bf16.mxu0 %v13489_v0 }
 0x57b   :  { %11700 = vmatmul.mubr.msk.f32.vlgmr.msra.gmra.mrb[56].mxu0 %vm113_vm1, %v14294_v27 }
 0x57c   :  { %12793 = vmatpush3.bf16.msra.mxu0 %v13715_v41  ;;  %11710 = vmatprep.mubr.msk.f32.mxu0 %vm13490_vm0, %v13491_v6 }
 0x57d   :  { %12794 = vmatprep.subr.bf16.mxu0 %v13489_v0 }
 0x580   :  { %12796 = vmatpush3.bf16.msra.mxu0 %v13725_v44 }
 0x581   :  { %12803 = vmatprep.subr.bf16.mxu0 %v13489_v0 }
 0x583   :  { %11711 = vmatmul.mubr.msk.f32.vlgmr.msra.gmra.mrb[58].mxu0 %vm39_vm2, %v3869_v21 }
 0x584   :  { %12805 = vmatpush3.bf16.msra.mxu0 %v13735_v47  ;;  %11732 = vmatprep.mubr.msk.f32.mxu0 %vm13490_vm0, %v13491_v6 }
 0x585   :  { %12806 = vmatprep.subr.bf16.mxu0 %v13489_v0 }
 0x588   :  { %12808 = vmatpush3.bf16.msra.mxu0 %v13748_v50 }
 0x589   :  { %12815 = vmatprep.subr.bf16.mxu0 %v13489_v0 }
 0x58b   :  { %11733 = vmatmul.mubr.msk.f32.vlgmr.msra.gmra.mrb[60].mxu0 %vm39_vm2, %v3869_v21 }
 0x58c   :  { %12817 = vmatpush3.bf16.msra.mxu0 %v13758_v53  ;;  %11754 = vmatprep.mubr.msk.f32.mxu0 %vm13490_vm0, %v13491_v6 }
 0x58d   :  { %12818 = vmatprep.subr.bf16.mxu0 %v13489_v0 }
 0x590   :  { %12820 = vmatpush3.bf16.msra.mxu0 %v13771_v56 }
 0x591   :  { %12827 = vmatprep.subr.bf16.mxu0 %v13489_v0 }
 0x593   :  { %11755 = vmatmul.mubr.msk.f32.vlgmr.msra.gmra.mrb[62].mxu0 %vm39_vm2, %v3869_v21 }
 0x594   :  { %12829 = vmatpush3.bf16.msra.mxu0 %v13781_v59  ;;  %11776 = vmatprep.mubr.msk.f32.mxu0 %vm13490_vm0, %v13491_v6 }
 0x595   :  { %12830 = vmatprep.subr.bf16.mxu0 %v13489_v0 }
 0x598   :  { %12832 = vmatpush3.bf16.msra.mxu0 %v13794_v62 }
 0x599   :  { %12839 = vmatprep.subr.bf16.mxu0 %v13489_v0 }
 0x59b   :  { %11777 = vmatmul.mubr.msk.f32.vlgmr.msra.gmra.mrb[64].mxu0 %vm39_vm2, %v3869_v21 }
 0x59c   :  { %11798 = vmatprep.mubr.msk.f32.mxu0 %vm13490_vm0, %v13491_v6 }
 0x63a   :  { %v3943_v7 = vpop.f32.mrb[48].mxu0 }
 0x63b   :  { %v14413_v57 = vadd.f32 %v3943_v7, %v14227_v49  ;;  %v11629_v27 = vpop.f32.mrb[49].mxu0  ;;  %v14426_v49 = vld [vmem:[%s15281_s3 + $0x1] ss:$0 sm:$0xff] }
 0x63e   :  { %v4088_v16 = vpop.f32.mrb[50].mxu0 }
 0x63f   :  { %v4089_v36 = vadd.f32 %v4088_v16, %v14343_v12  ;;  %v11647_v10 = vpop.f32.mrb[51].mxu0 }
 0x641   :  { %v4092_v29 = vadd.f32 %v14419_v15, %v4089_v36 }
 0x642   :  { %v4229_v45 = vpop.f32.mrb[52].mxu0 }
 0x643   :  { %v10393_v24 = vmul.f32 -1.442695, %v4092_v29  ;;  %v4230_v30 = vadd.f32 %v4229_v45, %v14346_v40  ;;  %v11665_v1 = vpop.f32.mrb[53].mxu0 }
 0x645   :  { %13311 = vpow2.f32 %v10393_v24  ;;  %v4233_v61 = vadd.f32 %v14426_v49, %v4230_v30 }
 0x647   :  { %v10394_v55 = vmul.f32 -1.442695, %v4233_v61 }
 0x649   :  { %13313 = vpow2.f32 %v10394_v55 }
 0x64a   :  { %v4300_v11 = vpop.f32.mrb[54].mxu0 }
 0x64b   :  { %v4371_v12 = vadd.f32 %v14351_v17, %v4300_v11  ;;  %v11676_v22 = vpop.f32.mrb[55].mxu0 }
 0x64d   :  { %v4374_v39 = vadd.f32 %v14433_v51, %v4371_v12 }
 0x64e   :  { %v4511_v40 = vpop.f32.mrb[56].mxu0 }
 0x64f   :  { %v13312_v34 = vpop.eup %13311  ;;  %v4512_v46 = vadd.f32 %v4511_v40, %v14353_v52  ;;  %v11701_v60 = vpop.f32.mrb[57].mxu0  ;;  %13315 = vtanh.f32 %v4374_v39 }
 0x650   :  { %v4519_v42 = vadd.f32 1.0, %v13312_v34  ;;  %v5132_v60 = vld [vmem:[%s15283_s7 + $0x68] sm:$0xff] }
 0x651   :  { %v4515_v17 = vadd.f32 %v14440_v3, %v4512_v46  ;;  %v5131_v46 = vld [vmem:[%s15283_s7 + $0x60] sm:$0xff] }
 0x652   :  { %13317 = vrcp.f32 %v4519_v42  ;;  %v12840_v42 = vpack.c.bf16 %v5132_v60, %v5131_v46 }
 0x653   :  { %v13314_v58 = vpop.eup %13313  ;;  %v10395_v5 = vmul.f32 -1.442695, %v4515_v17  ;;  %v5133_v17 = vld [vmem:[%s15283_s7 + $0x70] sm:$0xff] }
 0x654   :  { %v4525_v21 = vadd.f32 1.0, %v13314_v58  ;;  %12841 = vmatpush3.bf16.msra.mxu0 %v12840_v42  ;;  %v5134_v58 = vld [vmem:[%s15283_s7 + $0x78] sm:$0xff] }
 0x655   :  { %13319 = vpow2.f32 %v10395_v5  ;;  %12842 = vmatprep.subr.bf16.mxu0 %v13489_v0  ;;  %v12843_v5 = vpack.c.bf16 %v5134_v58, %v5133_v17 }
 0x656   :  { %13321 = vrcp.f32 %v4525_v21  ;;  %v14443_v7 = vpop.f32.mrb[58].mxu0 }
 0x657   :  { %v11712_v27 = vpop.f32.mrb[59].mxu0 }
 0x658   :  { %12844 = vmatpush3.bf16.msra.mxu0 %v12843_v5 }
 0x659   :  { %v13316_v52 = vpop.eup %13315  ;;  %12851 = vmatprep.subr.bf16.mxu0 %v13489_v0 }
 0x65c   :  { %v13318_v16 = vpop.eup %13317 }
 0x65d   :  { %v4536_v36 = vmul.f32 %v13318_v16, %v13316_v52  ;;  %v14540_v16 = vld [vmem:[%s15282_s6] ss:$0 sm:$0xff] }
 0x65e   :  { %v14445_v10 = vpop.f32.mrb[60].mxu0 }
 0x65f   :  { %v13320_v29 = vpop.eup %13319  ;;  %v11734_v45 = vpop.f32.mrb[61].mxu0 }
 0x660   :  { %v13322_v24 = vpop.eup %13321  ;;  %v4532_v30 = vadd.f32 1.0, %v13320_v29 }
 0x661   :  { %v4535_v1 = vmul.f32 %v13322_v24, %v14242_v63  ;;  %v14500_v63 = vpop.permute.xlu1 %5279 }
 0x662   :  { %13323 = vrcp.f32 %v4532_v30 }
 0x663   :  { %v14448_v61 = vadd.f32 %v4536_v36, %v4535_v1  ;;  %v14547_v1 = vld [vmem:[%s15282_s6 + $0x1] ss:$0 sm:$0xff] }
 0x665   :  { %13325 = vtanh.f32 %v14448_v61 }
 0x666   :  { %v14451_v55 = vpop.f32.mrb[62].mxu0 }
 0x667   :  { %v11756_v11 = vpop.f32.mrb[63].mxu0 }
 0x66c   :  { %v13324_v12 = vpop.eup %13323 }
 0x66e   :  { %v14453_v22 = vpop.f32.mrb[64].mxu0 }
 0x66f   :  { %v13326_v39 = vpop.eup %13325  ;;  %v11778_v40 = vpop.f32.mrb[65].mxu0 }
 0x670   :  { %v14455_v34 = vmul.f32 %v13326_v39, %v13324_v12 }
 0x672   :  { %11722 = vmatmul.mubr.msk.f32.vlgmr.msra.gmra.mrb[60].mxu1 %vm39_vm2, %v14455_v34 }
 0x673   :  { %12811 = vmatpush3.bf16.msra.mxu1 %v13858_v23  ;;  %11743 = vmatprep.mubr.msk.f32.mxu1 %vm13490_vm0, %v13491_v6 }
 0x674   :  { %12812 = vmatprep.subr.bf16.mxu1 %v13489_v0 }
 0x677   :  { %12814 = vmatpush3.bf16.msra.mxu1 %v13874_v33 }
 0x678   :  { %12821 = vmatprep.subr.bf16.mxu1 %v13489_v0 }
 0x67a   :  { %11744 = vmatmul.mubr.msk.f32.vlgmr.msra.gmra.mrb[62].mxu1 %vm39_vm2, %v14455_v34 }
 0x67b   :  { %12823 = vmatpush3.bf16.msra.mxu1 %v13891_v37  ;;  %11765 = vmatprep.mubr.msk.f32.mxu1 %vm13490_vm0, %v13491_v6 }
 0x67c   :  { %12824 = vmatprep.subr.bf16.mxu1 %v13489_v0 }
 0x67f   :  { %12826 = vmatpush3.bf16.msra.mxu1 %v13907_v43 }
 0x680   :  { %12833 = vmatprep.subr.bf16.mxu1 %v13489_v0 }
 0x682   :  { %11766 = vmatmul.mubr.msk.f32.vlgmr.msra.gmra.mrb[64].mxu1 %vm39_vm2, %v14455_v34 }
 0x683   :  { %12835 = vmatpush3.bf16.msra.mxu1 %v13922_v48  ;;  %11787 = vmatprep.mubr.msk.f32.mxu1 %vm13490_vm0, %v13491_v6 }
 0x684   :  { %12836 = vmatprep.subr.bf16.mxu1 %v13489_v0 }
 0x687   :  { %12838 = vmatpush3.bf16.msra.mxu1 %v13939_v54 }
 0x688   :  { %12845 = vmatprep.subr.bf16.mxu1 %v13489_v0 }
 0x68a   :  { %11788 = vmatmul.mubr.msk.f32.vlgmr.msra.gmra.mrb[66].mxu1 %vm39_vm2, %v14455_v34 }
 0x68b   :  { %12847 = vmatpush3.bf16.msra.mxu1 %v13560_v4  ;;  %11809 = vmatprep.mubr.msk.f32.mxu1 %vm13490_vm0, %v13491_v6 }
 0x68c   :  { %12848 = vmatprep.subr.bf16.mxu1 %v13489_v0 }
 0x68f   :  { %12850 = vmatpush3.bf16.msra.mxu1 %v13590_v13 }
 0x690   :  { %12854 = vmatprep.subr.bf16.mxu1 %v13489_v0 }
 0x692   :  { %11810 = vmatmul.mubr.msk.f32.vlgmr.msra.gmra.mrb[68].mxu1 %vm39_vm2, %v14455_v34 }
 0x693   :  { %12856 = vmatpush3.bf16.msra.mxu1 %v13594_v14  ;;  %11827 = vmatprep.mubr.msk.f32.mxu1 %vm13490_vm0, %v13491_v6 }
 0x694   :  { %12857 = vmatprep.subr.bf16.mxu1 %v13489_v0 }
 0x697   :  { %12859 = vmatpush3.bf16.msra.mxu1 %v13615_v20 }
 0x698   :  { %12869 = vmatprep.subr.bf16.mxu1 %v13489_v0 }
 0x69a   :  { %11828 = vmatmul.mubr.msk.f32.vlgmr.msra.gmra.mrb[70].mxu1 %vm39_vm2, %v14455_v34 }
 0x69b   :  { %12871 = vmatpush3.bf16.msra.mxu1 %v13663_v32  ;;  %11852 = vmatprep.mubr.msk.f32.mxu1 %vm13490_vm0, %v13491_v6 }
 0x69c   :  { %12872 = vmatprep.subr.bf16.mxu1 %v13489_v0 }
 0x69e   :  { %11853 = vmatmul.mubr.msk.f32.vlgmr.msra.gmra.mrb[72].mxu1 %vm113_vm1, %v14500_v63 }
 0x69f   :  { %12874 = vmatpush3.bf16.msra.mxu1 %v13680_v35  ;;  %11863 = vmatprep.mubr.msk.f32.mxu1 %vm13490_vm0, %v13491_v6 }
 0x6a0   :  { %12875 = vmatprep.subr.bf16.mxu1 %v13489_v0 }
 0x6a3   :  { %12877 = vmatpush3.bf16.msra.mxu1 %v13699_v38 }
 0x6a4   :  { %12887 = vmatprep.subr.bf16.mxu1 %v13489_v0 }
 0x6a6   :  { %11864 = vmatmul.mubr.msk.f32.vlgmr.msra.gmra.mrb[74].mxu1 %vm39_vm2, %v14455_v34 }
 0x6a7   :  { %12889 = vmatpush3.bf16.msra.mxu1 %v13804_v2  ;;  %11892 = vmatprep.mubr.msk.f32.mxu1 %vm13490_vm0, %v13491_v6 }
 0x6a8   :  { %12890 = vmatprep.subr.bf16.mxu1 %v13489_v0 }
 0x6ab   :  { %12892 = vmatpush3.bf16.msra.mxu1 %v13817_v8 }
 0x6ac   :  { %12899 = vmatprep.subr.bf16.mxu1 %v13489_v0 }
 0x745   :  { %v4679_v21 = vpop.f32.mrb[60].mxu1 }
 0x746   :  { %v4680_v27 = vadd.f32 %v4679_v21, %v14443_v7  ;;  %v11723_v52 = vpop.f32.mrb[61].mxu1 }
 0x748   :  { %v4683_v36 = vadd.f32 %v14540_v16, %v4680_v27 }
 0x74a   :  { %v10404_v29 = vmul.f32 -1.442695, %v4683_v36 }
 0x74c   :  { %13327 = vpow2.f32 %v10404_v29 }
 0x74d   :  { %v4820_v45 = vpop.f32.mrb[62].mxu1 }
 0x74e   :  { %v4821_v24 = vadd.f32 %v4820_v45, %v14445_v10  ;;  %v11745_v30 = vpop.f32.mrb[63].mxu1  ;;  %v14554_v10 = vld [vmem:[%s15282_s6 + $0x2] ss:$0 sm:$0xff] }
 0x750   :  { %v4824_v7 = vadd.f32 %v14547_v1, %v4821_v24 }
 0x752   :  { %v10405_v11 = vmul.f32 -1.442695, %v4824_v7 }
 0x754   :  { %13329 = vpow2.f32 %v10405_v11 }
 0x755   :  { %v4961_v12 = vpop.f32.mrb[64].mxu1 }
 0x756   :  { %v13328_v39 = vpop.eup %13327  ;;  %v4962_v40 = vadd.f32 %v4961_v12, %v14451_v55  ;;  %v11767_v46 = vpop.f32.mrb[65].mxu1  ;;  %v14561_v55 = vld [vmem:[%s15282_s6 + $0x3] ss:$0 sm:$0xff] }
 0x757   :  { %v5110_v60 = vadd.f32 1.0, %v13328_v39 }
 0x758   :  { %v4965_v42 = vadd.f32 %v14554_v10, %v4962_v40 }
 0x759   :  { %13331 = vrcp.f32 %v5110_v60 }
 0x75a   :  { %13333 = vtanh.f32 %v4965_v42 }
 0x75d   :  { %v5102_v17 = vpop.f32.mrb[66].mxu1 }
 0x75e   :  { %v13330_v58 = vpop.eup %13329  ;;  %v5103_v5 = vadd.f32 %v5102_v17, %v14453_v22  ;;  %v11789_v21 = vpop.f32.mrb[67].mxu1 }
 0x75f   :  { %v5116_v27 = vadd.f32 1.0, %v13330_v58 }
 0x760   :  { %v5106_v52 = vadd.f32 %v14561_v55, %v5103_v5 }
 0x761   :  { %13335 = vrcp.f32 %v5116_v27 }
 0x762   :  { %v10406_v36 = vmul.f32 -1.442695, %v5106_v52 }
 0x763   :  { %v13332_v29 = vpop.eup %13331 }
 0x764   :  { %v13334_v45 = vpop.eup %13333  ;;  %13337 = vpow2.f32 %v10406_v36 }
 0x765   :  { %v5127_v24 = vmul.f32 %v13334_v45, %v13332_v29  ;;  %v14564_v30 = vpop.f32.mrb[68].mxu1 }
 0x766   :  { %v11811_v7 = vpop.f32.mrb[69].mxu1 }
 0x76b   :  { %v13336_v11 = vpop.eup %13335 }
 0x76c   :  { %v5126_v22 = vmul.f32 %v13336_v11, %v14348_v18 }
 0x76d   :  { %v14567_v12 = vpop.f32.mrb[70].mxu1 }
 0x76e   :  { %v13338_v39 = vpop.eup %13337  ;;  %v14569_v40 = vadd.f32 %v5127_v24, %v5126_v22  ;;  %v11829_v46 = vpop.f32.mrb[71].mxu1 }
 0x76f   :  { %v5123_v60 = vadd.f32 1.0, %v13338_v39 }
 0x770   :  { %13339 = vtanh.f32 %v14569_v40 }
 0x771   :  { %13341 = vrcp.f32 %v5123_v60  ;;  %v14572_v42 = vpop.f32.mrb[72].mxu1 }
 0x772   :  { %v11854_v17 = vpop.f32.mrb[73].mxu1 }
 0x779   :  { %v14574_v58 = vpop.f32.mrb[74].mxu1 }
 0x77a   :  { %v13340_v5 = vpop.eup %13339  ;;  %v11865_v21 = vpop.f32.mrb[75].mxu1 }
 0x77b   :  { %v13342_v27 = vpop.eup %13341 }
 0x77c   :  { %v5130_v52 = vmul.f32 %v13342_v27, %v13340_v5 }
 0x77e   :  { %11799 = vmatmul.mubr.msk.f32.vlgmr.msra.gmra.mrb[66].mxu0 %vm39_vm2, %v5130_v52 }
 0x77f   :  { %12853 = vmatpush3.bf16.msra.mxu0 %v13577_v9  ;;  %11816 = vmatprep.mubr.msk.f32.mxu0 %vm13490_vm0, %v13491_v6 }
 0x780   :  { %12860 = vmatprep.subr.bf16.mxu0 %v13489_v0 }
 0x782   :  { %11817 = vmatmul.mubr.msk.f32.vlgmr.msra.gmra.mrb[68].mxu0 %vm113_vm1, %v14500_v63 }
 0x783   :  { %12862 = vmatpush3.bf16.msra.mxu0 %v13640_v26  ;;  %11834 = vmatprep.mubr.msk.f32.mxu0 %vm13490_vm0, %v13491_v6 }
 0x784   :  { %12863 = vmatprep.subr.bf16.mxu0 %v13489_v0 }
 0x786   :  { %11835 = vmatmul.mubr.msk.f32.vlgmr.msra.gmra.mrb[70].mxu0 %vm113_vm1, %v14500_v63 }
 0x787   :  { %12865 = vmatpush3.bf16.msra.mxu0 %v13612_v19  ;;  %11845 = vmatprep.mubr.msk.f32.mxu0 %vm13490_vm0, %v13491_v6 }
 0x788   :  { %12866 = vmatprep.subr.bf16.mxu0 %v13489_v0 }
 0x78b   :  { %12868 = vmatpush3.bf16.msra.mxu0 %v13635_v25 }
 0x78c   :  { %12878 = vmatprep.subr.bf16.mxu0 %v13489_v0 }
 0x78e   :  { %11846 = vmatmul.mubr.msk.f32.vlgmr.msra.gmra.mrb[72].mxu0 %vm39_vm2, %v14455_v34 }
 0x78f   :  { %12880 = vmatpush3.bf16.msra.mxu0 %v13658_v31  ;;  %11870 = vmatprep.mubr.msk.f32.mxu0 %vm13490_vm0, %v13491_v6 }
 0x790   :  { %12881 = vmatprep.subr.bf16.mxu0 %v13489_v0 }
 0x792   :  { %11871 = vmatmul.mubr.msk.f32.vlgmr.msra.gmra.mrb[74].mxu0 %vm113_vm1, %v14500_v63 }
 0x793   :  { %12883 = vmatpush3.bf16.msra.mxu0 %v13715_v41  ;;  %11881 = vmatprep.mubr.msk.f32.mxu0 %vm13490_vm0, %v13491_v6 }
 0x794   :  { %12884 = vmatprep.subr.bf16.mxu0 %v13489_v0 }
 0x797   :  { %12886 = vmatpush3.bf16.msra.mxu0 %v13725_v44 }
 0x798   :  { %12893 = vmatprep.subr.bf16.mxu0 %v13489_v0 }
 0x79a   :  { %11882 = vmatmul.mubr.msk.f32.vlgmr.msra.gmra.mrb[76].mxu0 %vm39_vm2, %v5130_v52 }
 0x79b   :  { %12895 = vmatpush3.bf16.msra.mxu0 %v13735_v47  ;;  %11903 = vmatprep.mubr.msk.f32.mxu0 %vm13490_vm0, %v13491_v6 }
 0x79c   :  { %12896 = vmatprep.subr.bf16.mxu0 %v13489_v0 }
 0x79f   :  { %12898 = vmatpush3.bf16.msra.mxu0 %v13748_v50 }
 0x7a0   :  { %12905 = vmatprep.subr.bf16.mxu0 %v13489_v0 }
 0x7a2   :  { %11904 = vmatmul.mubr.msk.f32.vlgmr.msra.gmra.mrb[78].mxu0 %vm39_vm2, %v5130_v52 }
 0x7a3   :  { %12907 = vmatpush3.bf16.msra.mxu0 %v13758_v53  ;;  %11925 = vmatprep.mubr.msk.f32.mxu0 %vm13490_vm0, %v13491_v6 }
 0x7a4   :  { %12908 = vmatprep.subr.bf16.mxu0 %v13489_v0 }
 0x7a7   :  { %12910 = vmatpush3.bf16.msra.mxu0 %v13771_v56 }
 0x7a8   :  { %12917 = vmatprep.subr.bf16.mxu0 %v13489_v0 }
 0x7aa   :  { %11926 = vmatmul.mubr.msk.f32.vlgmr.msra.gmra.mrb[80].mxu0 %vm39_vm2, %v5130_v52 }
 0x7ab   :  { %12919 = vmatpush3.bf16.msra.mxu0 %v13781_v59  ;;  %11947 = vmatprep.mubr.msk.f32.mxu0 %vm13490_vm0, %v13491_v6 }
 0x7ac   :  { %12920 = vmatprep.subr.bf16.mxu0 %v13489_v0 }
 0x7af   :  { %12922 = vmatpush3.bf16.msra.mxu0 %v13794_v62 }
 0x7b0   :  { %12929 = vmatprep.subr.bf16.mxu0 %v13489_v0 }
 0x7b2   :  { %11948 = vmatmul.mubr.msk.f32.vlgmr.msra.gmra.mrb[82].mxu0 %vm39_vm2, %v5130_v52 }
 0x7b3   :  { %11969 = vmatprep.mubr.msk.f32.mxu0 %vm13490_vm0, %v13491_v6 }
 0x851   :  { %v5204_v18 = vpop.f32.mrb[66].mxu0 }
 0x852   :  { %v14634_v34 = vadd.f32 %v5204_v18, %v14413_v57  ;;  %v11800_v63 = vpop.f32.mrb[67].mxu0 }
 0x855   :  { %v5349_v36 = vpop.f32.mrb[68].mxu0 }
 0x856   :  { %v5350_v29 = vadd.f32 %v5349_v36, %v14564_v30  ;;  %v11818_v45 = vpop.f32.mrb[69].mxu0 }
 0x858   :  { %v5353_v24 = vadd.f32 %v14419_v15, %v5350_v29 }
 0x859   :  { %v5490_v7 = vpop.f32.mrb[70].mxu0 }
 0x85a   :  { %v10416_v11 = vmul.f32 -1.442695, %v5353_v24  ;;  %v5491_v22 = vadd.f32 %v5490_v7, %v14567_v12  ;;  %v11836_v39 = vpop.f32.mrb[71].mxu0 }
 0x85c   :  { %13343 = vpow2.f32 %v10416_v11  ;;  %v5494_v46 = vadd.f32 %v14426_v49, %v5491_v22 }
 0x85e   :  { %v10417_v60 = vmul.f32 -1.442695, %v5494_v46 }
 0x860   :  { %13345 = vpow2.f32 %v10417_v60 }
 0x861   :  { %v5561_v17 = vpop.f32.mrb[72].mxu0 }
 0x862   :  { %v5632_v57 = vadd.f32 %v14572_v42, %v5561_v17  ;;  %v11847_v5 = vpop.f32.mrb[73].mxu0 }
 0x864   :  { %v5635_v21 = vadd.f32 %v14433_v51, %v5632_v57 }
 0x865   :  { %v5772_v30 = vpop.f32.mrb[74].mxu0 }
 0x866   :  { %v13344_v27 = vpop.eup %13343  ;;  %v5773_v52 = vadd.f32 %v5772_v30, %v14574_v58  ;;  %v11872_v18 = vpop.f32.mrb[75].mxu0  ;;  %13347 = vtanh.f32 %v5635_v21 }
 0x867   :  { %v5780_v63 = vadd.f32 1.0, %v13344_v27 }
 0x868   :  { %v5776_v12 = vadd.f32 %v14440_v3, %v5773_v52 }
 0x869   :  { %13349 = vrcp.f32 %v5780_v63 }
 0x86a   :  { %v13346_v36 = vpop.eup %13345  ;;  %v10418_v29 = vmul.f32 -1.442695, %v5776_v12 }
 0x86b   :  { %v5786_v45 = vadd.f32 1.0, %v13346_v36  ;;  %v6392_v36 = vld [vmem:[%s15283_s7 + $0x80] sm:$0xff] }
 0x86c   :  { %13351 = vpow2.f32 %v10418_v29  ;;  %v6393_v29 = vld [vmem:[%s15283_s7 + $0x88] sm:$0xff] }
 0x86d   :  { %13353 = vrcp.f32 %v5786_v45  ;;  %v14644_v24 = vpop.f32.mrb[76].mxu0  ;;  %v12930_v45 = vpack.c.bf16 %v6393_v29, %v6392_v36 }
 0x86e   :  { %v11883_v42 = vpop.f32.mrb[77].mxu0 }
 0x86f   :  { %12931 = vmatpush3.bf16.msra.mxu0 %v12930_v45  ;;  %v6394_v42 = vld [vmem:[%s15283_s7 + $0x90] sm:$0xff] }
 0x870   :  { %v13348_v7 = vpop.eup %13347  ;;  %12932 = vmatprep.subr.bf16.mxu0 %v13489_v0 }
 0x873   :  { %v13350_v11 = vpop.eup %13349 }
 0x874   :  { %v5797_v22 = vmul.f32 %v13350_v11, %v13348_v7  ;;  %v6395_v7 = vld [vmem:[%s15283_s7 + $0x98] sm:$0xff] }
 0x875   :  { %v14646_v39 = vpop.f32.mrb[78].mxu0  ;;  %v12933_v11 = vpack.c.bf16 %v6395_v7, %v6394_v42 }
 0x876   :  { %v13352_v58 = vpop.eup %13351  ;;  %v11905_v46 = vpop.f32.mrb[79].mxu0 }
 0x877   :  { %v13354_v60 = vpop.eup %13353  ;;  %v5793_v17 = vadd.f32 1.0, %v13352_v58  ;;  %12934 = vmatpush3.bf16.msra.mxu0 %v12933_v11 }
 0x878   :  { %v5796_v57 = vmul.f32 %v13354_v60, %v14448_v61  ;;  %v14701_v61 = vpop.permute.xlu0 %6540  ;;  %12941 = vmatprep.subr.bf16.mxu0 %v13489_v0 }
 0x879   :  { %13355 = vrcp.f32 %v5793_v17 }
 0x87a   :  { %v14649_v5 = vadd.f32 %v5797_v22, %v5796_v57 }
 0x87c   :  { %13357 = vtanh.f32 %v14649_v5 }
 0x87d   :  { %v14652_v21 = vpop.f32.mrb[80].mxu0 }
 0x87e   :  { %v11927_v30 = vpop.f32.mrb[81].mxu0 }
 0x883   :  { %v13356_v27 = vpop.eup %13355 }
 0x885   :  { %v14654_v52 = vpop.f32.mrb[82].mxu0 }
 0x886   :  { %v13358_v18 = vpop.eup %13357  ;;  %v11949_v63 = vpop.f32.mrb[83].mxu0 }
 0x887   :  { %v14656_v12 = vmul.f32 %v13358_v18, %v13356_v27 }
 0x889   :  { %11893 = vmatmul.mubr.msk.f32.vlgmr.msra.gmra.mrb[76].mxu1 %vm39_vm2, %v14656_v12 }
 0x88a   :  { %12901 = vmatpush3.bf16.msra.mxu1 %v13858_v23  ;;  %11914 = vmatprep.mubr.msk.f32.mxu1 %vm13490_vm0, %v13491_v6 }
 0x88b   :  { %12902 = vmatprep.subr.bf16.mxu1 %v13489_v0 }
 0x88e   :  { %12904 = vmatpush3.bf16.msra.mxu1 %v13874_v33 }
 0x88f   :  { %12911 = vmatprep.subr.bf16.mxu1 %v13489_v0 }
 0x891   :  { %11915 = vmatmul.mubr.msk.f32.vlgmr.msra.gmra.mrb[78].mxu1 %vm39_vm2, %v14656_v12 }
 0x892   :  { %12913 = vmatpush3.bf16.msra.mxu1 %v13891_v37  ;;  %11936 = vmatprep.mubr.msk.f32.mxu1 %vm13490_vm0, %v13491_v6 }
 0x893   :  { %12914 = vmatprep.subr.bf16.mxu1 %v13489_v0 }
 0x896   :  { %12916 = vmatpush3.bf16.msra.mxu1 %v13907_v43 }
 0x897   :  { %12923 = vmatprep.subr.bf16.mxu1 %v13489_v0 }
 0x899   :  { %11937 = vmatmul.mubr.msk.f32.vlgmr.msra.gmra.mrb[80].mxu1 %vm39_vm2, %v14656_v12 }
 0x89a   :  { %12925 = vmatpush3.bf16.msra.mxu1 %v13922_v48  ;;  %11958 = vmatprep.mubr.msk.f32.mxu1 %vm13490_vm0, %v13491_v6 }
 0x89b   :  { %12926 = vmatprep.subr.bf16.mxu1 %v13489_v0 }
 0x89e   :  { %12928 = vmatpush3.bf16.msra.mxu1 %v13939_v54 }
 0x89f   :  { %12935 = vmatprep.subr.bf16.mxu1 %v13489_v0 }
 0x8a1   :  { %11959 = vmatmul.mubr.msk.f32.vlgmr.msra.gmra.mrb[82].mxu1 %vm39_vm2, %v14656_v12 }
 0x8a2   :  { %12937 = vmatpush3.bf16.msra.mxu1 %v13560_v4  ;;  %11980 = vmatprep.mubr.msk.f32.mxu1 %vm13490_vm0, %v13491_v6 }
 0x8a3   :  { %12938 = vmatprep.subr.bf16.mxu1 %v13489_v0 }
 0x8a6   :  { %12940 = vmatpush3.bf16.msra.mxu1 %v13590_v13 }
 0x8a7   :  { %12944 = vmatprep.subr.bf16.mxu1 %v13489_v0 }
 0x8a9   :  { %11981 = vmatmul.mubr.msk.f32.vlgmr.msra.gmra.mrb[84].mxu1 %vm39_vm2, %v14656_v12 }
 0x8aa   :  { %12946 = vmatpush3.bf16.msra.mxu1 %v13594_v14  ;;  %11998 = vmatprep.mubr.msk.f32.mxu1 %vm13490_vm0, %v13491_v6 }
 0x8ab   :  { %12947 = vmatprep.subr.bf16.mxu1 %v13489_v0 }
 0x8ae   :  { %12949 = vmatpush3.bf16.msra.mxu1 %v13615_v20 }
 0x8af   :  { %12959 = vmatprep.subr.bf16.mxu1 %v13489_v0 }
 0x8b1   :  { %11999 = vmatmul.mubr.msk.f32.vlgmr.msra.gmra.mrb[86].mxu1 %vm39_vm2, %v14656_v12 }
 0x8b2   :  { %12961 = vmatpush3.bf16.msra.mxu1 %v13663_v32  ;;  %12023 = vmatprep.mubr.msk.f32.mxu1 %vm13490_vm0, %v13491_v6 }
 0x8b3   :  { %12962 = vmatprep.subr.bf16.mxu1 %v13489_v0 }
 0x8b5   :  { %12024 = vmatmul.mubr.msk.f32.vlgmr.msra.gmra.mrb[88].mxu1 %vm113_vm1, %v14701_v61 }
 0x8b6   :  { %12964 = vmatpush3.bf16.msra.mxu1 %v13680_v35  ;;  %12034 = vmatprep.mubr.msk.f32.mxu1 %vm13490_vm0, %v13491_v6 }
 0x8b7   :  { %12965 = vmatprep.subr.bf16.mxu1 %v13489_v0 }
 0x8ba   :  { %12967 = vmatpush3.bf16.msra.mxu1 %v13699_v38 }
 0x8bb   :  { %12977 = vmatprep.subr.bf16.mxu1 %v13489_v0 }
 0x8bd   :  { %12035 = vmatmul.mubr.msk.f32.vlgmr.msra.gmra.mrb[90].mxu1 %vm39_vm2, %v14656_v12 }
 0x8be   :  { %12979 = vmatpush3.bf16.msra.mxu1 %v13804_v2  ;;  %12063 = vmatprep.mubr.msk.f32.mxu1 %vm13490_vm0, %v13491_v6 }
 0x8bf   :  { %12980 = vmatprep.subr.bf16.mxu1 %v13489_v0 }
 0x8c2   :  { %12982 = vmatpush3.bf16.msra.mxu1 %v13817_v8 }
 0x8c3   :  { %12989 = vmatprep.subr.bf16.mxu1 %v13489_v0 }
 0x95c   :  { %v5940_v22 = vpop.f32.mrb[76].mxu1 }
 0x95d   :  { %v5941_v58 = vadd.f32 %v5940_v22, %v14644_v24  ;;  %v11894_v46 = vpop.f32.mrb[77].mxu1 }
 0x95f   :  { %v5944_v60 = vadd.f32 %v14540_v16, %v5941_v58 }
 0x961   :  { %v10427_v17 = vmul.f32 -1.442695, %v5944_v60 }
 0x963   :  { %13359 = vpow2.f32 %v10427_v17 }
 0x964   :  { %v6081_v57 = vpop.f32.mrb[78].mxu1 }
 0x965   :  { %v6082_v30 = vadd.f32 %v6081_v57, %v14646_v39  ;;  %v11916_v27 = vpop.f32.mrb[79].mxu1 }
 0x967   :  { %v6085_v18 = vadd.f32 %v14547_v1, %v6082_v30 }
 0x969   :  { %v10428_v63 = vmul.f32 -1.442695, %v6085_v18 }
 0x96b   :  { %13361 = vpow2.f32 %v10428_v63 }
 0x96c   :  { %v6222_v36 = vpop.f32.mrb[80].mxu1 }
 0x96d   :  { %v13360_v29 = vpop.eup %13359  ;;  %v6223_v28 = vadd.f32 %v6222_v36, %v14652_v21  ;;  %v11938_v45 = vpop.f32.mrb[81].mxu1 }
 0x96e   :  { %v6371_v42 = vadd.f32 1.0, %v13360_v29 }
 0x96f   :  { %v6226_v24 = vadd.f32 %v14554_v10, %v6223_v28 }
 0x970   :  { %13363 = vrcp.f32 %v6371_v42 }
 0x971   :  { %13365 = vtanh.f32 %v6226_v24 }
 0x974   :  { %v6363_v7 = vpop.f32.mrb[82].mxu1 }
 0x975   :  { %v13362_v11 = vpop.eup %13361  ;;  %v6364_v22 = vadd.f32 %v6363_v7, %v14654_v52  ;;  %v11960_v39 = vpop.f32.mrb[83].mxu1 }
 0x976   :  { %v6377_v58 = vadd.f32 1.0, %v13362_v11 }
 0x977   :  { %v6367_v46 = vadd.f32 %v14561_v55, %v6364_v22 }
 0x978   :  { %13367 = vrcp.f32 %v6377_v58 }
 0x979   :  { %v10429_v60 = vmul.f32 -1.442695, %v6367_v46 }
 0x97a   :  { %v13364_v17 = vpop.eup %13363 }
 0x97b   :  { %v13366_v57 = vpop.eup %13365  ;;  %13369 = vpow2.f32 %v10429_v60 }
 0x97c   :  { %v6388_v21 = vmul.f32 %v13366_v57, %v13364_v17  ;;  %v14745_v30 = vpop.f32.mrb[84].mxu1 }
 0x97d   :  { %v11982_v27 = vpop.f32.mrb[85].mxu1 }
 0x982   :  { %v13368_v18 = vpop.eup %13367 }
 0x983   :  { %v6387_v63 = vmul.f32 %v13368_v18, %v14569_v40 }
 0x984   :  { %v14748_v36 = vpop.f32.mrb[86].mxu1 }
 0x985   :  { %v13370_v29 = vpop.eup %13369  ;;  %v14750_v52 = vadd.f32 %v6388_v21, %v6387_v63  ;;  %v12000_v28 = vpop.f32.mrb[87].mxu1 }
 0x986   :  { %v6384_v45 = vadd.f32 1.0, %v13370_v29 }
 0x987   :  { %13371 = vtanh.f32 %v14750_v52 }
 0x988   :  { %13373 = vrcp.f32 %v6384_v45  ;;  %v14753_v42 = vpop.f32.mrb[88].mxu1 }
 0x989   :  { %v12025_v24 = vpop.f32.mrb[89].mxu1 }
 0x990   :  { %v14755_v7 = vpop.f32.mrb[90].mxu1 }
 0x991   :  { %v13372_v11 = vpop.eup %13371  ;;  %v12036_v22 = vpop.f32.mrb[91].mxu1 }
 0x992   :  { %v13374_v39 = vpop.eup %13373 }
 0x993   :  { %v6391_v58 = vmul.f32 %v13374_v39, %v13372_v11 }
 0x995   :  { %11970 = vmatmul.mubr.msk.f32.vlgmr.msra.gmra.mrb[84].mxu0 %vm39_vm2, %v6391_v58 }
 0x996   :  { %12943 = vmatpush3.bf16.msra.mxu0 %v13577_v9  ;;  %11987 = vmatprep.mubr.msk.f32.mxu0 %vm13490_vm0, %v13491_v6 }
 0x997   :  { %12950 = vmatprep.subr.bf16.mxu0 %v13489_v0 }
 0x999   :  { %11988 = vmatmul.mubr.msk.f32.vlgmr.msra.gmra.mrb[86].mxu0 %vm113_vm1, %v14701_v61 }
 0x99a   :  { %12952 = vmatpush3.bf16.msra.mxu0 %v13640_v26  ;;  %12005 = vmatprep.mubr.msk.f32.mxu0 %vm13490_vm0, %v13491_v6 }
 0x99b   :  { %12953 = vmatprep.subr.bf16.mxu0 %v13489_v0 }
 0x99d   :  { %12006 = vmatmul.mubr.msk.f32.vlgmr.msra.gmra.mrb[88].mxu0 %vm113_vm1, %v14701_v61 }
 0x99e   :  { %12955 = vmatpush3.bf16.msra.mxu0 %v13612_v19  ;;  %12016 = vmatprep.mubr.msk.f32.mxu0 %vm13490_vm0, %v13491_v6 }
 0x99f   :  { %12956 = vmatprep.subr.bf16.mxu0 %v13489_v0 }
 0x9a2   :  { %12958 = vmatpush3.bf16.msra.mxu0 %v13635_v25 }
 0x9a3   :  { %12968 = vmatprep.subr.bf16.mxu0 %v13489_v0 }
 0x9a5   :  { %12017 = vmatmul.mubr.msk.f32.vlgmr.msra.gmra.mrb[90].mxu0 %vm39_vm2, %v14656_v12 }
 0x9a6   :  { %12970 = vmatpush3.bf16.msra.mxu0 %v13658_v31  ;;  %12041 = vmatprep.mubr.msk.f32.mxu0 %vm13490_vm0, %v13491_v6 }
 0x9a7   :  { %12971 = vmatprep.subr.bf16.mxu0 %v13489_v0 }
 0x9a9   :  { %12042 = vmatmul.mubr.msk.f32.vlgmr.msra.gmra.mrb[92].mxu0 %vm113_vm1, %v14701_v61 }
 0x9aa   :  { %12973 = vmatpush3.bf16.msra.mxu0 %v13715_v41  ;;  %12052 = vmatprep.mubr.msk.f32.mxu0 %vm13490_vm0, %v13491_v6 }
 0x9ab   :  { %12974 = vmatprep.subr.bf16.mxu0 %v13489_v0 }
 0x9ae   :  { %12976 = vmatpush3.bf16.msra.mxu0 %v13725_v44 }
 0x9af   :  { %12983 = vmatprep.subr.bf16.mxu0 %v13489_v0 }
 0x9b1   :  { %12053 = vmatmul.mubr.msk.f32.vlgmr.msra.gmra.mrb[94].mxu0 %vm39_vm2, %v6391_v58 }
 0x9b2   :  { %12985 = vmatpush3.bf16.msra.mxu0 %v13735_v47  ;;  %12074 = vmatprep.mubr.msk.f32.mxu0 %vm13490_vm0, %v13491_v6 }
 0x9b3   :  { %12986 = vmatprep.subr.bf16.mxu0 %v13489_v0 }
 0x9b6   :  { %12988 = vmatpush3.bf16.msra.mxu0 %v13748_v50 }
 0x9b7   :  { %12995 = vmatprep.subr.bf16.mxu0 %v13489_v0 }
 0x9b9   :  { %12075 = vmatmul.mubr.msk.f32.vlgmr.msra.gmra.mrb[96].mxu0 %vm39_vm2, %v6391_v58 }
 0x9ba   :  { %12997 = vmatpush3.bf16.msra.mxu0 %v13758_v53  ;;  %12096 = vmatprep.mubr.msk.f32.mxu0 %vm13490_vm0, %v13491_v6 }
 0x9bb   :  { %12998 = vmatprep.subr.bf16.mxu0 %v13489_v0 }
 0x9be   :  { %13000 = vmatpush3.bf16.msra.mxu0 %v13771_v56 }
 0x9bf   :  { %13007 = vmatprep.subr.bf16.mxu0 %v13489_v0 }
 0x9c1   :  { %12097 = vmatmul.mubr.msk.f32.vlgmr.msra.gmra.mrb[98].mxu0 %vm39_vm2, %v6391_v58 }
 0x9c2   :  { %13009 = vmatpush3.bf16.msra.mxu0 %v13781_v59  ;;  %12118 = vmatprep.mubr.msk.f32.mxu0 %vm13490_vm0, %v13491_v6 }
 0x9c3   :  { %13010 = vmatprep.subr.bf16.mxu0 %v13489_v0 }
 0x9c6   :  { %13012 = vmatpush3.bf16.msra.mxu0 %v13794_v62 }
 0x9c7   :  { %13019 = vmatprep.subr.bf16.mxu0 %v13489_v0 }
 0x9c9   :  { %12119 = vmatmul.mubr.msk.f32.vlgmr.msra.gmra.mrb[100].mxu0 %vm39_vm2, %v6391_v58 }
 0x9ca   :  { %12140 = vmatprep.mubr.msk.f32.mxu0 %vm13490_vm0, %v13491_v6 }
 0xa68   :  { %v6465_v40 = vpop.f32.mrb[84].mxu0 }
 0xa69   :  { %v14815_v12 = vadd.f32 %v6465_v40, %v14634_v34  ;;  %v11971_v61 = vpop.f32.mrb[85].mxu0 }
 0xa6c   :  { %v6610_v46 = vpop.f32.mrb[86].mxu0 }
 0xa6d   :  { %v6611_v60 = vadd.f32 %v6610_v46, %v14745_v30  ;;  %v11989_v17 = vpop.f32.mrb[87].mxu0 }
 0xa6f   :  { %v6614_v57 = vadd.f32 %v14419_v15, %v6611_v60 }
 0xa70   :  { %v6751_v21 = vpop.f32.mrb[88].mxu0 }
 0xa71   :  { %v10439_v27 = vmul.f32 -1.442695, %v6614_v57  ;;  %v6752_v18 = vadd.f32 %v6751_v21, %v14748_v36  ;;  %v12007_v63 = vpop.f32.mrb[89].mxu0 }
 0xa73   :  { %13375 = vpow2.f32 %v10439_v27  ;;  %v6755_v29 = vadd.f32 %v14426_v49, %v6752_v18 }
 0xa75   :  { %v10440_v28 = vmul.f32 -1.442695, %v6755_v29 }
 0xa77   :  { %13377 = vpow2.f32 %v10440_v28 }
 0xa78   :  { %v6822_v45 = vpop.f32.mrb[90].mxu0 }
 0xa79   :  { %v6893_v34 = vadd.f32 %v14753_v42, %v6822_v45  ;;  %v12018_v24 = vpop.f32.mrb[91].mxu0 }
 0xa7b   :  { %v6896_v11 = vadd.f32 %v14433_v51, %v6893_v34 }
 0xa7c   :  { %v7033_v30 = vpop.f32.mrb[92].mxu0 }
 0xa7d   :  { %v13376_v22 = vpop.eup %13375  ;;  %v7034_v15 = vadd.f32 %v7033_v30, %v14755_v7  ;;  %v12043_v39 = vpop.f32.mrb[93].mxu0  ;;  %13379 = vtanh.f32 %v6896_v11 }
 0xa7e   :  { %v7041_v58 = vadd.f32 1.0, %v13376_v22  ;;  %v7653_v22 = vld [vmem:[%s15283_s7 + $0xa0] sm:$0xff] }
 0xa7f   :  { %v7037_v36 = vadd.f32 %v14440_v3, %v7034_v15  ;;  %v7654_v15 = vld [vmem:[%s15283_s7 + $0xa8] sm:$0xff] }
 0xa80   :  { %13381 = vrcp.f32 %v7041_v58  ;;  %v13020_v39 = vpack.c.bf16 %v7654_v15, %v7653_v22  ;;  %v7655_v58 = vld [vmem:[%s15283_s7 + $0xb0] sm:$0xff] }
 0xa81   :  { %v13378_v40 = vpop.eup %13377  ;;  %v10441_v49 = vmul.f32 -1.442695, %v7037_v36  ;;  %v7656_v36 = vld [vmem:[%s15283_s7 + $0xb8] sm:$0xff] }
 0xa82   :  { %v7047_v61 = vadd.f32 1.0, %v13378_v40  ;;  %13021 = vmatpush3.bf16.msra.mxu0 %v13020_v39  ;;  %v13023_v40 = vpack.c.bf16 %v7656_v36, %v7655_v58 }
 0xa83   :  { %13383 = vpow2.f32 %v10441_v49  ;;  %13022 = vmatprep.subr.bf16.mxu0 %v13489_v0  ;;  %v13480_v49 = vld [vmem:[%s15278_s0] sm:$0x3] }
 0xa84   :  { %13385 = vrcp.f32 %v7047_v61  ;;  %v14825_v46 = vpop.f32.mrb[94].mxu0  ;;  %9062 = vrot.lane.b32.xlu0 %v13480_v49, %s13498_s22 }
 0xa85   :  { %v12054_v42 = vpop.f32.mrb[95].mxu0 }
 0xa86   :  { %13024 = vmatpush3.bf16.msra.mxu0 %v13023_v40 }
 0xa87   :  { %v13380_v60 = vpop.eup %13379  ;;  %13031 = vmatprep.subr.bf16.mxu0 %v13489_v0 }
 0xa8a   :  { %v13382_v51 = vpop.eup %13381 }
 0xa8b   :  { %v7058_v17 = vmul.f32 %v13382_v51, %v13380_v60 }
 0xa8c   :  { %v14827_v57 = vpop.f32.mrb[96].mxu0 }
 0xa8d   :  { %v13384_v7 = vpop.eup %13383  ;;  %v12076_v21 = vpop.f32.mrb[97].mxu0 }
 0xa8e   :  { %v13386_v27 = vpop.eup %13385  ;;  %v7054_v18 = vadd.f32 1.0, %v13384_v7 }
 0xa8f   :  { %v7057_v3 = vmul.f32 %v13386_v27, %v14649_v5  ;;  %v14882_v5 = vpop.permute.xlu1 %7801 }
 0xa90   :  { %13387 = vrcp.f32 %v7054_v18 }
 0xa91   :  { %v14830_v63 = vadd.f32 %v7058_v17, %v7057_v3 }
 0xa93   :  { %13389 = vtanh.f32 %v14830_v63 }
 0xa94   :  { %v14833_v29 = vpop.f32.mrb[98].mxu0 }
 0xa95   :  { %v12098_v28 = vpop.f32.mrb[99].mxu0 }
 0xa9a   :  { %v13388_v45 = vpop.eup %13387 }
 0xa9c   :  { %v14835_v34 = vpop.f32.mrb[100].mxu0 }
 0xa9d   :  { %v13390_v24 = vpop.eup %13389  ;;  %v12120_v11 = vpop.f32.mrb[101].mxu0 }
 0xa9e   :  { %v14837_v30 = vmul.f32 %v13390_v24, %v13388_v45 }
 0xaa0   :  { %12064 = vmatmul.mubr.msk.f32.vlgmr.msra.gmra.mrb[92].mxu1 %vm39_vm2, %v14837_v30 }
 0xaa1   :  { %12991 = vmatpush3.bf16.msra.mxu1 %v13858_v23  ;;  %12085 = vmatprep.mubr.msk.f32.mxu1 %vm13490_vm0, %v13491_v6 }
 0xaa2   :  { %12992 = vmatprep.subr.bf16.mxu1 %v13489_v0 }
 0xaa5   :  { %12994 = vmatpush3.bf16.msra.mxu1 %v13874_v33 }
 0xaa6   :  { %13001 = vmatprep.subr.bf16.mxu1 %v13489_v0 }
 0xaa8   :  { %12086 = vmatmul.mubr.msk.f32.vlgmr.msra.gmra.mrb[94].mxu1 %vm39_vm2, %v14837_v30 }
 0xaa9   :  { %13003 = vmatpush3.bf16.msra.mxu1 %v13891_v37  ;;  %12107 = vmatprep.mubr.msk.f32.mxu1 %vm13490_vm0, %v13491_v6 }
 0xaaa   :  { %13004 = vmatprep.subr.bf16.mxu1 %v13489_v0 }
 0xaad   :  { %13006 = vmatpush3.bf16.msra.mxu1 %v13907_v43 }
 0xaae   :  { %13013 = vmatprep.subr.bf16.mxu1 %v13489_v0 }
 0xab0   :  { %12108 = vmatmul.mubr.msk.f32.vlgmr.msra.gmra.mrb[96].mxu1 %vm39_vm2, %v14837_v30 }
 0xab1   :  { %13015 = vmatpush3.bf16.msra.mxu1 %v13922_v48  ;;  %12129 = vmatprep.mubr.msk.f32.mxu1 %vm13490_vm0, %v13491_v6 }
 0xab2   :  { %13016 = vmatprep.subr.bf16.mxu1 %v13489_v0 }
 0xab5   :  { %13018 = vmatpush3.bf16.msra.mxu1 %v13939_v54 }
 0xab6   :  { %13025 = vmatprep.subr.bf16.mxu1 %v13489_v0 }
 0xab8   :  { %12130 = vmatmul.mubr.msk.f32.vlgmr.msra.gmra.mrb[98].mxu1 %vm39_vm2, %v14837_v30 }
 0xab9   :  { %13027 = vmatpush3.bf16.msra.mxu1 %v13560_v4  ;;  %12151 = vmatprep.mubr.msk.f32.mxu1 %vm13490_vm0, %v13491_v6 }
 0xaba   :  { %13028 = vmatprep.subr.bf16.mxu1 %v13489_v0 }
 0xabd   :  { %13030 = vmatpush3.bf16.msra.mxu1 %v13590_v13 }
 0xabe   :  { %13034 = vmatprep.subr.bf16.mxu1 %v13489_v0 }
 0xac0   :  { %12152 = vmatmul.mubr.msk.f32.vlgmr.msra.gmra.mrb[100].mxu1 %vm39_vm2, %v14837_v30 }
 0xac1   :  { %13036 = vmatpush3.bf16.msra.mxu1 %v13594_v14  ;;  %12169 = vmatprep.mubr.msk.f32.mxu1 %vm13490_vm0, %v13491_v6 }
 0xac2   :  { %13037 = vmatprep.subr.bf16.mxu1 %v13489_v0 }
 0xac5   :  { %13039 = vmatpush3.bf16.msra.mxu1 %v13615_v20 }
 0xac6   :  { %13049 = vmatprep.subr.bf16.mxu1 %v13489_v0 }
 0xac8   :  { %12170 = vmatmul.mubr.msk.f32.vlgmr.msra.gmra.mrb[102].mxu1 %vm39_vm2, %v14837_v30 }
 0xac9   :  { %13051 = vmatpush3.bf16.msra.mxu1 %v13663_v32  ;;  %12194 = vmatprep.mubr.msk.f32.mxu1 %vm13490_vm0, %v13491_v6 }
 0xaca   :  { %13052 = vmatprep.subr.bf16.mxu1 %v13489_v0 }
 0xacc   :  { %12195 = vmatmul.mubr.msk.f32.vlgmr.msra.gmra.mrb[104].mxu1 %vm113_vm1, %v14882_v5 }
 0xacd   :  { %13054 = vmatpush3.bf16.msra.mxu1 %v13680_v35  ;;  %12205 = vmatprep.mubr.msk.f32.mxu1 %vm13490_vm0, %v13491_v6 }
 0xace   :  { %13055 = vmatprep.subr.bf16.mxu1 %v13489_v0 }
 0xad1   :  { %13057 = vmatpush3.bf16.msra.mxu1 %v13699_v38 }
 0xad2   :  { %13067 = vmatprep.subr.bf16.mxu1 %v13489_v0 }
 0xad4   :  { %12206 = vmatmul.mubr.msk.f32.vlgmr.msra.gmra.mrb[106].mxu1 %vm39_vm2, %v14837_v30 }
 0xad5   :  { %13069 = vmatpush3.bf16.msra.mxu1 %v13804_v2  ;;  %12234 = vmatprep.mubr.msk.f32.mxu1 %vm13490_vm0, %v13491_v6 }
 0xad6   :  { %13070 = vmatprep.subr.bf16.mxu1 %v13489_v0 }
 0xad9   :  { %13072 = vmatpush3.bf16.msra.mxu1 %v13817_v8 }
 0xada   :  { %13079 = vmatprep.subr.bf16.mxu1 %v13489_v0 }
 0xb73   :  { %v7201_v61 = vpop.f32.mrb[92].mxu1 }
 0xb74   :  { %v7202_v42 = vadd.f32 %v7201_v61, %v14825_v46  ;;  %v12065_v60 = vpop.f32.mrb[93].mxu1 }
 0xb76   :  { %v7205_v51 = vadd.f32 %v14540_v16, %v7202_v42 }
 0xb78   :  { %v10450_v17 = vmul.f32 -1.442695, %v7205_v51 }
 0xb7a   :  { %13391 = vpow2.f32 %v10450_v17 }
 0xb7b   :  { %v7342_v7 = vpop.f32.mrb[94].mxu1 }
 0xb7c   :  { %v7343_v21 = vadd.f32 %v7342_v7, %v14827_v57  ;;  %v12087_v27 = vpop.f32.mrb[95].mxu1 }
 0xb7e   :  { %v7346_v18 = vadd.f32 %v14547_v1, %v7343_v21 }
 0xb80   :  { %v10451_v3 = vmul.f32 -1.442695, %v7346_v18 }
 0xb82   :  { %13393 = vpow2.f32 %v10451_v3 }
 0xb83   :  { %v7483_v28 = vpop.f32.mrb[96].mxu1 }
 0xb84   :  { %v13392_v45 = vpop.eup %13391  ;;  %v7484_v24 = vadd.f32 %v7483_v28, %v14833_v29  ;;  %v12109_v11 = vpop.f32.mrb[97].mxu1 }
 0xb85   :  { %v7632_v22 = vadd.f32 1.0, %v13392_v45 }
 0xb86   :  { %v7487_v46 = vadd.f32 %v14554_v10, %v7484_v24 }
 0xb87   :  { %13395 = vrcp.f32 %v7632_v22 }
 0xb88   :  { %13397 = vtanh.f32 %v7487_v46 }
 0xb8b   :  { %v7624_v16 = vpop.f32.mrb[98].mxu1 }
 0xb8c   :  { %v13394_v15 = vpop.eup %13393  ;;  %v7625_v39 = vadd.f32 %v7624_v16, %v14835_v34  ;;  %v12131_v57 = vpop.f32.mrb[99].mxu1  ;;  %v15004_v16 = vld [vmem:[%s15281_s3] ss:$0 sm:$0xff] }
 0xb8d   :  { %v7638_v58 = vadd.f32 1.0, %v13394_v15 }
 0xb8e   :  { %v7628_v1 = vadd.f32 %v14561_v55, %v7625_v39 }
 0xb8f   :  { %13399 = vrcp.f32 %v7638_v58 }
 0xb90   :  { %v10452_v36 = vmul.f32 -1.442695, %v7628_v1 }
 0xb91   :  { %v13396_v40 = vpop.eup %13395 }
 0xb92   :  { %v13398_v49 = vpop.eup %13397  ;;  %13401 = vpow2.f32 %v10452_v36 }
 0xb93   :  { %v7649_v29 = vmul.f32 %v13398_v49, %v13396_v40  ;;  %v14928_v61 = vpop.f32.mrb[100].mxu1 }
 0xb94   :  { %v12153_v42 = vpop.f32.mrb[101].mxu1 }
 0xb95   :  { %v15018_v42 = vld [vmem:[%s15281_s3 + $0x2] ss:$0 sm:$0xff] }
 0xb99   :  { %v13400_v10 = vpop.eup %13399 }
 0xb9a   :  { %v7648_v60 = vmul.f32 %v13400_v10, %v14750_v52 }
 0xb9b   :  { %v14931_v51 = vpop.f32.mrb[102].mxu1 }
 0xb9c   :  { %v13402_v17 = vpop.eup %13401  ;;  %v14933_v34 = vadd.f32 %v7649_v29, %v7648_v60  ;;  %v12171_v7 = vpop.f32.mrb[103].mxu1 }
 0xb9d   :  { %v7645_v21 = vadd.f32 1.0, %v13402_v17 }
 0xb9e   :  { %13403 = vtanh.f32 %v14933_v34 }
 0xb9f   :  { %13405 = vrcp.f32 %v7645_v21  ;;  %v14936_v55 = vpop.f32.mrb[104].mxu1 }
 0xba0   :  { %v12196_v27 = vpop.f32.mrb[105].mxu1 }
 0xba1   :  { %v15025_v27 = vld [vmem:[%s15281_s3 + $0x3] ss:$0 sm:$0xff] }
 0xba7   :  { %v14938_v18 = vpop.f32.mrb[106].mxu1 }
 0xba8   :  { %v13404_v3 = vpop.eup %13403  ;;  %v12207_v28 = vpop.f32.mrb[107].mxu1 }
 0xba9   :  { %v13406_v45 = vpop.eup %13405 }
 0xbaa   :  { %v7652_v24 = vmul.f32 %v13406_v45, %v13404_v3 }
 0xbac   :  { %12141 = vmatmul.mubr.msk.f32.vlgmr.msra.gmra.mrb[102].mxu0 %vm39_vm2, %v7652_v24 }
 0xbad   :  { %13033 = vmatpush3.bf16.msra.mxu0 %v13577_v9  ;;  %12158 = vmatprep.mubr.msk.f32.mxu0 %vm13490_vm0, %v13491_v6 }
 0xbae   :  { %13040 = vmatprep.subr.bf16.mxu0 %v13489_v0 }
 0xbb0   :  { %12159 = vmatmul.mubr.msk.f32.vlgmr.msra.gmra.mrb[104].mxu0 %vm113_vm1, %v14882_v5 }
 0xbb1   :  { %13042 = vmatpush3.bf16.msra.mxu0 %v13640_v26  ;;  %12176 = vmatprep.mubr.msk.f32.mxu0 %vm13490_vm0, %v13491_v6 }
 0xbb2   :  { %13043 = vmatprep.subr.bf16.mxu0 %v13489_v0 }
 0xbb4   :  { %12177 = vmatmul.mubr.msk.f32.vlgmr.msra.gmra.mrb[106].mxu0 %vm113_vm1, %v14882_v5 }
 0xbb5   :  { %13045 = vmatpush3.bf16.msra.mxu0 %v13612_v19  ;;  %12187 = vmatprep.mubr.msk.f32.mxu0 %vm13490_vm0, %v13491_v6 }
 0xbb6   :  { %13046 = vmatprep.subr.bf16.mxu0 %v13489_v0 }
 0xbb9   :  { %13048 = vmatpush3.bf16.msra.mxu0 %v13635_v25 }
 0xbba   :  { %13058 = vmatprep.subr.bf16.mxu0 %v13489_v0 }
 0xbbc   :  { %12188 = vmatmul.mubr.msk.f32.vlgmr.msra.gmra.mrb[108].mxu0 %vm39_vm2, %v14837_v30 }
 0xbbd   :  { %13060 = vmatpush3.bf16.msra.mxu0 %v13658_v31  ;;  %12212 = vmatprep.mubr.msk.f32.mxu0 %vm13490_vm0, %v13491_v6 }
 0xbbe   :  { %13061 = vmatprep.subr.bf16.mxu0 %v13489_v0 }
 0xbc0   :  { %12213 = vmatmul.mubr.msk.f32.vlgmr.msra.gmra.mrb[110].mxu0 %vm113_vm1, %v14882_v5 }
 0xbc1   :  { %13063 = vmatpush3.bf16.msra.mxu0 %v13715_v41  ;;  %12223 = vmatprep.mubr.msk.f32.mxu0 %vm13490_vm0, %v13491_v6 }
 0xbc2   :  { %13064 = vmatprep.subr.bf16.mxu0 %v13489_v0 }
 0xbc5   :  { %13066 = vmatpush3.bf16.msra.mxu0 %v13725_v44 }
 0xbc6   :  { %13073 = vmatprep.subr.bf16.mxu0 %v13489_v0 }
 0xbc8   :  { %12224 = vmatmul.mubr.msk.f32.vlgmr.msra.gmra.mrb[112].mxu0 %vm39_vm2, %v7652_v24 }
 0xbc9   :  { %13075 = vmatpush3.bf16.msra.mxu0 %v13735_v47  ;;  %12245 = vmatprep.mubr.msk.f32.mxu0 %vm13490_vm0, %v13491_v6 }
 0xbca   :  { %13076 = vmatprep.subr.bf16.mxu0 %v13489_v0 }
 0xbcd   :  { %13078 = vmatpush3.bf16.msra.mxu0 %v13748_v50 }
 0xbce   :  { %13085 = vmatprep.subr.bf16.mxu0 %v13489_v0 }
 0xbd0   :  { %12246 = vmatmul.mubr.msk.f32.vlgmr.msra.gmra.mrb[114].mxu0 %vm39_vm2, %v7652_v24 }
 0xbd1   :  { %13087 = vmatpush3.bf16.msra.mxu0 %v13758_v53  ;;  %12267 = vmatprep.mubr.msk.f32.mxu0 %vm13490_vm0, %v13491_v6 }
 0xbd2   :  { %13088 = vmatprep.subr.bf16.mxu0 %v13489_v0 }
 0xbd5   :  { %13090 = vmatpush3.bf16.msra.mxu0 %v13771_v56 }
 0xbd6   :  { %13097 = vmatprep.subr.bf16.mxu0 %v13489_v0 }
 0xbd8   :  { %12268 = vmatmul.mubr.msk.f32.vlgmr.msra.gmra.mrb[116].mxu0 %vm39_vm2, %v7652_v24 }
 0xbd9   :  { %13099 = vmatpush3.bf16.msra.mxu0 %v13781_v59  ;;  %12289 = vmatprep.mubr.msk.f32.mxu0 %vm13490_vm0, %v13491_v6 }
 0xbda   :  { %13100 = vmatprep.subr.bf16.mxu0 %v13489_v0 }
 0xbdd   :  { %13102 = vmatpush3.bf16.msra.mxu0 %v13794_v62 }
 0xbde   :  { %13109 = vmatprep.subr.bf16.mxu0 %v13489_v0 }
 0xbe0   :  { %12290 = vmatmul.mubr.msk.f32.vlgmr.msra.gmra.mrb[118].mxu0 %vm39_vm2, %v7652_v24 }
 0xbe1   :  { %12311 = vmatprep.mubr.msk.f32.mxu0 %vm13490_vm0, %v13491_v6 }
 0xc7f   :  { %v7726_v52 = vpop.f32.mrb[102].mxu0 }
 0xc80   :  { %v14998_v30 = vadd.f32 %v7726_v52, %v14815_v12  ;;  %v12142_v5 = vpop.f32.mrb[103].mxu0  ;;  %v15011_v12 = vld [vmem:[%s15281_s3 + $0x1] ss:$0 sm:$0xff] }
 0xc83   :  { %v7871_v11 = vpop.f32.mrb[104].mxu0 }
 0xc84   :  { %v7872_v22 = vadd.f32 %v7871_v11, %v14928_v61  ;;  %v12160_v46 = vpop.f32.mrb[105].mxu0 }
 0xc86   :  { %v7875_v15 = vadd.f32 %v15004_v16, %v7872_v22 }
 0xc87   :  { %v8012_v39 = vpop.f32.mrb[106].mxu0 }
 0xc88   :  { %v10462_v57 = vmul.f32 -1.442695, %v7875_v15  ;;  %v8013_v58 = vadd.f32 %v8012_v39, %v14931_v51  ;;  %v12178_v1 = vpop.f32.mrb[107].mxu0 }
 0xc8a   :  { %13407 = vpow2.f32 %v10462_v57  ;;  %v8016_v36 = vadd.f32 %v15011_v12, %v8013_v58 }
 0xc8c   :  { %v10463_v40 = vmul.f32 -1.442695, %v8016_v36 }
 0xc8e   :  { %13409 = vpow2.f32 %v10463_v40 }
 0xc8f   :  { %v8083_v49 = vpop.f32.mrb[108].mxu0 }
 0xc90   :  { %v8154_v29 = vadd.f32 %v14936_v55, %v8083_v49  ;;  %v12189_v61 = vpop.f32.mrb[109].mxu0 }
 0xc92   :  { %v8157_v10 = vadd.f32 %v15018_v42, %v8154_v29 }
 0xc93   :  { %v8294_v60 = vpop.f32.mrb[110].mxu0 }
 0xc94   :  { %v13408_v51 = vpop.eup %13407  ;;  %v8295_v17 = vadd.f32 %v8294_v60, %v14938_v18  ;;  %v12214_v7 = vpop.f32.mrb[111].mxu0  ;;  %13411 = vtanh.f32 %v8157_v10 }
 0xc95   :  { %v8302_v21 = vadd.f32 1.0, %v13408_v51  ;;  %v15124_v51 = vld [vmem:[%s15282_s6] ss:$0 sm:$0xff] }
 0xc96   :  { %v8298_v55 = vadd.f32 %v15025_v27, %v8295_v17 }
 0xc97   :  { %13413 = vrcp.f32 %v8302_v21 }
 0xc98   :  { %v13410_v3 = vpop.eup %13409  ;;  %v10464_v28 = vmul.f32 -1.442695, %v8298_v55 }
 0xc99   :  { %v8308_v45 = vadd.f32 1.0, %v13410_v3 }
 0xc9a   :  { %13415 = vpow2.f32 %v10464_v28  ;;  %v15131_v28 = vld [vmem:[%s15282_s6 + $0x1] ss:$0 sm:$0xff] }
 0xc9b   :  { %13417 = vrcp.f32 %v8308_v45  ;;  %v15028_v24 = vpop.f32.mrb[112].mxu0 }
 0xc9c   :  { %v12225_v52 = vpop.f32.mrb[113].mxu0 }
 0xc9e   :  { %v13412_v18 = vpop.eup %13411 }
 0xca1   :  { %v13414_v5 = vpop.eup %13413 }
 0xca2   :  { %v8319_v11 = vmul.f32 %v13414_v5, %v13412_v18 }
 0xca3   :  { %v15030_v22 = vpop.f32.mrb[114].mxu0 }
 0xca4   :  { %v13416_v46 = vpop.eup %13415  ;;  %v12247_v15 = vpop.f32.mrb[115].mxu0 }
 0xca5   :  { %v13418_v39 = vpop.eup %13417  ;;  %v8315_v57 = vadd.f32 1.0, %v13416_v46 }
 0xca6   :  { %v8318_v58 = vmul.f32 %v13418_v39, %v14830_v63 }
 0xca7   :  { %13419 = vrcp.f32 %v8315_v57 }
 0xca8   :  { %v15033_v1 = vadd.f32 %v8319_v11, %v8318_v58 }
 0xcaa   :  { %13421 = vtanh.f32 %v15033_v1 }
 0xcab   :  { %v15036_v36 = vpop.f32.mrb[116].mxu0 }
 0xcac   :  { %v12269_v40 = vpop.f32.mrb[117].mxu0 }
 0xcb1   :  { %v13420_v49 = vpop.eup %13419 }
 0xcb3   :  { %v15038_v29 = vpop.f32.mrb[118].mxu0 }
 0xcb4   :  { %v13422_v61 = vpop.eup %13421  ;;  %v12291_v10 = vpop.f32.mrb[119].mxu0 }
 0xcb5   :  { %v15040_v60 = vmul.f32 %v13422_v61, %v13420_v49 }
 0xcb7   :  { %12235 = vmatmul.mubr.msk.f32.vlgmr.msra.gmra.mrb[108].mxu1 %vm39_vm2, %v15040_v60 }
 0xcb8   :  { %13081 = vmatpush3.bf16.msra.mxu1 %v13858_v23  ;;  %12256 = vmatprep.mubr.msk.f32.mxu1 %vm13490_vm0, %v13491_v6 }
 0xcb9   :  { %13082 = vmatprep.subr.bf16.mxu1 %v13489_v0 }
 0xcbc   :  { %13084 = vmatpush3.bf16.msra.mxu1 %v13874_v33 }
 0xcbd   :  { %13091 = vmatprep.subr.bf16.mxu1 %v13489_v0 }
 0xcbf   :  { %12257 = vmatmul.mubr.msk.f32.vlgmr.msra.gmra.mrb[110].mxu1 %vm39_vm2, %v15040_v60 }
 0xcc0   :  { %13093 = vmatpush3.bf16.msra.mxu1 %v13891_v37  ;;  %12278 = vmatprep.mubr.msk.f32.mxu1 %vm13490_vm0, %v13491_v6 }
 0xcc1   :  { %13094 = vmatprep.subr.bf16.mxu1 %v13489_v0 }
 0xcc4   :  { %13096 = vmatpush3.bf16.msra.mxu1 %v13907_v43 }
 0xcc5   :  { %13103 = vmatprep.subr.bf16.mxu1 %v13489_v0 }
 0xcc7   :  { %12279 = vmatmul.mubr.msk.f32.vlgmr.msra.gmra.mrb[112].mxu1 %vm39_vm2, %v15040_v60 }
 0xcc8   :  { %13105 = vmatpush3.bf16.msra.mxu1 %v13922_v48  ;;  %12300 = vmatprep.mubr.msk.f32.mxu1 %vm13490_vm0, %v13491_v6 }
 0xcc9   :  { %13106 = vmatprep.subr.bf16.mxu1 %v13489_v0 }
 0xccc   :  { %13108 = vmatpush3.bf16.msra.mxu1 %v13939_v54 }
 0xccd   :  { %13115 = vmatprep.subr.bf16.mxu1 %v13489_v0 }
 0xccf   :  { %12301 = vmatmul.mubr.msk.f32.vlgmr.msra.gmra.mrb[114].mxu1 %vm39_vm2, %v15040_v60 }
 0xcd0   :  { %13117 = vmatpush3.bf16.msra.mxu1 %v13560_v4  ;;  %12322 = vmatprep.mubr.msk.f32.mxu1 %vm13490_vm0, %v13491_v6  ;;  %v15085_v4 = vpop.permute.xlu0 %9062 }
 0xcd1   :  { %13118 = vmatprep.subr.bf16.mxu1 %v13489_v0 }
 0xcd4   :  { %13120 = vmatpush3.bf16.msra.mxu1 %v13590_v13  ;;  %v8914_v13 = vld [vmem:[%s15283_s7 + $0xc0] sm:$0xff] }
 0xcd5   :  { %13124 = vmatprep.subr.bf16.mxu1 %v13489_v0 }
 0xcd7   :  { %12323 = vmatmul.mubr.msk.f32.vlgmr.msra.gmra.mrb[116].mxu1 %vm39_vm2, %v15040_v60 }
 0xcd8   :  { %13126 = vmatpush3.bf16.msra.mxu1 %v13594_v14  ;;  %12340 = vmatprep.mubr.msk.f32.mxu1 %vm13490_vm0, %v13491_v6  ;;  %v8915_v14 = vld [vmem:[%s15283_s7 + $0xc8] sm:$0xff] }
 0xcd9   :  { %13127 = vmatprep.subr.bf16.mxu1 %v13489_v0 }
 0xcdc   :  { %13129 = vmatpush3.bf16.msra.mxu1 %v13615_v20  ;;  %v13110_v20 = vpack.c.bf16 %v8915_v14, %v8914_v13 }
 0xcdd   :  { %13139 = vmatprep.subr.bf16.mxu1 %v13489_v0 }
 0xcde   :  { %13111 = vmatpush3.bf16.msra.mxu0 %v13110_v20 }
 0xcdf   :  { %12341 = vmatmul.mubr.msk.f32.vlgmr.msra.gmra.mrb[118].mxu1 %vm39_vm2, %v15040_v60  ;;  %13112 = vmatprep.subr.bf16.mxu0 %v13489_v0 }
 0xce0   :  { %13141 = vmatpush3.bf16.msra.mxu1 %v13663_v32  ;;  %12365 = vmatprep.mubr.msk.f32.mxu1 %vm13490_vm0, %v13491_v6  ;;  %v8916_v32 = vld [vmem:[%s15283_s7 + $0xd0] sm:$0xff] }
 0xce1   :  { %13142 = vmatprep.subr.bf16.mxu1 %v13489_v0 }
 0xce3   :  { %12366 = vmatmul.mubr.msk.f32.vlgmr.msra.gmra.mrb[120].mxu1 %vm113_vm1, %v15085_v4 }
 0xce4   :  { %13144 = vmatpush3.bf16.msra.mxu1 %v13680_v35  ;;  %12376 = vmatprep.mubr.msk.f32.mxu1 %vm13490_vm0, %v13491_v6  ;;  %v8917_v35 = vld [vmem:[%s15283_s7 + $0xd8] sm:$0xff] }
 0xce5   :  { %13145 = vmatprep.subr.bf16.mxu1 %v13489_v0 }
 0xce8   :  { %13147 = vmatpush3.bf16.msra.mxu1 %v13699_v38  ;;  %v13113_v38 = vpack.c.bf16 %v8917_v35, %v8916_v32 }
 0xce9   :  { %13157 = vmatprep.subr.bf16.mxu1 %v13489_v0 }
 0xcea   :  { %13114 = vmatpush3.bf16.msra.mxu0 %v13113_v38 }
 0xceb   :  { %12377 = vmatmul.mubr.msk.f32.vlgmr.msra.gmra.mrb[122].mxu1 %vm39_vm2, %v15040_v60  ;;  %13121 = vmatprep.subr.bf16.mxu0 %v13489_v0 }
 0xcec   :  { %13159 = vmatpush3.bf16.msra.mxu1 %v13804_v2  ;;  %12405 = vmatprep.mubr.msk.f32.mxu1 %vm13490_vm0, %v13491_v6 }
 0xced   :  { %13160 = vmatprep.subr.bf16.mxu1 %v13489_v0 }
 0xcf0   :  { %13162 = vmatpush3.bf16.msra.mxu1 %v13817_v8 }
 0xcf1   :  { %13169 = vmatprep.subr.bf16.mxu1 %v13489_v0 }
 0xd8a   :  { %v8462_v2 = vpop.f32.mrb[108].mxu1 }
 0xd8b   :  { %v8463_v8 = vadd.f32 %v8462_v2, %v15028_v24  ;;  %v12236_v63 = vpop.f32.mrb[109].mxu1 }
 0xd8d   :  { %v8466_v17 = vadd.f32 %v15124_v51, %v8463_v8 }
 0xd8f   :  { %v10473_v7 = vmul.f32 -1.442695, %v8466_v17 }
 0xd91   :  { %13423 = vpow2.f32 %v10473_v7 }
 0xd92   :  { %v8603_v21 = vpop.f32.mrb[110].mxu1 }
 0xd93   :  { %v8604_v55 = vadd.f32 %v8603_v21, %v15030_v22  ;;  %v12258_v3 = vpop.f32.mrb[111].mxu1  ;;  %v15138_v22 = vld [vmem:[%s15282_s6 + $0x2] ss:$0 sm:$0xff] }
 0xd95   :  { %v8607_v45 = vadd.f32 %v15131_v28, %v8604_v55 }
 0xd97   :  { %v10474_v24 = vmul.f32 -1.442695, %v8607_v45 }
 0xd99   :  { %13425 = vpow2.f32 %v10474_v24 }
 0xd9a   :  { %v8744_v52 = vpop.f32.mrb[112].mxu1 }
 0xd9b   :  { %v13424_v18 = vpop.eup %13423  ;;  %v8745_v5 = vadd.f32 %v8744_v52, %v15036_v36  ;;  %v12280_v11 = vpop.f32.mrb[113].mxu1  ;;  %v15145_v36 = vld [vmem:[%s15282_s6 + $0x3] ss:$0 sm:$0xff] }
 0xd9c   :  { %v8893_v46 = vadd.f32 1.0, %v13424_v18 }
 0xd9d   :  { %v8748_v15 = vadd.f32 %v15138_v22, %v8745_v5 }
 0xd9e   :  { %13427 = vrcp.f32 %v8893_v46 }
 0xd9f   :  { %13429 = vtanh.f32 %v8748_v15 }
 0xda2   :  { %v8885_v39 = vpop.f32.mrb[114].mxu1 }
 0xda3   :  { %v13426_v57 = vpop.eup %13425  ;;  %v8886_v58 = vadd.f32 %v8885_v39, %v15038_v29  ;;  %v12302_v40 = vpop.f32.mrb[115].mxu1 }
 0xda4   :  { %v8899_v49 = vadd.f32 1.0, %v13426_v57 }
 0xda5   :  { %v8889_v61 = vadd.f32 %v15145_v36, %v8886_v58 }
 0xda6   :  { %13431 = vrcp.f32 %v8899_v49 }
 0xda7   :  { %v10475_v10 = vmul.f32 -1.442695, %v8889_v61 }
 0xda8   :  { %v13428_v13 = vpop.eup %13427 }
 0xda9   :  { %v13430_v14 = vpop.eup %13429  ;;  %13433 = vpow2.f32 %v10475_v10 }
 0xdaa   :  { %v8910_v20 = vmul.f32 %v13430_v14, %v13428_v13  ;;  %v15148_v32 = vpop.f32.mrb[116].mxu1 }
 0xdab   :  { %v12324_v35 = vpop.f32.mrb[117].mxu1 }
 0xdb0   :  { %v13432_v38 = vpop.eup %13431 }
 0xdb1   :  { %v8909_v29 = vmul.f32 %v13432_v38, %v14933_v34 }
 0xdb2   :  { %v15151_v2 = vpop.f32.mrb[118].mxu1 }
 0xdb3   :  { %v13434_v8 = vpop.eup %13433  ;;  %v15153_v63 = vadd.f32 %v8910_v20, %v8909_v29  ;;  %v12342_v17 = vpop.f32.mrb[119].mxu1 }
 0xdb4   :  { %v8906_v7 = vadd.f32 1.0, %v13434_v8 }
 0xdb5   :  { %13435 = vtanh.f32 %v15153_v63 }
 0xdb6   :  { %13437 = vrcp.f32 %v8906_v7  ;;  %v15156_v21 = vpop.f32.mrb[120].mxu1 }
 0xdb7   :  { %v12367_v55 = vpop.f32.mrb[121].mxu1 }
 0xdbe   :  { %v15158_v3 = vpop.f32.mrb[122].mxu1 }
 0xdbf   :  { %v13436_v45 = vpop.eup %13435  ;;  %v12378_v24 = vpop.f32.mrb[123].mxu1 }
 0xdc0   :  { %v13438_v52 = vpop.eup %13437 }
 0xdc1   :  { %v8913_v18 = vmul.f32 %v13438_v52, %v13436_v45 }
 0xdc3   :  { %12312 = vmatmul.mubr.msk.f32.vlgmr.msra.gmra.mrb[120].mxu0 %vm39_vm2, %v8913_v18 }
 0xdc4   :  { %13123 = vmatpush3.bf16.msra.mxu0 %v13577_v9  ;;  %12329 = vmatprep.mubr.msk.f32.mxu0 %vm13490_vm0, %v13491_v6 }
 0xdc5   :  { %13130 = vmatprep.subr.bf16.mxu0 %v13489_v0 }
 0xdc7   :  { %12330 = vmatmul.mubr.msk.f32.vlgmr.msra.gmra.mrb[122].mxu0 %vm113_vm1, %v15085_v4 }
 0xdc8   :  { %13132 = vmatpush3.bf16.msra.mxu0 %v13640_v26  ;;  %12347 = vmatprep.mubr.msk.f32.mxu0 %vm13490_vm0, %v13491_v6 }
 0xdc9   :  { %13133 = vmatprep.subr.bf16.mxu0 %v13489_v0 }
 0xdcb   :  { %12348 = vmatmul.mubr.msk.f32.vlgmr.msra.gmra.mrb[124].mxu0 %vm113_vm1, %v15085_v4 }
 0xdcc   :  { %13135 = vmatpush3.bf16.msra.mxu0 %v13612_v19  ;;  %12358 = vmatprep.mubr.msk.f32.mxu0 %vm13490_vm0, %v13491_v6 }
 0xdcd   :  { %13136 = vmatprep.subr.bf16.mxu0 %v13489_v0 }
 0xdd0   :  { %13138 = vmatpush3.bf16.msra.mxu0 %v13635_v25 }
 0xdd1   :  { %13148 = vmatprep.subr.bf16.mxu0 %v13489_v0 }
 0xdd3   :  { %12359 = vmatmul.mubr.msk.f32.vlgmr.msra.gmra.mrb[126].mxu0 %vm39_vm2, %v15040_v60 }
 0xdd4   :  { %13150 = vmatpush3.bf16.msra.mxu0 %v13658_v31  ;;  %12383 = vmatprep.mubr.msk.f32.mxu0 %vm13490_vm0, %v13491_v6 }
 0xdd5   :  { %13151 = vmatprep.subr.bf16.mxu0 %v13489_v0 }
 0xdd7   :  { %12384 = vmatmul.mubr.msk.f32.vlgmr.msra.gmra.mrb[128].mxu0 %vm113_vm1, %v15085_v4 }
 0xdd8   :  { %13153 = vmatpush3.bf16.msra.mxu0 %v13715_v41  ;;  %12394 = vmatprep.mubr.msk.f32.mxu0 %vm13490_vm0, %v13491_v6 }
 0xdd9   :  { %13154 = vmatprep.subr.bf16.mxu0 %v13489_v0 }
 0xddc   :  { %13156 = vmatpush3.bf16.msra.mxu0 %v13725_v44 }
 0xddd   :  { %13163 = vmatprep.subr.bf16.mxu0 %v13489_v0 }
 0xddf   :  { %12395 = vmatmul.mubr.msk.f32.vlgmr.msra.gmra.mrb[130].mxu0 %vm39_vm2, %v8913_v18 }
 0xde0   :  { %13165 = vmatpush3.bf16.msra.mxu0 %v13735_v47  ;;  %12416 = vmatprep.mubr.msk.f32.mxu0 %vm13490_vm0, %v13491_v6 }
 0xde1   :  { %13166 = vmatprep.subr.bf16.mxu0 %v13489_v0 }
 0xde4   :  { %13168 = vmatpush3.bf16.msra.mxu0 %v13748_v50 }
 0xde5   :  { %13175 = vmatprep.subr.bf16.mxu0 %v13489_v0 }
 0xde7   :  { %12417 = vmatmul.mubr.msk.f32.vlgmr.msra.gmra.mrb[132].mxu0 %vm39_vm2, %v8913_v18 }
 0xde8   :  { %13177 = vmatpush3.bf16.msra.mxu0 %v13758_v53  ;;  %12438 = vmatprep.mubr.msk.f32.mxu0 %vm13490_vm0, %v13491_v6 }
 0xde9   :  { %13178 = vmatprep.subr.bf16.mxu0 %v13489_v0 }
 0xdec   :  { %13180 = vmatpush3.bf16.msra.mxu0 %v13771_v56 }
 0xded   :  { %13187 = vmatprep.subr.bf16.mxu0 %v13489_v0 }
 0xdef   :  { %12439 = vmatmul.mubr.msk.f32.vlgmr.msra.gmra.mrb[134].mxu0 %vm39_vm2, %v8913_v18 }
 0xdf0   :  { %13189 = vmatpush3.bf16.msra.mxu0 %v13781_v59  ;;  %12460 = vmatprep.mubr.msk.f32.mxu0 %vm13490_vm0, %v13491_v6 }
 0xdf1   :  { %13190 = vmatprep.subr.bf16.mxu0 %v13489_v0 }
 0xdf4   :  { %13192 = vmatpush3.bf16.msra.mxu0 %v13794_v62 }
 0xdf5   :  { %13199 = vmatprep.subr.bf16.mxu0 %v13489_v0 }
 0xdf7   :  { %12461 = vmatmul.mubr.msk.f32.vlgmr.msra.gmra.mrb[136].mxu0 %vm39_vm2, %v8913_v18 }
 0xdf8   :  { %12482 = vmatprep.mubr.msk.f32.mxu0 %vm13490_vm0, %v13491_v6 }
 0xe96   :  { %v8987_v9 = vpop.f32.mrb[120].mxu0 }
 0xe97   :  { %v15218_v19 = vadd.f32 %v8987_v9, %v14998_v30  ;;  %v12313_v25 = vpop.f32.mrb[121].mxu0 }
 0xe9a   :  { %v9132_v26 = vpop.f32.mrb[122].mxu0 }
 0xe9b   :  { %v9133_v31 = vadd.f32 %v9132_v26, %v15148_v32  ;;  %v12331_v41 = vpop.f32.mrb[123].mxu0 }
 0xe9d   :  { %v9136_v44 = vadd.f32 %v15004_v16, %v9133_v31 }
 0xe9e   :  { %v9273_v47 = vpop.f32.mrb[124].mxu0 }
 0xe9f   :  { %v10485_v50 = vmul.f32 -1.442695, %v9136_v44  ;;  %v9274_v53 = vadd.f32 %v9273_v47, %v15151_v2  ;;  %v12349_v56 = vpop.f32.mrb[125].mxu0 }
 0xea1   :  { %13439 = vpow2.f32 %v10485_v50  ;;  %v9277_v59 = vadd.f32 %v15011_v12, %v9274_v53 }
 0xea3   :  { %v10486_v62 = vmul.f32 -1.442695, %v9277_v59 }
 0xea5   :  { %13441 = vpow2.f32 %v10486_v62 }
 0xea6   :  { %v9344_v34 = vpop.f32.mrb[126].mxu0 }
 0xea7   :  { %v9415_v30 = vadd.f32 %v15156_v21, %v9344_v34  ;;  %v12360_v60 = vpop.f32.mrb[127].mxu0 }
 0xea9   :  { %v9418_v4 = vadd.f32 %v15018_v42, %v9415_v30 }
 0xeaa   :  { %v9555_v5 = vpop.f32.mrb[128].mxu0 }
 0xeab   :  { %v13440_v11 = vpop.eup %13439  ;;  %v9556_v16 = vadd.f32 %v9555_v5, %v15158_v3  ;;  %v12385_v46 = vpop.f32.mrb[129].mxu0  ;;  %13443 = vtanh.f32 %v9418_v4 }
 0xeac   :  { %v9563_v15 = vadd.f32 1.0, %v13440_v11 }
 0xead   :  { %v9559_v39 = vadd.f32 %v15025_v27, %v9556_v16 }
 0xeae   :  { %13445 = vrcp.f32 %v9563_v15 }
 0xeaf   :  { %v13442_v57 = vpop.eup %13441  ;;  %v10487_v12 = vmul.f32 -1.442695, %v9559_v39 }
 0xeb0   :  { %v9569_v58 = vadd.f32 1.0, %v13442_v57 }
 0xeb1   :  { %13447 = vpow2.f32 %v10487_v12  ;;  %v10500_v12 = vld [vmem:[%s15284_s8] ss:$0 sm:$0xff] }
 0xeb2   :  { %13449 = vrcp.f32 %v9569_v58  ;;  %v9650_v40 = vpop.f32.mrb[130].mxu0 }
 0xeb3   :  { %v12396_v49 = vpop.f32.mrb[131].mxu0 }
 0xeb5   :  { %v13444_v61 = vpop.eup %13443 }
 0xeb8   :  { %v13446_v10 = vpop.eup %13445 }
 0xeb9   :  { %v9580_v42 = vmul.f32 %v13446_v10, %v13444_v61 }
 0xeba   :  { %v9794_v13 = vpop.f32.mrb[132].mxu0 }
 0xebb   :  { %v13448_v14 = vpop.eup %13447  ;;  %v12418_v20 = vpop.f32.mrb[133].mxu0 }
 0xebc   :  { %v13450_v32 = vpop.eup %13449  ;;  %v9576_v35 = vadd.f32 1.0, %v13448_v14 }
 0xebd   :  { %v9579_v38 = vmul.f32 %v13450_v32, %v15033_v1 }
 0xebe   :  { %13451 = vrcp.f32 %v9576_v35 }
 0xebf   :  { %v9581_v29 = vadd.f32 %v9580_v42, %v9579_v38 }
 0xec1   :  { %13453 = vtanh.f32 %v9581_v29 }
 0xec2   :  { %v9935_v27 = vpop.f32.mrb[134].mxu0 }
 0xec3   :  { %v12440_v2 = vpop.f32.mrb[135].mxu0 }
 0xec8   :  { %v13452_v8 = vpop.eup %13451 }
 0xeca   :  { %v10076_v17 = vpop.f32.mrb[136].mxu0 }
 0xecb   :  { %v13454_v7 = vpop.eup %13453  ;;  %v12462_v21 = vpop.f32.mrb[137].mxu0 }
 0xecc   :  { %v9583_v55 = vmul.f32 %v13454_v7, %v13452_v8 }
 0xece   :  { %12406 = vmatmul.mubr.msk.f32.vlgmr.msra.gmra.mrb[124].mxu1 %vm39_vm2, %v9583_v55 }
 0xecf   :  { %13171 = vmatpush3.bf16.msra.mxu1 %v13858_v23  ;;  %12427 = vmatprep.mubr.msk.f32.mxu1 %vm13490_vm0, %v13491_v6  ;;  %v10175_v23 = vld [vmem:[%s15283_s7 + $0xe0] sm:$0xff] }
 0xed0   :  { %13172 = vmatprep.subr.bf16.mxu1 %v13489_v0 }
 0xed3   :  { %13174 = vmatpush3.bf16.msra.mxu1 %v13874_v33  ;;  %v10176_v33 = vld [vmem:[%s15283_s7 + $0xe8] sm:$0xff] }
 0xed4   :  { %13181 = vmatprep.subr.bf16.mxu1 %v13489_v0 }
 0xed6   :  { %12428 = vmatmul.mubr.msk.f32.vlgmr.msra.gmra.mrb[126].mxu1 %vm39_vm2, %v9583_v55 }
 0xed7   :  { %13183 = vmatpush3.bf16.msra.mxu1 %v13891_v37  ;;  %12449 = vmatprep.mubr.msk.f32.mxu1 %vm13490_vm0, %v13491_v6  ;;  %v10177_v37 = vld [vmem:[%s15283_s7 + $0xf0] sm:$0xff] }
 0xed8   :  { %13184 = vmatprep.subr.bf16.mxu1 %v13489_v0 }
 0xedb   :  { %13186 = vmatpush3.bf16.msra.mxu1 %v13907_v43  ;;  %v13200_v43 = vpack.c.bf16 %v10176_v33, %v10175_v23 }
 0xedc   :  { %13193 = vmatprep.subr.bf16.mxu1 %v13489_v0 }
 0xedd   :  { %13201 = vmatpush3.bf16.msra.mxu0 %v13200_v43 }
 0xede   :  { %12450 = vmatmul.mubr.msk.f32.vlgmr.msra.gmra.mrb[128].mxu1 %vm39_vm2, %v9583_v55  ;;  %13202 = vmatprep.subr.bf16.mxu0 %v13489_v0 }
 0xedf   :  { %13195 = vmatpush3.bf16.msra.mxu1 %v13922_v48  ;;  %12471 = vmatprep.mubr.msk.f32.mxu1 %vm13490_vm0, %v13491_v6  ;;  %v10178_v6 = vld [vmem:[%s15283_s7 + $0xf8] sm:$0xff] }
 0xee0   :  { %13196 = vmatprep.subr.bf16.mxu1 %v13489_v0  ;;  %v13203_v48 = vpack.c.bf16 %v10178_v6, %v10177_v37 }
 0xee2   :  { %13204 = vmatpush3.bf16.msra.mxu0 %v13203_v48 }
 0xee3   :  { %13198 = vmatpush3.bf16.msra.mxu1 %v13939_v54 }
 0xee6   :  { %12472 = vmatmul.mubr.msk.f32.vlgmr.msra.gmra.mrb[130].mxu1 %vm39_vm2, %v9583_v55 }
 0xfa1   :  { %v9723_v54 = vpop.f32.mrb[124].mxu1 }
 0xfa2   :  { %v9724_v1 = vadd.f32 %v9723_v54, %v9650_v40  ;;  %v12407_v3 = vpop.f32.mrb[125].mxu1 }
 0xfa4   :  { %v9727_v45 = vadd.f32 %v15124_v51, %v9724_v1 }
 0xfa6   :  { %v10496_v24 = vmul.f32 -1.442695, %v9727_v45 }
 0xfa8   :  { %13455 = vpow2.f32 %v10496_v24 }
 0xfa9   :  { %v9864_v52 = vpop.f32.mrb[126].mxu1 }
 0xfaa   :  { %v9865_v18 = vadd.f32 %v9864_v52, %v9794_v13  ;;  %v12429_v9 = vpop.f32.mrb[127].mxu1 }
 0xfac   :  { %v9868_v25 = vadd.f32 %v15131_v28, %v9865_v18 }
 0xfae   :  { %v10497_v26 = vmul.f32 -1.442695, %v9868_v25 }
 0xfb0   :  { %13457 = vpow2.f32 %v10497_v26 }
 0xfb1   :  { %v10005_v31 = vpop.f32.mrb[128].mxu1 }
 0xfb2   :  { %v13456_v41 = vpop.eup %13455  ;;  %v10006_v44 = vadd.f32 %v10005_v31, %v9935_v27  ;;  %v12451_v47 = vpop.f32.mrb[129].mxu1 }
 0xfb3   :  { %v10154_v0 = vadd.f32 1.0, %v13456_v41 }
 0xfb4   :  { %v10009_v50 = vadd.f32 %v15138_v22, %v10006_v44 }
 0xfb5   :  { %13459 = vrcp.f32 %v10154_v0 }
 0xfb6   :  { %13461 = vtanh.f32 %v10009_v50 }
 0xfb9   :  { %v10146_v53 = vpop.f32.mrb[130].mxu1 }
 0xfba   :  { %v13458_v51 = vpop.eup %13457  ;;  %v10147_v56 = vadd.f32 %v10146_v53, %v10076_v17  ;;  %v12473_v59 = vpop.f32.mrb[131].mxu1 }
 0xfbb   :  { %v10160_v62 = vadd.f32 1.0, %v13458_v51 }
 0xfbc   :  { %v10150_v34 = vadd.f32 %v15145_v36, %v10147_v56 }
 0xfbd   :  { %13463 = vrcp.f32 %v10160_v62 }
 0xfbe   :  { %v10498_v28 = vmul.f32 -1.442695, %v10150_v34 }
 0xfbf   :  { %v13460_v30 = vpop.eup %13459 }
 0xfc0   :  { %v13462_v60 = vpop.eup %13461  ;;  %13465 = vpow2.f32 %v10498_v28 }
 0xfc1   :  { %v10171_v4 = vmul.f32 %v13462_v60, %v13460_v30 }
 0xfc7   :  { %v13464_v5 = vpop.eup %13463 }
 0xfc8   :  { %v10170_v11 = vmul.f32 %v13464_v5, %v15153_v63 }
 0xfca   :  { %v13466_v16 = vpop.eup %13465  ;;  %v10172_v22 = vadd.f32 %v10171_v4, %v10170_v11 }
 0xfcb   :  { %v10167_v46 = vadd.f32 1.0, %v13466_v16 }
 0xfcc   :  { %13467 = vtanh.f32 %v10172_v22 }
 0xfcd   :  { %13469 = vrcp.f32 %v10167_v46 }
 0xfd6   :  { %v13468_v15 = vpop.eup %13467 }
 0xfd7   :  { %v13470_v39 = vpop.eup %13469 }
 0xfd8   :  { %v10174_v57 = vmul.f32 %v13470_v39, %v13468_v15 }
 0xfda   :  { %12483 = vmatmul.mubr.msk.f32.vlgmr.msra.gmra.mrb[138].mxu0 %vm39_vm2, %v10174_v57 }
0x10ad   :  { %v10248_v36 = vpop.f32.mrb[138].mxu0 }
0x10ae   :  { %v10252_v58 = vadd.f32 %v10248_v36, %v15218_v19  ;;  %v12484_v40 = vpop.f32.mrb[139].mxu0 }
0x10b0   :  { %v10260_v49 = vadd.f32 %v10500_v12, %v10252_v58 }
0x10b2   :  { %v10261_v63 = vmax.f32 %v10260_v49, 0.0 }
0x10b4   :  { %10263 = vst.msk [vmem:[%s15285_s9] sm:$0x3] %vm10262_vm3, %v10261_v63 }

</bundles_post_ra>
